<compile_context>
chip_gen: v6e
topology: v6e:2x2x1
jax: 0.10.0
libtpu: 0.0.40
codegen_flags: <defaults>
</compile_context>

<pallas_src>
import numpy as np
import jax
import jax.numpy as jnp
from jax import lax
from jax.experimental import pallas as pl
from jax.experimental.pallas import tpu as pltpu


# ---------------------------------------------------------------------------
# Fused kernel: edge gathers + dot-product attention + global (online) softmax
#               + per-relation pooling + ReLU
# ---------------------------------------------------------------------------
def _ra_fused_kernel(n_edges_ref, head_ref, type_ref, ex_ref, rel_ref,
                     o_ref, m_sc, l_sc, acc_sc):
    step = pl.program_id(0)
    tile_e = head_ref.shape[1]
    n_nodes = ex_ref.shape[0]
    n_rel = rel_ref.shape[0]

    # ---- init (first edge tile) --------------------------------------------
    @pl.when(step == 0)
    def _():
        m_sc[...] = jnp.full(m_sc.shape, -jnp.inf, jnp.float32)
        l_sc[...] = jnp.zeros(l_sc.shape, jnp.float32)
        acc_sc[...] = jnp.zeros(acc_sc.shape, jnp.float32)

    heads = head_ref[...]                                     # [1, TILE_E] int32
    types = type_ref[...]                                     # [1, TILE_E] int32

    # Lane-dense one-hots (edges on the 128-lane axis).  Compares/casts run in
    # int32/f32 on the VPU (v5e-safe); bf16 only appears at the MXU input.
    oh_head_f = (lax.broadcasted_iota(jnp.int32, (n_nodes, tile_e), 0)
                 == heads).astype(jnp.float32)                # [N, TILE_E]
    oh_type_f = (lax.broadcasted_iota(jnp.int32, (n_rel, tile_e), 0)
                 == types).astype(jnp.float32)                # [n_rel, TILE_E]

    # Gathers as bf16 MXU matmuls with M = TILE_E (edge tile fills the MXU rows;
    # one-hots are exact in bf16, e_x / rel_emb arrive pre-cast to bf16).
    gathered = lax.dot_general(                               # [TILE_E, r_hidden]
        oh_head_f.astype(jnp.bfloat16), ex_ref[...],
        dimension_numbers=(((0,), (0,)), ((), ())),
        preferred_element_type=jnp.float32)
    e_rel = lax.dot_general(                                  # [TILE_E, r_hidden]
        oh_type_f.astype(jnp.bfloat16), rel_ref[...],
        dimension_numbers=(((0,), (0,)), ((), ())),
        preferred_element_type=jnp.float32)

    # dp[e] = e_x[head[e]] . rel_emb[type[e]]
    dp = jnp.sum(gathered * e_rel, axis=1, keepdims=True)     # [TILE_E, 1]

    # Mask padded edges in the tail tile (n_edges lives in SMEM).
    e_global = step * tile_e + lax.broadcasted_iota(jnp.int32, (tile_e, 1), 0)
    dp = jnp.where(e_global < n_edges_ref[0], dp, -jnp.inf)

    # Online softmax statistics, global over all edges.
    m_prev = m_sc[...]                                        # [1, 1]
    m_new = jnp.maximum(m_prev, jnp.max(dp, axis=0, keepdims=True))
    alpha = jnp.exp(m_prev - m_new)                           # [1, 1]
    p = jnp.exp(dp - m_new)                                   # [TILE_E, 1]
    l_sc[...] = alpha * l_sc[...] + jnp.sum(p, axis=0, keepdims=True)
    # Per-relation numerator: acc[t,:] += sum_{e: type[e]==t} p[e] * e_rel[e,:]
    acc_sc[...] = alpha * acc_sc[...] + lax.dot_general(
        oh_type_f, e_rel * p,
        dimension_numbers=(((1,), (0,)), ((), ())),
        preferred_element_type=jnp.float32)
    m_sc[...] = m_new

    # ---- finalize (last edge tile): exact normalization + ReLU -------------
    @pl.when(step == pl.num_programs(0) - 1)
    def _():
        o_ref[...] = jnp.maximum(acc_sc[...] / l_sc[...], 0.0)


# ---------------------------------------------------------------------------
# Wrapper
# ---------------------------------------------------------------------------
def ra_layer_forward(x, edge_index, edge_type, rel_emb, e2r_weight, *, tile_e=512):
    n_nodes, e_hidden = x.shape
    n_rel, r_hidden = rel_emb.shape
    n_edges = int(edge_index.shape[1])

    if n_edges == 0:          # empty graph: empty pool -> zeros -> relu -> zeros
        return jnp.zeros((n_rel, r_hidden), jnp.float32)

    num_tiles = pl.cdiv(n_edges, tile_e)
    e_pad = num_tiles * tile_e

    # e2r projection as a plain XLA matmul feeding the kernel; bf16 is the
    # resident MXU gather operand inside the kernel.
    e_x = jnp.dot(x, e2r_weight.T, precision=lax.Precision.HIGHEST,
                  preferred_element_type=jnp.float32).astype(jnp.bfloat16)
    rel_bf = rel_emb.astype(jnp.bfloat16)

    # Pad edge index arrays to a multiple of the edge tile (padding masked in-kernel).
    heads = jnp.zeros((1, e_pad), jnp.int32).at[0, :n_edges].set(
        edge_index[0].astype(jnp.int32))
    types = jnp.zeros((1, e_pad), jnp.int32).at[0, :n_edges].set(
        edge_type.astype(jnp.int32))
    n_edges_smem = jnp.array([n_edges], jnp.int32)

    # Explicit scoped-VMEM limit: resident inputs + scratch + per-tile one-hots,
    # with 2x headroom, clamped to [32 MiB, 64 MiB] (v7x physical VMEM).
    rup = lambda v, m: -(-v // m) * m
    est = (2 * 2 * 8 * rup(tile_e, 128) * 4                    # index tiles (2 bufs)
           + 2 * rup(n_nodes, 16) * rup(r_hidden, 128) * 2     # e_x bf16 (resident)
           + 2 * rup(n_rel, 16) * rup(r_hidden, 128) * 2       # rel_emb bf16
           + 3 * rup(n_rel, 8) * rup(r_hidden, 128) * 4        # out block + acc scratch
           + rup(n_nodes, 8) * rup(tile_e, 128) * 6            # head one-hot f32+bf16
           + rup(n_rel, 8) * rup(tile_e, 128) * 6              # type one-hot f32+bf16
           + 3 * rup(tile_e, 8) * rup(r_hidden, 128) * 4)      # gathered/e_rel/weighted
    vmem_limit = int(min(64 * 1024 * 1024, max(32 * 1024 * 1024, 2 * est)))

    grid_spec = pltpu.PrefetchScalarGridSpec(
        num_scalar_prefetch=1,
        grid=(num_tiles,),
        in_specs=[
            pl.BlockSpec((1, tile_e), lambda s, n: (0, s)),          # edge heads (tiled)
            pl.BlockSpec((1, tile_e), lambda s, n: (0, s)),          # edge types (tiled)
            pl.BlockSpec((n_nodes, r_hidden), lambda s, n: (0, 0)),  # e_x   (bf16, resident)
            pl.BlockSpec((n_rel, r_hidden), lambda s, n: (0, 0)),    # rel   (bf16, resident)
        ],
        out_specs=pl.BlockSpec((n_rel, r_hidden), lambda s, n: (0, 0)),
        scratch_shapes=[
            pltpu.VMEM((1, 1), jnp.float32),             # running max m
            pltpu.VMEM((1, 1), jnp.float32),             # running sum-exp l
            pltpu.VMEM((n_rel, r_hidden), jnp.float32),  # per-relation numerator acc
        ],
    )

    return pl.pallas_call(
        _ra_fused_kernel,
        out_shape=jax.ShapeDtypeStruct((n_rel, r_hidden), jnp.float32),
        grid_spec=grid_spec,
        compiler_params=pltpu.CompilerParams(
            dimension_semantics=("arbitrary",),          # edge axis is a reduction
            vmem_limit_bytes=vmem_limit),
    )(n_edges_smem, heads, types, e_x, rel_bf)


# ---------------------------------------------------------------------------
# Pure-JAX references for verification
# ---------------------------------------------------------------------------
def ra_layer_ref(x, edge_index, edge_type, rel_emb, e2r_weight):
    """All-f32 reference of the PyTorch forward."""
    e_x = jnp.dot(x, e2r_weight.T, precision=lax.Precision.HIGHEST)
    e_head = e_x[edge_index[0]]
    e_rel = rel_emb[edge_type]
    dp = jnp.sum(e_head * e_rel, axis=-1)
    att = jax.nn.softmax(dp)
    weighted = e_rel * att[:, None]
    x_r = jnp.zeros(rel_emb.shape, jnp.float32).at[edge_type].add(weighted)
    return jax.nn.relu(x_r)


def ra_layer_ref_bf16(x, edge_index, edge_type, rel_emb, e2r_weight):
    """Reference that mirrors the kernel's bf16 rounding of the MXU gather
    operands (e_x and rel_emb); everything else is f32."""
    e_x = jnp.dot(x, e2r_weight.T, precision=lax.Precision.HIGHEST,
                  preferred_element_type=jnp.float32
                  ).astype(jnp.bfloat16).astype(jnp.float32)
    rel = rel_emb.astype(jnp.bfloat16).astype(jnp.float32)
    e_head = e_x[edge_index[0]]
    e_rel = rel[edge_type]
    dp = jnp.sum(e_head * e_rel, axis=-1)
    att = jax.nn.softmax(dp)
    weighted = e_rel * att[:, None]
    x_r = jnp.zeros(rel_emb.shape, jnp.float32).at[edge_type].add(weighted)
    return jax.nn.relu(x_r)


if __name__ == "__main__":
    # Sizes implied by the module: N entities, E edges, num_rel relations.
    N, E = 48, 1000          # E spans 2 edge tiles (TILE_E=512) incl. a masked tail
    e_hidden, r_hidden = 32, 16
    num_rel = 8

    key = jax.random.PRNGKey(0)
    kx, kr, kw, ki, kt = jax.random.split(key, 5)

    x = jax.random.normal(kx, (N, e_hidden), jnp.float32)
    rel_emb = jax.random.normal(kr, (num_rel, r_hidden), jnp.float32)

    # xavier_normal_-style init for e2r: Linear(e_hidden, r_hidden, bias=False).
    std_e2r = float(np.sqrt(2.0 / (e_hidden + r_hidden)))
    e2r_weight = std_e2r * jax.random.normal(kw, (r_hidden, e_hidden), jnp.float32)
    # Note: self.ww = Linear(e_hidden + r_hidden, 1) is defined in __init__ but
    # never used in forward(), so it has no kernel counterpart.

    edge_index = jax.random.randint(ki, (2, E), 0, N, jnp.int32)
    edge_type = jax.random.randint(kt, (E,), 0, num_rel, jnp.int32)

    out = jax.block_until_ready(
        ra_layer_forward(x, edge_index, edge_type, rel_emb, e2r_weight))

    ref_bf16 = jax.block_until_ready(
        ra_layer_ref_bf16(x, edge_index, edge_type, rel_emb, e2r_weight))
    ref_f32 = jax.block_until_ready(
        ra_layer_ref(x, edge_index, edge_type, rel_emb, e2r_weight))

    assert out.shape == (num_rel, r_hidden)
    # Tight check vs. the reference that mirrors the kernel's bf16 MXU operands.
    np.testing.assert_allclose(np.asarray(out), np.asarray(ref_bf16),
                               rtol=1e-2, atol=2e-4)
    # Looser sanity check vs. the all-f32 reference (bf16 gather operands only
    # perturb the softmax logits by ~0.2-0.4% relative).
    np.testing.assert_allclose(np.asarray(out), np.asarray(ref_f32),
                               rtol=6e-2, atol=5e-3)
    print("KERNEL_OK")
</pallas_src>

<mosaic_0001>
module attributes {stable_mosaic.version = 11 : i64} {
  func.func @_ra_fused_kernel(%arg0: i32, %arg1: memref<1xi32, #tpu.memory_space<smem>>, %arg2: memref<1x512xi32, #tpu.memory_space<vmem>>, %arg3: memref<1x512xi32, #tpu.memory_space<vmem>>, %arg4: memref<48x16xbf16, #tpu.memory_space<vmem>>, %arg5: memref<8x16xbf16, #tpu.memory_space<vmem>>, %arg6: memref<8x16xf32, #tpu.memory_space<vmem>>, %arg7: memref<1x1xf32, #tpu.memory_space<vmem>>, %arg8: memref<1x1xf32, #tpu.memory_space<vmem>>, %arg9: memref<8x16xf32, #tpu.memory_space<vmem>>) attributes {dimension_semantics = [#tpu.dimension_semantics<arbitrary>], iteration_bounds = array<i64: 2>, scalar_prefetch = 1 : i64, scratch_operands = 3 : i64, tpu.core_type = #tpu.core_type<tc>, window_params = [{transform_indices = @transform_0, window_bounds = array<i64: 1, 512>}, {transform_indices = @transform_1, window_bounds = array<i64: 1, 512>}, {pipeline_mode = #tpu.pipeline_mode<synchronous>, transform_indices = @transform_2, window_bounds = array<i64: 48, 16>}, {pipeline_mode = #tpu.pipeline_mode<synchronous>, transform_indices = @transform_3, window_bounds = array<i64: 8, 16>}, {pipeline_mode = #tpu.pipeline_mode<synchronous>, transform_indices = @transform_4, window_bounds = array<i64: 8, 16>}]} {
    %c0_i32 = arith.constant 0 : i32
    %0 = arith.cmpi eq, %arg0, %c0_i32 : i32
    %1 = arith.extui %0 : i1 to i32
    %c0_i32_0 = arith.constant 0 : i32
    %2 = arith.cmpi ne, %1, %c0_i32_0 : i32
    scf.if %2 {
      %cst_28 = arith.constant 0xFF800000 : f32
      %60 = vector.broadcast %cst_28 : f32 to vector<1x1xf32>
      %c0_29 = arith.constant 0 : index
      %c0_30 = arith.constant 0 : index
      %61 = vector.load %arg7[%c0_29, %c0_30] : memref<1x1xf32, #tpu.memory_space<vmem>>, vector<1x1xf32>
      tpu.vector_store %arg7[%c0_29, %c0_30], %60 {strides = array<i32>} : memref<1x1xf32, #tpu.memory_space<vmem>>, vector<1x1xf32>,
      %cst_31 = arith.constant 0.000000e+00 : f32
      %62 = vector.broadcast %cst_31 : f32 to vector<1x1xf32>
      %c0_32 = arith.constant 0 : index
      %c0_33 = arith.constant 0 : index
      %63 = vector.load %arg8[%c0_32, %c0_33] : memref<1x1xf32, #tpu.memory_space<vmem>>, vector<1x1xf32>
      tpu.vector_store %arg8[%c0_32, %c0_33], %62 {strides = array<i32>} : memref<1x1xf32, #tpu.memory_space<vmem>>, vector<1x1xf32>,
      %cst_34 = arith.constant 0.000000e+00 : f32
      %64 = vector.broadcast %cst_34 : f32 to vector<8x16xf32>
      %c0_35 = arith.constant 0 : index
      %c0_36 = arith.constant 0 : index
      %65 = vector.load %arg9[%c0_35, %c0_36] : memref<8x16xf32, #tpu.memory_space<vmem>>, vector<8x16xf32>
      tpu.vector_store %arg9[%c0_35, %c0_36], %64 {strides = array<i32>} : memref<8x16xf32, #tpu.memory_space<vmem>>, vector<8x16xf32>,
    } else {
    }
    %c0 = arith.constant 0 : index
    %c0_1 = arith.constant 0 : index
    %3 = vector.load %arg2[%c0, %c0_1] : memref<1x512xi32, #tpu.memory_space<vmem>>, vector<1x512xi32>
    %c0_2 = arith.constant 0 : index
    %c0_3 = arith.constant 0 : index
    %4 = vector.load %arg3[%c0_2, %c0_3] : memref<1x512xi32, #tpu.memory_space<vmem>>, vector<1x512xi32>
    %5 = tpu.iota {dimensions = array<i32: 0>} : vector<48x512xi32>
    %6 = vector.broadcast %3 : vector<1x512xi32> to vector<48x512xi32>
    %7 = arith.cmpi eq, %5, %6 : vector<48x512xi32>
    %8 = arith.extui %7 : vector<48x512xi1> to vector<48x512xi32>
    %9 = arith.sitofp %8 : vector<48x512xi32> to vector<48x512xf32>
    %10 = tpu.iota {dimensions = array<i32: 0>} : vector<8x512xi32>
    %11 = vector.broadcast %4 : vector<1x512xi32> to vector<8x512xi32>
    %12 = arith.cmpi eq, %10, %11 : vector<8x512xi32>
    %13 = arith.extui %12 : vector<8x512xi1> to vector<8x512xi32>
    %14 = arith.sitofp %13 : vector<8x512xi32> to vector<8x512xf32>
    %15 = arith.truncf %9 : vector<48x512xf32> to vector<48x512xbf16>
    %c0_4 = arith.constant 0 : index
    %c0_5 = arith.constant 0 : index
    %16 = vector.load %arg4[%c0_4, %c0_5] : memref<48x16xbf16, #tpu.memory_space<vmem>>, vector<48x16xbf16>
    %cst = arith.constant dense<0.000000e+00> : vector<512x16xf32>
    %17 = tpu.matmul %15, %16, %cst {dimension_numbers = #tpu.dot_dimension_numbers<[0], [0], [1], [1], [0, 1, 1, 1], [], []>} : vector<48x512xbf16>, vector<48x16xbf16>, vector<512x16xf32> -> vector<512x16xf32>
    %18 = arith.truncf %14 : vector<8x512xf32> to vector<8x512xbf16>
    %c0_6 = arith.constant 0 : index
    %c0_7 = arith.constant 0 : index
    %19 = vector.load %arg5[%c0_6, %c0_7] : memref<8x16xbf16, #tpu.memory_space<vmem>>, vector<8x16xbf16>
    %cst_8 = arith.constant dense<0.000000e+00> : vector<512x16xf32>
    %20 = tpu.matmul %18, %19, %cst_8 {dimension_numbers = #tpu.dot_dimension_numbers<[0], [0], [1], [1], [0, 1, 1, 1], [], []>} : vector<8x512xbf16>, vector<8x16xbf16>, vector<512x16xf32> -> vector<512x16xf32>
    %21 = arith.mulf %17, %20 : vector<512x16xf32>
    %cst_9 = arith.constant dense<0.000000e+00> : vector<512xf32>
    %22 = vector.multi_reduction <add>, %21, %cst_9 [1] : vector<512x16xf32> to vector<512xf32>
    %23 = vector.shape_cast %22 : vector<512xf32> to vector<512x1xf32>
    %c512_i32 = arith.constant 512 : i32
    %24 = arith.muli %arg0, %c512_i32 : i32
    %25 = tpu.iota {dimensions = array<i32: 0>} : vector<512x1xi32>
    %26 = vector.broadcast %24 : i32 to vector<512x1xi32>
    %27 = arith.addi %26, %25 : vector<512x1xi32>
    %c0_10 = arith.constant 0 : index
    %28 = memref.load %arg1[%c0_10] : memref<1xi32, #tpu.memory_space<smem>>
    %29 = vector.broadcast %28 : i32 to vector<512x1xi32>
    %30 = arith.cmpi slt, %27, %29 : vector<512x1xi32>
    %cst_11 = arith.constant 0xFF800000 : f32
    %31 = vector.broadcast %cst_11 : f32 to vector<512x1xf32>
    %32 = arith.select %30, %23, %31 : vector<512x1xi1>, vector<512x1xf32>
    %c0_12 = arith.constant 0 : index
    %c0_13 = arith.constant 0 : index
    %33 = vector.load %arg7[%c0_12, %c0_13] : memref<1x1xf32, #tpu.memory_space<vmem>>, vector<1x1xf32>
    %cst_14 = arith.constant dense<0xFF800000> : vector<1xf32>
    %34 = vector.multi_reduction <maximumf>, %32, %cst_14 [0] : vector<512x1xf32> to vector<1xf32>
    %35 = vector.shape_cast %34 : vector<1xf32> to vector<1x1xf32>
    %36 = arith.maximumf %33, %35 : vector<1x1xf32>
    %37 = arith.subf %33, %36 : vector<1x1xf32>
    %38 = math.exp %37 : vector<1x1xf32>
    %39 = vector.broadcast %36 : vector<1x1xf32> to vector<512x1xf32>
    %40 = arith.subf %32, %39 : vector<512x1xf32>
    %41 = math.exp %40 : vector<512x1xf32>
    %c0_15 = arith.constant 0 : index
    %c0_16 = arith.constant 0 : index
    %42 = vector.load %arg8[%c0_15, %c0_16] : memref<1x1xf32, #tpu.memory_space<vmem>>, vector<1x1xf32>
    %43 = arith.mulf %38, %42 : vector<1x1xf32>
    %cst_17 = arith.constant dense<0.000000e+00> : vector<1xf32>
    %44 = vector.multi_reduction <add>, %41, %cst_17 [0] : vector<512x1xf32> to vector<1xf32>
    %45 = vector.shape_cast %44 : vector<1xf32> to vector<1x1xf32>
    %46 = arith.addf %43, %45 : vector<1x1xf32>
    %c0_18 = arith.constant 0 : index
    %c0_19 = arith.constant 0 : index
    %47 = vector.load %arg8[%c0_18, %c0_19] : memref<1x1xf32, #tpu.memory_space<vmem>>, vector<1x1xf32>
    tpu.vector_store %arg8[%c0_18, %c0_19], %46 {strides = array<i32>} : memref<1x1xf32, #tpu.memory_space<vmem>>, vector<1x1xf32>,
    %c0_20 = arith.constant 0 : index
    %c0_21 = arith.constant 0 : index
    %48 = vector.load %arg9[%c0_20, %c0_21] : memref<8x16xf32, #tpu.memory_space<vmem>>, vector<8x16xf32>
    %49 = vector.broadcast %38 : vector<1x1xf32> to vector<8x16xf32>
    %50 = arith.mulf %49, %48 : vector<8x16xf32>
    %51 = vector.broadcast %41 : vector<512x1xf32> to vector<512x16xf32>
    %52 = arith.mulf %20, %51 : vector<512x16xf32>
    %cst_22 = arith.constant dense<0.000000e+00> : vector<8x16xf32>
    %53 = tpu.matmul %14, %52, %cst_22 {dimension_numbers = #tpu.dot_dimension_numbers<[1], [0], [0], [1], [0, 0, 1, 1], [], []>} : vector<8x512xf32>, vector<512x16xf32>, vector<8x16xf32> -> vector<8x16xf32>
    %54 = arith.addf %50, %53 : vector<8x16xf32>
    %c0_23 = arith.constant 0 : index
    %c0_24 = arith.constant 0 : index
    %55 = vector.load %arg9[%c0_23, %c0_24] : memref<8x16xf32, #tpu.memory_space<vmem>>, vector<8x16xf32>
    tpu.vector_store %arg9[%c0_23, %c0_24], %54 {strides = array<i32>} : memref<8x16xf32, #tpu.memory_space<vmem>>, vector<8x16xf32>,
    %c0_25 = arith.constant 0 : index
    %c0_26 = arith.constant 0 : index
    %56 = vector.load %arg7[%c0_25, %c0_26] : memref<1x1xf32, #tpu.memory_space<vmem>>, vector<1x1xf32>
    tpu.vector_store %arg7[%c0_25, %c0_26], %36 {strides = array<i32>} : memref<1x1xf32, #tpu.memory_space<vmem>>, vector<1x1xf32>,
    %c1_i32 = arith.constant 1 : i32
    %57 = arith.cmpi eq, %arg0, %c1_i32 : i32
    %58 = arith.extui %57 : i1 to i32
    %c0_i32_27 = arith.constant 0 : i32
    %59 = arith.cmpi ne, %58, %c0_i32_27 : i32
    scf.if %59 {
      %c0_28 = arith.constant 0 : index
      %c0_29 = arith.constant 0 : index
      %60 = vector.load %arg9[%c0_28, %c0_29] : memref<8x16xf32, #tpu.memory_space<vmem>>, vector<8x16xf32>
      %c0_30 = arith.constant 0 : index
      %c0_31 = arith.constant 0 : index
      %61 = vector.load %arg8[%c0_30, %c0_31] : memref<1x1xf32, #tpu.memory_space<vmem>>, vector<1x1xf32>
      %62 = vector.broadcast %61 : vector<1x1xf32> to vector<8x16xf32>
      %63 = arith.divf %60, %62 : vector<8x16xf32>
      %cst_32 = arith.constant 0.000000e+00 : f32
      %64 = vector.broadcast %cst_32 : f32 to vector<8x16xf32>
      %65 = arith.maximumf %63, %64 : vector<8x16xf32>
      %c0_33 = arith.constant 0 : index
      %c0_34 = arith.constant 0 : index
      %66 = vector.load %arg6[%c0_33, %c0_34] : memref<8x16xf32, #tpu.memory_space<vmem>>, vector<8x16xf32>
      tpu.vector_store %arg6[%c0_33, %c0_34], %65 {strides = array<i32>} : memref<8x16xf32, #tpu.memory_space<vmem>>, vector<8x16xf32>,
    } else {
    }
    return
  }
  func.func @transform_0(%arg0: i32, %arg1: memref<1xi32, #tpu.memory_space<smem>>) -> (i32, i32) {
    %c0_i32 = arith.constant 0 : i32
    %c0_i32_0 = arith.constant 0 : i32
    return %c0_i32, %arg0 : i32, i32
  }
  func.func @transform_1(%arg0: i32, %arg1: memref<1xi32, #tpu.memory_space<smem>>) -> (i32, i32) {
    %c0_i32 = arith.constant 0 : i32
    %c0_i32_0 = arith.constant 0 : i32
    return %c0_i32, %arg0 : i32, i32
  }
  func.func @transform_2(%arg0: i32, %arg1: memref<1xi32, #tpu.memory_space<smem>>) -> (i32, i32) {
    %c0_i32 = arith.constant 0 : i32
    %c0_i32_0 = arith.constant 0 : i32
    %c0_i32_1 = arith.constant 0 : i32
    return %c0_i32, %c0_i32_0 : i32, i32
  }
  func.func @transform_3(%arg0: i32, %arg1: memref<1xi32, #tpu.memory_space<smem>>) -> (i32, i32) {
    %c0_i32 = arith.constant 0 : i32
    %c0_i32_0 = arith.constant 0 : i32
    %c0_i32_1 = arith.constant 0 : i32
    return %c0_i32, %c0_i32_0 : i32, i32
  }
  func.func @transform_4(%arg0: i32, %arg1: memref<1xi32, #tpu.memory_space<smem>>) -> (i32, i32) {
    %c0_i32 = arith.constant 0 : i32
    %c0_i32_0 = arith.constant 0 : i32
    %c0_i32_1 = arith.constant 0 : i32
    return %c0_i32, %c0_i32_0 : i32, i32
  }
}

</mosaic_0001>

<bundles_post_ra>
// kernel: tpu_custom_call.1
= control target key start
LH: loop header
LB: loop body
LE: loop exit
PB: predicated region body
PF: predicated region fallthrough
CT: control target
= control target key end

     0   :  { %s5525_s0 = inlined_call_operand.<no memory space> [shape: s32[1], index: 0, kind: input, shape index: {}]   ;;  %s5526_s1 = inlined_call_operand.vmem [shape: s32[1,1024], index: 1, kind: input, shape index: {}]   ;;  %s5527_s2 = inlined_call_operand.vmem [shape: s32[1,1024], index: 2, kind: input, shape index: {}]   ;;  %s5528_s3 = inlined_call_operand.vmem [shape: bf16[48,16], index: 3, kind: input, shape index: {}]   ;;  %s5529_s4 = inlined_call_operand.vmem [shape: bf16[8,16], index: 4, kind: input, shape index: {}]   ;;  %s5530_s5 = inlined_call_operand.hbm [shape: f32[8,16], index: 5, kind: output, shape index: {}]  }
   0x1   :  { %10 = sst [smem:[#allocation6]] %s5525_s0 }
   0x2   :  { %11 = vsyncpa [#allocation8], 0  ;;  %s3438_s20 = smov 0  }
   0x3 LB: > { %s3444_s21 = sadd.s32 4294967295, %s3396_s20   ;;  %p2818_p0 = scmp.ge.s32.totalorder %s3396_s20, 1  ;;  %s3396_s20 = sphi %s3438_s20, %s17_s20  }
   0x4   : > { %p170_p1 = scmp.lt.s32.totalorder %s3396_s20, 3 }
   0x6   : > { %p171_p2 = pnand %p2818_p0, %p170_p1 }
   0x8   : > { %174 = sbr.rel (%p171_p2) target bundleno = 1329 (0x531), region = 36 }
   0xd   : > { %s2819_s22 = sshll.u32 %s3444_s21, 2  ;;  %p2821_p4 = scmp.ne.s32.totalorder %s3444_s21, 0 }
   0xe   : > { %p195_p3 = scmp.lt.s32.totalorder %s2819_s22, 7 }
   0xf   : > { %208 = sbr.rel (%p2821_p4) target bundleno = 23 (0x17), region = 40 }
  0x10   : > { %s6102_s22 = smov (!%p195_p3, %s2819_s22), 7 }
  0x11   : > { %s197_s24 = scalar_lea.vmem %s5526_s1, %s6102_s22  ;;  %s202_s27 = scalar_lea.vmem %s5527_s2, %s6102_s22 }
  0x14   : > { %vm209_vm0 = vcmask 0   ;;  %vm212_vm1 = vcmask 130048   ;;  %v3398_v0 = vmov -inf   ;;  %v3399_v1 = vmov 0.0  }
  0x15   : > { %210 = vst.msk [vmem:[#allocation2] sm:$0x1] %vm209_vm0, %v3398_v0  ;;  %211 = vst.msk [vmem:[#allocation3] sm:$0x1] %vm209_vm0, %v3399_v1 }
  0x16   : > { %213 = vst.msk [vmem:[#allocation4] sm:$0xff] %vm212_vm1, %v3399_v1 }
  0x17 PF: > { %v216_v2 = vlaneseq  ;;  %v3226_v3 = vld [vmem:[%s5528_s3 + $0x10] sm:$0xff]   ;;  %v3227_v5 = vld [vmem:[%s5528_s3 + $0x8] sm:$0xff]   ;;  %v3464_v6 = vld [vmem:[%s202_s27] sm:$0xf]  ;;  %vm991_vm2 = vcmask 1043456   ;;  %v5683_v18 = vmov 0 }
  0x18   : > { %3066 = vmatprep.subr.bf16.mxu0 %v3226_v3  ;;  %v3466_v7 = vld [vmem:[%s197_s24] sm:$0xf]  ;;  %v3400_v19 = vmov 0.0   ;;  %s1665_s11 = sld [smem:[#allocation6]]  ;;  %s2917_s12 = sshll.u32 %s3444_s21, 9 }
  0x19   : > { %v3459_v4 = vshrl.u32 %v216_v2, 7  ;;  %3067 = vmatpush3.bf16.msra.mxu0 %v3226_v3  ;;  %v3228_v11 = vld [vmem:[%s5528_s3] sm:$0xff]   ;;  %p2922_p5 = scmp.ne.s32.totalorder %s3444_s21, 1 }
  0x1a   : > { %3068 = vmatprep.subr.bf16.mxu0 %v3227_v5  ;;  %v829_v15 = vld [vmem:[%s5529_s4] sm:$0xf] }
  0x1b   : > { %5681 = vst [vmem:[#allocation10_spill] sm:$0xff] %v3459_v4  ;;  %v3469_v8 = vsub.s32 0, %v3459_v4  ;;  %v3472_v9 = vadd.s32 8, %v3459_v4  ;;  %v3475_v10 = vadd.s32 16, %v3459_v4  ;;  %v3481_v12 = vadd.s32 24, %v3459_v4  ;;  %3202 = vmatprep.subr.msk.bf16.mxu1 %vm991_vm2, %v829_v15 }
  0x1c   : > { %v3491_v16 = vadd.s32 32, %v3459_v4  ;;  %v3494_v17 = vadd.s32 40, %v3459_v4  ;;  %v237_v31 = vsub.s32 3, %v3459_v4  ;;  %v993_v33 = vsel %vm991_vm2, %v829_v15, 0 }
  0x1d   : > { %5682 = vst [vmem:[#allocation11_spill] sm:$0xff] %v3469_v8  ;;  %v266_v13 = vrot.slane %v3464_v6, %v3469_v8  ;;  %v226_v14 = vrot.slane %v3466_v7, %v3469_v8  ;;  %3069 = vmatpush3.bf16.msra.mxu0 %v3227_v5  ;;  %v229_v34 = vsub.s32 1, %v3459_v4  ;;  %3137 = vmatpush3.bf16.msra.mxu1 %v993_v33  ;;  %v233_v57 = vsub.s32 2, %v3459_v4 }
  0x1e   : > { %3070 = vmatprep.subr.bf16.mxu0 %v3228_v11  ;;  %v238_v32 = vrot.slane %v3466_v7, %v237_v31  ;;  %v1559_v8 = vadd.s32 184, %v3459_v4 }
  0x1f   : > { %vm3497_vm3 = vcmp.eq.s32.totalorder %v3459_v4, %v266_v13  ;;  %vm239_vm4 = vcmp.eq.s32.totalorder %v3459_v4, %v226_v14  ;;  %vm243_vm5 = vcmp.eq.s32.totalorder %v3472_v9, %v226_v14  ;;  %vm247_vm6 = vcmp.eq.s32.totalorder %v3475_v10, %v226_v14 }
  0x20   : > { %v5684_v18 = vsel %vm3497_vm3, 4294967295, %v5683_v18  ;;  %v2822_v20 = vsel %vm3497_vm3, 1.0, %v3400_v19  ;;  %v2826_v21 = vsel %vm239_vm4, 1.0, %v3400_v19  ;;  %v2830_v22 = vsel %vm243_vm5, 1.0, %v3400_v19 }
  0x21   : > { %5685 = vst [vmem:[#allocation12_spill] sm:$0xff] %v5684_v18  ;;  %vm251_vm7 = vcmp.eq.s32.totalorder %v3481_v12, %v226_v14  ;;  %v825_v23 = vpack.c.bf16 %v2822_v20, %v2822_v20  ;;  %v339_v24 = vpack.c.bf16 %v2830_v22, %v2826_v21  ;;  %v2834_v25 = vsel %vm247_vm6, 1.0, %v3400_v19  ;;  %3071 = vmatpush3.bf16.msra.mxu0 %v3228_v11 }
  0x22   : > { %v2838_v26 = vsel %vm251_vm7, 1.0, %v3400_v19  ;;  %vm255_vm8 = vcmp.eq.s32.totalorder %v3491_v16, %v226_v14  ;;  %vm259_vm9 = vcmp.eq.s32.totalorder %v3494_v17, %v226_v14  ;;  %vm242_vm10 = vcmp.eq.s32.totalorder %v3459_v4, %v238_v32 }
  0x23   : > { %830 = vxpose.xlu1.c.b16.start.end [1/1] (short) %v825_v23, 128  ;;  %357 = vxpose.xlu0.c.b16.start [1/3] (short) %v339_v24, 128  ;;  %v343_v27 = vpack.c.bf16 %v2838_v26, %v2834_v25  ;;  %v2842_v28 = vsel %vm255_vm8, 1.0, %v3400_v19  ;;  %v2846_v29 = vsel %vm259_vm9, 1.0, %v3400_v19  ;;  %vm246_vm11 = vcmp.eq.s32.totalorder %v3472_v9, %v238_v32 }
  0x24   : > { %v347_v30 = vpack.c.bf16 %v2846_v29, %v2842_v28  ;;  %v3526_v35 = vsel %vm242_vm10, 1.0, %v3400_v19  ;;  %v3529_v36 = vsel %vm246_vm11, 1.0, %v3400_v19  ;;  %vm250_vm12 = vcmp.eq.s32.totalorder %v3475_v10, %v238_v32 }
  0x25   : > { %v342_v37 = vpack.c.bf16 %v3529_v36, %v3526_v35  ;;  %vm254_vm13 = vcmp.eq.s32.totalorder %v3481_v12, %v238_v32  ;;  %v3536_v38 = vsel %vm250_vm12, 1.0, %v3400_v19  ;;  %vm258_vm14 = vcmp.eq.s32.totalorder %v3491_v16, %v238_v32 }
  0x26   : > { %v2841_v39 = vsel %vm254_vm13, 1.0, %v3400_v19  ;;  %vm262_vm15 = vcmp.eq.s32.totalorder %v3494_v17, %v238_v32  ;;  %v2845_v41 = vsel %vm258_vm14, 1.0, %v3400_v19  ;;  %v230_v43 = vrot.slane %v3466_v7, %v229_v34 }
  0x27   : > { %358 = vxpose.xlu0.c.b16.cont [2/3] (short) %v343_v27, 128  ;;  %v346_v40 = vpack.c.bf16 %v2841_v39, %v3536_v38  ;;  %v2849_v42 = vsel %vm262_vm15, 1.0, %v3400_v19  ;;  %v3546_v44 = vrot.slane %v3464_v6, %v229_v34  ;;  %v234_v58 = vrot.slane %v3466_v7, %v233_v57 }
  0x28   : > { %v350_v45 = vpack.c.bf16 %v2849_v42, %v2845_v41  ;;  %vm240_vm0 = vcmp.eq.s32.totalorder %v3459_v4, %v230_v43  ;;  %vm244_vm1 = vcmp.eq.s32.totalorder %v3472_v9, %v230_v43  ;;  %vm248_vm4 = vcmp.eq.s32.totalorder %v3475_v10, %v230_v43 }
  0x29   : > { %5686 = vst [vmem:[#allocation13_spill] sm:$0xff] %v3546_v44  ;;  %vm5606_vm2 = vcmp.eq.s32.totalorder %v3459_v4, %v3546_v44  ;;  %v2827_v46 = vsel %vm240_vm0, 1.0, %v3400_v19  ;;  %v2831_v47 = vsel %vm244_vm1, 1.0, %v3400_v19  ;;  %vm252_vm5 = vcmp.eq.s32.totalorder %v3481_v12, %v230_v43 }
  0x2a   : > { %v2823_v48 = vsel %vm5606_vm2, 1.0, %v3400_v19  ;;  %v340_v49 = vpack.c.bf16 %v2831_v47, %v2827_v46  ;;  %v2835_v51 = vsel %vm248_vm4, 1.0, %v3400_v19  ;;  %v2839_v52 = vsel %vm252_vm5, 1.0, %v3400_v19 }
  0x2b   : > { %359 = vxpose.xlu0.c.b16.end [3/3] (short) %v347_v30, 128  ;;  %v826_v50 = vpack.c.bf16 %v2823_v48, %v2823_v48  ;;  %vm256_vm6 = vcmp.eq.s32.totalorder %v3491_v16, %v230_v43  ;;  %vm260_vm7 = vcmp.eq.s32.totalorder %v3494_v17, %v230_v43  ;;  %v344_v53 = vpack.c.bf16 %v2839_v52, %v2835_v51 }
  0x2c   : > { %v2843_v54 = vsel %vm256_vm6, 1.0, %v3400_v19  ;;  %v2847_v55 = vsel %vm260_vm7, 1.0, %v3400_v19  ;;  %v3569_v59 = vrot.slane %v3464_v6, %v233_v57  ;;  %vm241_vm9 = vcmp.eq.s32.totalorder %v3459_v4, %v234_v58 }
  0x2d   : > { %v348_v56 = vpack.c.bf16 %v2847_v55, %v2843_v54  ;;  %vm245_vm10 = vcmp.eq.s32.totalorder %v3472_v9, %v234_v58  ;;  %v2828_v61 = vsel %vm241_vm9, 1.0, %v3400_v19  ;;  %vm249_vm11 = vcmp.eq.s32.totalorder %v3475_v10, %v234_v58 }
  0x2e   : > { %5687 = vst [vmem:[#allocation14_spill] sm:$0xff] %v3569_v59  ;;  %vm5604_vm8 = vcmp.eq.s32.totalorder %v3459_v4, %v3569_v59  ;;  %v2832_v62 = vsel %vm245_vm10, 1.0, %v3400_v19  ;;  %vm253_vm12 = vcmp.eq.s32.totalorder %v3481_v12, %v234_v58  ;;  %v2836_v1 = vsel %vm249_vm11, 1.0, %v3400_v19 }
  0x2f   : > { %v2824_v60 = vsel %vm5604_vm8, 1.0, %v3400_v19  ;;  %v341_v0 = vpack.c.bf16 %v2832_v62, %v2828_v61  ;;  %v2840_v2 = vsel %vm253_vm12, 1.0, %v3400_v19  ;;  %vm257_vm13 = vcmp.eq.s32.totalorder %v3491_v16, %v234_v58 }
  0x30   : > { %v827_v63 = vpack.c.bf16 %v2824_v60, %v2824_v60  ;;  %vm261_vm14 = vcmp.eq.s32.totalorder %v3494_v17, %v234_v58  ;;  %v345_v3 = vpack.c.bf16 %v2840_v2, %v2836_v1  ;;  %v2844_v5 = vsel %vm257_vm13, 1.0, %v3400_v19 }
  0x31   : > { %v2848_v7 = vsel %vm261_vm14, 1.0, %v3400_v19  ;;  %v3592_v13 = vrot.slane %v3464_v6, %v237_v31  ;;  %vm439_vm0 = vcmask 392192   ;;  %vm894_vm1 = vcmask 64512  }
  0x32   : > { %v349_v11 = vpack.c.bf16 %v2848_v7, %v2844_v5  ;;  %vm5603_vm4 = vcmask 130048  }
  0x33   : > { %5688 = vst [vmem:[#allocation15_spill] sm:$0xff] %v3592_v13  ;;  %vm5605_vm15 = vcmp.eq.s32.totalorder %v3459_v4, %v3592_v13 }
  0x34   : > { %v2825_v14 = vsel %vm5605_vm15, 1.0, %v3400_v19 }
  0x35   : > { %v828_v15 = vpack.c.bf16 %v2825_v14, %v2825_v14 }
  0x40   : > { %373 = vxpose.xlu1.c.b16.start [1/3] (short) %v340_v49, 128  ;;  %846 = vxpose.xlu0.c.b16.start.end [1/1] (short) %v826_v50, 128 }
  0x44   : > { %374 = vxpose.xlu1.c.b16.cont [2/3] (short) %v344_v53, 128 }
  0x48   : > { %375 = vxpose.xlu1.c.b16.end [3/3] (short) %v348_v56, 128 }
  0x5d   : > { %862 = vxpose.xlu1.c.b16.start.end [1/1] (short) %v827_v63, 128  ;;  %389 = vxpose.xlu0.c.b16.start [1/3] (short) %v341_v0, 128 }
  0x61   : > { %390 = vxpose.xlu0.c.b16.cont [2/3] (short) %v345_v3, 128 }
  0x65   : > { %391 = vxpose.xlu0.c.b16.end [3/3] (short) %v349_v11, 128 }
  0x7a   : > { %405 = vxpose.xlu1.c.b16.start [1/3] (short) %v342_v37, 128  ;;  %878 = vxpose.xlu0.c.b16.start.end [1/1] (short) %v828_v15, 128 }
  0x7e   : > { %406 = vxpose.xlu1.c.b16.cont [2/3] (short) %v346_v40, 128 }
  0x82   : > { %407 = vxpose.xlu1.c.b16.end [3/3] (short) %v350_v45, 128 }
  0x85   : > { %v838_v6 = vpop.trf.xlu1  ;;  %v365_v20 = vpop.trf.xlu0 }
  0x86   : > { %3072 = vmatprep.mubr.msk.bf16.mxu0 %vm439_vm0, %v365_v20  ;;  %3138 = vmatprep.mubr.msk.bf16.mxu1 %vm894_vm1, %v838_v6 }
  0x89   : > { %v839_v21 = vpop.trf.xlu1  ;;  %v366_v22 = vpop.trf.xlu0 }
  0x8a   : > { %3073 = vmatmul.mubr.msk.bf16.vlgmr.msra.gmra.mxu0 %vm439_vm0, %v366_v22  ;;  %3139 = vmatmul.mubr.msk.bf16.vlgmr.msra.gmra.mxu1 %vm894_vm1, %v839_v21 }
  0x8d   : > { %v840_v19 = vpop.trf.xlu1  ;;  %v367_v23 = vpop.trf.xlu0 }
  0x8e   : > { %3076 = vmatprep.mubr.msk.bf16.mxu0 %vm439_vm0, %v367_v23  ;;  %3142 = vmatprep.mubr.msk.bf16.mxu1 %vm894_vm1, %v840_v19 }
  0x91   : > { %v841_v24 = vpop.trf.xlu1  ;;  %v368_v25 = vpop.trf.xlu0 }
  0x92   : > { %3077 = vmatmul.mubr.msk.bf16.gmra.mxu0 %vm439_vm0, %v368_v25  ;;  %3143 = vmatmul.mubr.msk.bf16.gmra.mxu1 %vm894_vm1, %v841_v24 }
  0x95   : > { %v842_v26 = vpop.trf.xlu1  ;;  %v369_v27 = vpop.trf.xlu0 }
  0x96   : > { %3080 = vmatprep.mubr.msk.bf16.mxu0 %vm439_vm0, %v369_v27  ;;  %3146 = vmatprep.mubr.msk.bf16.mxu1 %vm894_vm1, %v842_v26 }
  0x99   : > { %v843_v28 = vpop.trf.xlu1  ;;  %v370_v29 = vpop.trf.xlu0 }
  0x9a   : > { %3081 = vmatmul.mubr.msk.bf16.gmra.mxu0 %vm439_vm0, %v370_v29  ;;  %3147 = vmatmul.mubr.msk.bf16.gmra.mxu1 %vm894_vm1, %v843_v28 }
  0x9d   : > { %v844_v30 = vpop.trf.xlu1  ;;  %v371_v31 = vpop.trf.xlu0 }
  0x9e   : > { %3084 = vmatprep.mubr.msk.bf16.mxu0 %vm439_vm0, %v371_v31  ;;  %3150 = vmatprep.mubr.msk.bf16.mxu1 %vm894_vm1, %v844_v30 }
  0xa1   : > { %v845_v32 = vpop.trf.xlu1  ;;  %v372_v33 = vpop.trf.xlu0 }
  0xa2   : > { %3085 = vmatmul.mubr.msk.bf16.gmra.mxu0 %vm439_vm0, %v372_v33  ;;  %3151 = vmatmul.mubr.msk.bf16.gmra.mxu1 %vm894_vm1, %v845_v32 }
  0xa5   : > { %v381_v34 = vpop.trf.xlu1  ;;  %v854_v35 = vpop.trf.xlu0 }
  0xa6   : > { %3088 = vmatprep.mubr.msk.bf16.mxu0 %vm439_vm0, %v381_v34  ;;  %3154 = vmatprep.mubr.msk.bf16.mxu1 %vm894_vm1, %v854_v35 }
  0xa9   : > { %v382_v36 = vpop.trf.xlu1  ;;  %v855_v37 = vpop.trf.xlu0 }
  0xaa   : > { %3089 = vmatmul.mubr.msk.bf16.gmra.mxu0 %vm439_vm0, %v382_v36  ;;  %3155 = vmatmul.mubr.msk.bf16.gmra.mxu1 %vm894_vm1, %v855_v37 }
  0xad   : > { %v383_v38 = vpop.trf.xlu1  ;;  %v856_v39 = vpop.trf.xlu0 }
  0xae   : > { %3092 = vmatprep.mubr.msk.bf16.mxu0 %vm439_vm0, %v383_v38  ;;  %3158 = vmatprep.mubr.msk.bf16.mxu1 %vm894_vm1, %v856_v39 }
  0xb1   : > { %v384_v40 = vpop.trf.xlu1  ;;  %v857_v41 = vpop.trf.xlu0 }
  0xb2   : > { %3093 = vmatmul.mubr.msk.bf16.gmra.mxu0 %vm439_vm0, %v384_v40  ;;  %3159 = vmatmul.mubr.msk.bf16.gmra.mxu1 %vm894_vm1, %v857_v41 }
  0xb5   : > { %v385_v42 = vpop.trf.xlu1  ;;  %v858_v43 = vpop.trf.xlu0 }
  0xb6   : > { %3096 = vmatprep.mubr.msk.bf16.mxu0 %vm439_vm0, %v385_v42  ;;  %3162 = vmatprep.mubr.msk.bf16.mxu1 %vm894_vm1, %v858_v43 }
  0xb9   : > { %v386_v45 = vpop.trf.xlu1  ;;  %v859_v46 = vpop.trf.xlu0 }
  0xba   : > { %3097 = vmatmul.mubr.msk.bf16.gmra.mxu0 %vm439_vm0, %v386_v45  ;;  %3163 = vmatmul.mubr.msk.bf16.gmra.mxu1 %vm894_vm1, %v859_v46 }
  0xbd   : > { %v387_v47 = vpop.trf.xlu1  ;;  %v860_v48 = vpop.trf.xlu0 }
  0xbe   : > { %3100 = vmatprep.mubr.msk.bf16.mxu0 %vm439_vm0, %v387_v47  ;;  %3166 = vmatprep.mubr.msk.bf16.mxu1 %vm894_vm1, %v860_v48 }
  0xc1   : > { %v388_v49 = vpop.trf.xlu1  ;;  %v861_v50 = vpop.trf.xlu0 }
  0xc2   : > { %3101 = vmatmul.mubr.msk.bf16.gmra.mxu0 %vm439_vm0, %v388_v49  ;;  %3167 = vmatmul.mubr.msk.bf16.gmra.mxu1 %vm894_vm1, %v861_v50 }
  0xc5   : > { %v870_v51 = vpop.trf.xlu1  ;;  %v397_v52 = vpop.trf.xlu0 }
  0xc6   : > { %3104 = vmatprep.mubr.msk.bf16.mxu0 %vm439_vm0, %v397_v52  ;;  %3170 = vmatprep.mubr.msk.bf16.mxu1 %vm894_vm1, %v870_v51 }
  0xc9   : > { %v871_v53 = vpop.trf.xlu1  ;;  %v398_v54 = vpop.trf.xlu0 }
  0xca   : > { %3105 = vmatmul.mubr.msk.bf16.gmra.mxu0 %vm439_vm0, %v398_v54  ;;  %3171 = vmatmul.mubr.msk.bf16.gmra.mxu1 %vm894_vm1, %v871_v53 }
  0xcd   : > { %v872_v55 = vpop.trf.xlu1  ;;  %v399_v56 = vpop.trf.xlu0 }
  0xce   : > { %3108 = vmatprep.mubr.msk.bf16.mxu0 %vm439_vm0, %v399_v56  ;;  %3174 = vmatprep.mubr.msk.bf16.mxu1 %vm894_vm1, %v872_v55 }
  0xd1   : > { %v873_v57 = vpop.trf.xlu1  ;;  %v400_v58 = vpop.trf.xlu0 }
  0xd2   : > { %3109 = vmatmul.mubr.msk.bf16.gmra.mxu0 %vm439_vm0, %v400_v58  ;;  %3175 = vmatmul.mubr.msk.bf16.gmra.mxu1 %vm894_vm1, %v873_v57 }
  0xd5   : > { %v874_v60 = vpop.trf.xlu1  ;;  %v401_v61 = vpop.trf.xlu0 }
  0xd6   : > { %3112 = vmatprep.mubr.msk.bf16.mxu0 %vm439_vm0, %v401_v61  ;;  %3178 = vmatprep.mubr.msk.bf16.mxu1 %vm894_vm1, %v874_v60 }
  0xd9   : > { %v875_v62 = vpop.trf.xlu1  ;;  %v402_v63 = vpop.trf.xlu0 }
  0xda   : > { %3113 = vmatmul.mubr.msk.bf16.gmra.mxu0 %vm439_vm0, %v402_v63  ;;  %3179 = vmatmul.mubr.msk.bf16.gmra.mxu1 %vm894_vm1, %v875_v62 }
  0xdd   : > { %v876_v0 = vpop.trf.xlu1  ;;  %v403_v1 = vpop.trf.xlu0 }
  0xde   : > { %3116 = vmatprep.mubr.msk.bf16.mxu0 %vm439_vm0, %v403_v1  ;;  %3182 = vmatprep.mubr.msk.bf16.mxu1 %vm894_vm1, %v876_v0 }
  0xe1   : > { %v877_v2 = vpop.trf.xlu1  ;;  %v404_v3 = vpop.trf.xlu0 }
  0xe2   : > { %3117 = vmatmul.mubr.msk.bf16.gmra.mxu0 %vm439_vm0, %v404_v3  ;;  %3183 = vmatmul.mubr.msk.bf16.gmra.mxu1 %vm894_vm1, %v877_v2 }
  0xe5   : > { %v413_v5 = vpop.trf.xlu1  ;;  %v886_v7 = vpop.trf.xlu0 }
  0xe6   : > { %3120 = vmatprep.mubr.msk.bf16.mxu0 %vm439_vm0, %v413_v5  ;;  %3186 = vmatprep.mubr.msk.bf16.mxu1 %vm894_vm1, %v886_v7 }
  0xe9   : > { %v414_v11 = vpop.trf.xlu1  ;;  %v887_v14 = vpop.trf.xlu0 }
  0xea   : > { %3121 = vmatmul.mubr.msk.bf16.gmra.mxu0 %vm439_vm0, %v414_v11  ;;  %3187 = vmatmul.mubr.msk.bf16.gmra.mxu1 %vm894_vm1, %v887_v14 }
  0xed   : > { %v415_v15 = vpop.trf.xlu1  ;;  %v888_v6 = vpop.trf.xlu0 }
  0xee   : > { %3124 = vmatprep.mubr.msk.bf16.mxu0 %vm439_vm0, %v415_v15  ;;  %3190 = vmatprep.mubr.msk.bf16.mxu1 %vm894_vm1, %v888_v6 }
  0xf1   : > { %v416_v20 = vpop.trf.xlu1  ;;  %v889_v21 = vpop.trf.xlu0 }
  0xf2   : > { %3125 = vmatmul.mubr.msk.bf16.gmra.mxu0 %vm439_vm0, %v416_v20  ;;  %3191 = vmatmul.mubr.msk.bf16.gmra.mxu1 %vm894_vm1, %v889_v21 }
  0xf5   : > { %v417_v22 = vpop.trf.xlu1  ;;  %v890_v19 = vpop.trf.xlu0 }
  0xf6   : > { %3128 = vmatprep.mubr.msk.bf16.mxu0 %vm439_vm0, %v417_v22  ;;  %3194 = vmatprep.mubr.msk.bf16.mxu1 %vm894_vm1, %v890_v19 }
  0xf9   : > { %v418_v23 = vpop.trf.xlu1  ;;  %v891_v24 = vpop.trf.xlu0 }
  0xfa   : > { %3129 = vmatmul.mubr.msk.bf16.gmra.mxu0 %vm439_vm0, %v418_v23  ;;  %3195 = vmatmul.mubr.msk.bf16.gmra.mxu1 %vm894_vm1, %v891_v24 }
  0xfd   : > { %v419_v25 = vpop.trf.xlu1  ;;  %v892_v26 = vpop.trf.xlu0 }
  0xfe   : > { %3132 = vmatprep.mubr.msk.bf16.mxu0 %vm439_vm0, %v419_v25  ;;  %3198 = vmatprep.mubr.msk.bf16.mxu1 %vm894_vm1, %v892_v26 }
 0x101   : > { %v420_v27 = vpop.trf.xlu1  ;;  %v893_v28 = vpop.trf.xlu0 }
 0x102   : > { %3133 = vmatmul.mubr.msk.bf16.gmra.mxu0 %vm439_vm0, %v420_v27  ;;  %3199 = vmatmul.mubr.msk.bf16.gmra.mxu1 %vm894_vm1, %v893_v28 }
 0x14a   : > { %v3074_v29 = vpop.f32.mrf.mxu0  ;;  %v3667_v30 = vpop.f32.mrf.mxu1 }
 0x14b   : > { %5689 = vst [vmem:[#allocation16_spill] sm:$0xff] %v3667_v30  ;;  %v1286_v31 = vmul.f32 %v3667_v30, %v3074_v29 }
 0x14c   : > { %v570_v32 = vpop.f32.mrf.mxu0  ;;  %v3670_v33 = vpop.f32.mrf.mxu1 }
 0x14d   : > { %5690 = vst [vmem:[#allocation17_spill] sm:$0xff] %v3670_v33  ;;  %v1284_v34 = vmul.f32 %v3670_v33, %v570_v32  ;;  %v1355_v35 = vsel %vm5603_vm4, %v1286_v31, 0.0 }
 0x14e   : > { %v3674_v36 = vpop.f32.mrf.mxu1  ;;  %1356 = vadd.xlane.f32.xlu0 %v1355_v35  ;;  %v3075_v37 = vpop.f32.mrf.mxu0 }
 0x14f   : > { %5691 = vst [vmem:[#allocation18_spill] sm:$0xff] %v3674_v36  ;;  %v1287_v38 = vmul.f32 %v3674_v36, %v3075_v37  ;;  %v1349_v42 = vsel %vm5603_vm4, %v1284_v34, 0.0 }
 0x150   : > { %v573_v39 = vpop.f32.mrf.mxu0  ;;  %v3677_v40 = vpop.f32.mrf.mxu1 }
 0x151   : > { %5692 = vst [vmem:[#allocation19_spill] sm:$0xff] %v3677_v40  ;;  %v1285_v41 = vmul.f32 %v3677_v40, %v573_v39  ;;  %v1358_v43 = vsel %vm5603_vm4, %v1287_v38, 0.0 }
 0x152   : > { %v3682_v45 = vpop.f32.mrf.mxu1  ;;  %1350 = vadd.xlane.f32.xlu0 %v1349_v42  ;;  %1359 = vadd.xlane.f32.xlu1 %v1358_v43  ;;  %v3078_v46 = vpop.f32.mrf.mxu0 }
 0x153   : > { %5693 = vst [vmem:[#allocation20_spill] sm:$0xff] %v3682_v45  ;;  %v1290_v47 = vmul.f32 %v3682_v45, %v3078_v46  ;;  %v1352_v51 = vsel %vm5603_vm4, %v1285_v41, 0.0 }
 0x154   : > { %v586_v48 = vpop.f32.mrf.mxu0  ;;  %v3685_v49 = vpop.f32.mrf.mxu1 }
 0x155   : > { %5694 = vst [vmem:[#allocation21_spill] sm:$0xff] %v3685_v49  ;;  %v1288_v50 = vmul.f32 %v3685_v49, %v586_v48  ;;  %v1367_v52 = vsel %vm5603_vm4, %v1290_v47, 0.0 }
 0x156   : > { %v3690_v53 = vpop.f32.mrf.mxu1  ;;  %1353 = vadd.xlane.f32.xlu1 %v1352_v51  ;;  %1368 = vadd.xlane.f32.xlu0 %v1367_v52  ;;  %v3079_v54 = vpop.f32.mrf.mxu0 }
 0x157   : > { %5695 = vst [vmem:[#allocation22_spill] sm:$0xff] %v3690_v53  ;;  %v1291_v55 = vmul.f32 %v3690_v53, %v3079_v54  ;;  %v1361_v60 = vsel %vm5603_vm4, %v1288_v50, 0.0 }
 0x158   : > { %v589_v56 = vpop.f32.mrf.mxu0  ;;  %v3693_v57 = vpop.f32.mrf.mxu1 }
 0x159   : > { %5696 = vst [vmem:[#allocation23_spill] sm:$0xff] %v3693_v57  ;;  %v1289_v58 = vmul.f32 %v3693_v57, %v589_v56  ;;  %v1370_v61 = vsel %vm5603_vm4, %v1291_v55, 0.0 }
 0x15a   : > { %v3698_v62 = vpop.f32.mrf.mxu1  ;;  %1362 = vadd.xlane.f32.xlu0 %v1361_v60  ;;  %1371 = vadd.xlane.f32.xlu1 %v1370_v61  ;;  %v3082_v63 = vpop.f32.mrf.mxu0 }
 0x15b   : > { %5697 = vst [vmem:[#allocation24_spill] sm:$0xff] %v3698_v62  ;;  %v1294_v0 = vmul.f32 %v3698_v62, %v3082_v63  ;;  %v1364_v5 = vsel %vm5603_vm4, %v1289_v58, 0.0 }
 0x15c   : > { %v602_v1 = vpop.f32.mrf.mxu0  ;;  %v3701_v2 = vpop.f32.mrf.mxu1 }
 0x15d   : > { %5698 = vst [vmem:[#allocation25_spill] sm:$0xff] %v3701_v2  ;;  %v1292_v3 = vmul.f32 %v3701_v2, %v602_v1  ;;  %v1379_v7 = vsel %vm5603_vm4, %v1294_v0, 0.0 }
 0x15e   : > { %v3706_v11 = vpop.f32.mrf.mxu1  ;;  %1365 = vadd.xlane.f32.xlu1 %v1364_v5  ;;  %1380 = vadd.xlane.f32.xlu0 %v1379_v7  ;;  %v3083_v14 = vpop.f32.mrf.mxu0 }
 0x15f   : > { %5699 = vst [vmem:[#allocation26_spill] sm:$0xff] %v3706_v11  ;;  %v1295_v15 = vmul.f32 %v3706_v11, %v3083_v14  ;;  %v1373_v22 = vsel %vm5603_vm4, %v1292_v3, 0.0 }
 0x160   : > { %v605_v6 = vpop.f32.mrf.mxu0  ;;  %v3709_v20 = vpop.f32.mrf.mxu1 }
 0x161   : > { %5700 = vst [vmem:[#allocation27_spill] sm:$0xff] %v3709_v20  ;;  %v1293_v21 = vmul.f32 %v3709_v20, %v605_v6  ;;  %v1382_v19 = vsel %vm5603_vm4, %v1295_v15, 0.0 }
 0x162   : > { %v3714_v23 = vpop.f32.mrf.mxu1  ;;  %1374 = vadd.xlane.f32.xlu0 %v1373_v22  ;;  %1383 = vadd.xlane.f32.xlu1 %v1382_v19  ;;  %v3086_v24 = vpop.f32.mrf.mxu0 }
 0x163   : > { %5701 = vst [vmem:[#allocation28_spill] sm:$0xff] %v3714_v23  ;;  %v1298_v25 = vmul.f32 %v3714_v23, %v3086_v24  ;;  %v1376_v29 = vsel %vm5603_vm4, %v1293_v21, 0.0 }
 0x164   : > { %v618_v26 = vpop.f32.mrf.mxu0  ;;  %v3717_v27 = vpop.f32.mrf.mxu1 }
 0x165   : > { %5702 = vst [vmem:[#allocation29_spill] sm:$0xff] %v3717_v27  ;;  %v1296_v28 = vmul.f32 %v3717_v27, %v618_v26  ;;  %v1391_v31 = vsel %vm5603_vm4, %v1298_v25, 0.0 }
 0x166   : > { %v3722_v32 = vpop.f32.mrf.mxu1  ;;  %1377 = vadd.xlane.f32.xlu1 %v1376_v29  ;;  %1392 = vadd.xlane.f32.xlu0 %v1391_v31  ;;  %v3087_v34 = vpop.f32.mrf.mxu0 }
 0x167   : > { %5703 = vst [vmem:[#allocation30_spill] sm:$0xff] %v3722_v32  ;;  %v1299_v35 = vmul.f32 %v3722_v32, %v3087_v34  ;;  %v1385_v41 = vsel %vm5603_vm4, %v1296_v28, 0.0 }
 0x168   : > { %v621_v37 = vpop.f32.mrf.mxu0  ;;  %v3725_v38 = vpop.f32.mrf.mxu1 }
 0x169   : > { %5704 = vst [vmem:[#allocation31_spill] sm:$0xff] %v3725_v38  ;;  %v1297_v39 = vmul.f32 %v3725_v38, %v621_v37  ;;  %v1394_v42 = vsel %vm5603_vm4, %v1299_v35, 0.0  ;;  %v1546_v38 = vadd.s32 80, %v3459_v4 }
 0x16a   : > { %1386 = vadd.xlane.f32.xlu0 %v1385_v41  ;;  %1395 = vadd.xlane.f32.xlu1 %v1394_v42  ;;  %v3090_v43 = vpop.f32.mrf.mxu0  ;;  %v3730_v46 = vpop.f32.mrf.mxu1 }
 0x16b   : > { %5705 = vst [vmem:[#allocation32_spill] sm:$0xff] %v3730_v46  ;;  %v1302_v47 = vmul.f32 %v3730_v46, %v3090_v43  ;;  %v1388_v52 = vsel %vm5603_vm4, %v1297_v39, 0.0 }
 0x16c   : > { %v634_v48 = vpop.f32.mrf.mxu0  ;;  %v3733_v50 = vpop.f32.mrf.mxu1 }
 0x16d   : > { %5706 = vst [vmem:[#allocation33_spill] sm:$0xff] %v3733_v50  ;;  %v1300_v51 = vmul.f32 %v3733_v50, %v634_v48  ;;  %v1403_v54 = vsel %vm5603_vm4, %v1302_v47, 0.0 }
 0x16e   : > { %1389 = vadd.xlane.f32.xlu1 %v1388_v52  ;;  %v3091_v55 = vpop.f32.mrf.mxu0  ;;  %1404 = vadd.xlane.f32.xlu0 %v1403_v54  ;;  %v3738_v56 = vpop.f32.mrf.mxu1 }
 0x16f   : > { %5707 = vst [vmem:[#allocation34_spill] sm:$0xff] %v3738_v56  ;;  %v1303_v58 = vmul.f32 %v3738_v56, %v3091_v55  ;;  %v1397_v0 = vsel %vm5603_vm4, %v1300_v51, 0.0 }
 0x170   : > { %v637_v60 = vpop.f32.mrf.mxu0  ;;  %v3741_v61 = vpop.f32.mrf.mxu1 }
 0x171   : > { %5708 = vst [vmem:[#allocation35_spill] sm:$0xff] %v3741_v61  ;;  %v1301_v63 = vmul.f32 %v3741_v61, %v637_v60  ;;  %v1406_v1 = vsel %vm5603_vm4, %v1303_v58, 0.0 }
 0x172   : > { %v3094_v3 = vpop.f32.mrf.mxu0  ;;  %1398 = vadd.xlane.f32.xlu0 %v1397_v0  ;;  %1407 = vadd.xlane.f32.xlu1 %v1406_v1  ;;  %v3746_v5 = vpop.f32.mrf.mxu1 }
 0x173   : > { %5709 = vst [vmem:[#allocation36_spill] sm:$0xff] %v3746_v5  ;;  %v1306_v7 = vmul.f32 %v3746_v5, %v3094_v3  ;;  %v1400_v21 = vsel %vm5603_vm4, %v1301_v63, 0.0 }
 0x174   : > { %v650_v14 = vpop.f32.mrf.mxu0  ;;  %v3749_v15 = vpop.f32.mrf.mxu1 }
 0x175   : > { %5710 = vst [vmem:[#allocation37_spill] sm:$0xff] %v3749_v15  ;;  %v1304_v6 = vmul.f32 %v3749_v15, %v650_v14  ;;  %v1415_v22 = vsel %vm5603_vm4, %v1306_v7, 0.0 }
 0x176   : > { %v3095_v19 = vpop.f32.mrf.mxu0  ;;  %1401 = vadd.xlane.f32.xlu1 %v1400_v21  ;;  %1416 = vadd.xlane.f32.xlu0 %v1415_v22  ;;  %v3754_v24 = vpop.f32.mrf.mxu1 }
 0x177   : > { %5711 = vst [vmem:[#allocation38_spill] sm:$0xff] %v3754_v24  ;;  %v1307_v25 = vmul.f32 %v3754_v24, %v3095_v19  ;;  %v1409_v31 = vsel %vm5603_vm4, %v1304_v6, 0.0 }
 0x178   : > { %v653_v26 = vpop.f32.mrf.mxu0  ;;  %v3757_v28 = vpop.f32.mrf.mxu1 }
 0x179   : > { %5712 = vst [vmem:[#allocation39_spill] sm:$0xff] %v3757_v28  ;;  %v1305_v29 = vmul.f32 %v3757_v28, %v653_v26  ;;  %v1418_v34 = vsel %vm5603_vm4, %v1307_v25, 0.0 }
 0x17a   : > { %v3098_v35 = vpop.f32.mrf.mxu0  ;;  %1410 = vadd.xlane.f32.xlu0 %v1409_v31  ;;  %1419 = vadd.xlane.f32.xlu1 %v1418_v34  ;;  %v3762_v37 = vpop.f32.mrf.mxu1 }
 0x17b   : > { %5713 = vst [vmem:[#allocation40_spill] sm:$0xff] %v3762_v37  ;;  %v1310_v39 = vmul.f32 %v3762_v37, %v3098_v35  ;;  %v1412_v47 = vsel %vm5603_vm4, %v1305_v29, 0.0 }
 0x17c   : > { %v666_v41 = vpop.f32.mrf.mxu0  ;;  %v3765_v42 = vpop.f32.mrf.mxu1 }
 0x17d   : > { %5714 = vst [vmem:[#allocation41_spill] sm:$0xff] %v3765_v42  ;;  %v1308_v43 = vmul.f32 %v3765_v42, %v666_v41  ;;  %v1427_v48 = vsel %vm5603_vm4, %v1310_v39, 0.0 }
 0x17e   : > { %v3099_v51 = vpop.f32.mrf.mxu0  ;;  %1413 = vadd.xlane.f32.xlu1 %v1412_v47  ;;  %1428 = vadd.xlane.f32.xlu0 %v1427_v48  ;;  %v3770_v52 = vpop.f32.mrf.mxu1 }
 0x17f   : > { %5715 = vst [vmem:[#allocation42_spill] sm:$0xff] %v3770_v52  ;;  %v1311_v54 = vmul.f32 %v3770_v52, %v3099_v51  ;;  %v1421_v63 = vsel %vm5603_vm4, %v1308_v43, 0.0 }
 0x180   : > { %v669_v55 = vpop.f32.mrf.mxu0  ;;  %v3773_v58 = vpop.f32.mrf.mxu1 }
 0x181   : > { %5716 = vst [vmem:[#allocation43_spill] sm:$0xff] %v3773_v58  ;;  %v1309_v60 = vmul.f32 %v3773_v58, %v669_v55  ;;  %v1430_v0 = vsel %vm5603_vm4, %v1311_v54, 0.0 }
 0x182   : > { %v3102_v1 = vpop.f32.mrf.mxu0  ;;  %1422 = vadd.xlane.f32.xlu0 %v1421_v63  ;;  %1431 = vadd.xlane.f32.xlu1 %v1430_v0  ;;  %v3778_v3 = vpop.f32.mrf.mxu1 }
 0x183   : > { %5717 = vst [vmem:[#allocation44_spill] sm:$0xff] %v3778_v3  ;;  %v1314_v7 = vmul.f32 %v3778_v3, %v3102_v1  ;;  %v1424_v22 = vsel %vm5603_vm4, %v1309_v60, 0.0 }
 0x184   : > { %v682_v14 = vpop.f32.mrf.mxu0  ;;  %v3781_v6 = vpop.f32.mrf.mxu1 }
 0x185   : > { %5718 = vst [vmem:[#allocation45_spill] sm:$0xff] %v3781_v6  ;;  %v1312_v21 = vmul.f32 %v3781_v6, %v682_v14  ;;  %v1439_v19 = vsel %vm5603_vm4, %v1314_v7, 0.0  ;;  %v1542_v6 = vadd.s32 48, %v3459_v4 }
 0x186   : > { %v3103_v25 = vpop.f32.mrf.mxu0  ;;  %1425 = vadd.xlane.f32.xlu1 %v1424_v22  ;;  %1440 = vadd.xlane.f32.xlu0 %v1439_v19  ;;  %v3786_v26 = vpop.f32.mrf.mxu1 }
 0x187   : > { %5719 = vst [vmem:[#allocation46_spill] sm:$0xff] %v3786_v26  ;;  %v1315_v29 = vmul.f32 %v3786_v26, %v3103_v25  ;;  %v1433_v39 = vsel %vm5603_vm4, %v1312_v21, 0.0  ;;  %v1558_v26 = vadd.s32 176, %v3459_v4 }
 0x188   : > { %v685_v31 = vpop.f32.mrf.mxu0  ;;  %v3789_v34 = vpop.f32.mrf.mxu1 }
 0x189   : > { %5720 = vst [vmem:[#allocation47_spill] sm:$0xff] %v3789_v34  ;;  %v1313_v35 = vmul.f32 %v3789_v34, %v685_v31  ;;  %v1442_v41 = vsel %vm5603_vm4, %v1315_v29, 0.0 }
 0x18a   : > { %1434 = vadd.xlane.f32.xlu0 %v1433_v39  ;;  %1443 = vadd.xlane.f32.xlu1 %v1442_v41  ;;  %v3106_v43 = vpop.f32.mrf.mxu0  ;;  %v3794_v47 = vpop.f32.mrf.mxu1 }
 0x18b   : > { %5721 = vst [vmem:[#allocation48_spill] sm:$0xff] %v3794_v47  ;;  %v1318_v48 = vmul.f32 %v3794_v47, %v3106_v43  ;;  %v1436_v60 = vsel %vm5603_vm4, %v1313_v35, 0.0 }
 0x18c   : > { %v698_v51 = vpop.f32.mrf.mxu0  ;;  %v3797_v54 = vpop.f32.mrf.mxu1 }
 0x18d   : > { %5722 = vst [vmem:[#allocation49_spill] sm:$0xff] %v3797_v54  ;;  %v1316_v55 = vmul.f32 %v3797_v54, %v698_v51  ;;  %v1451_v63 = vsel %vm5603_vm4, %v1318_v48, 0.0 }
 0x18e   : > { %1437 = vadd.xlane.f32.xlu1 %v1436_v60  ;;  %v3802_v0 = vpop.f32.mrf.mxu1  ;;  %1452 = vadd.xlane.f32.xlu0 %v1451_v63  ;;  %v3107_v1 = vpop.f32.mrf.mxu0 }
 0x18f   : > { %5723 = vst [vmem:[#allocation50_spill] sm:$0xff] %v3802_v0  ;;  %v1319_v7 = vmul.f32 %v3802_v0, %v3107_v1  ;;  %v1445_v19 = vsel %vm5603_vm4, %v1316_v55, 0.0 }
 0x190   : > { %v701_v14 = vpop.f32.mrf.mxu0  ;;  %v3805_v21 = vpop.f32.mrf.mxu1 }
 0x191   : > { %5724 = vst [vmem:[#allocation51_spill] sm:$0xff] %v3805_v21  ;;  %v1317_v22 = vmul.f32 %v3805_v21, %v701_v14  ;;  %v1454_v25 = vsel %vm5603_vm4, %v1319_v7, 0.0 }
 0x192   : > { %v3810_v29 = vpop.f32.mrf.mxu1  ;;  %1446 = vadd.xlane.f32.xlu0 %v1445_v19  ;;  %1455 = vadd.xlane.f32.xlu1 %v1454_v25  ;;  %v3110_v31 = vpop.f32.mrf.mxu0 }
 0x193   : > { %5725 = vst [vmem:[#allocation52_spill] sm:$0xff] %v3810_v29  ;;  %v1322_v35 = vmul.f32 %v3810_v29, %v3110_v31  ;;  %v1448_v48 = vsel %vm5603_vm4, %v1317_v22, 0.0 }
 0x194   : > { %v714_v39 = vpop.f32.mrf.mxu0  ;;  %v3813_v41 = vpop.f32.mrf.mxu1 }
 0x195   : > { %5726 = vst [vmem:[#allocation53_spill] sm:$0xff] %v3813_v41  ;;  %v1320_v43 = vmul.f32 %v3813_v41, %v714_v39  ;;  %v1463_v51 = vsel %vm5603_vm4, %v1322_v35, 0.0 }
 0x196   : > { %v3818_v60 = vpop.f32.mrf.mxu1  ;;  %1449 = vadd.xlane.f32.xlu1 %v1448_v48  ;;  %1464 = vadd.xlane.f32.xlu0 %v1463_v51  ;;  %v3111_v55 = vpop.f32.mrf.mxu0 }
 0x197   : > { %5727 = vst [vmem:[#allocation54_spill] sm:$0xff] %v3818_v60  ;;  %v1323_v63 = vmul.f32 %v3818_v60, %v3111_v55  ;;  %v1457_v19 = vsel %vm5603_vm4, %v1320_v43, 0.0 }
 0x198   : > { %v717_v1 = vpop.f32.mrf.mxu0  ;;  %v3821_v7 = vpop.f32.mrf.mxu1 }
 0x199   : > { %5728 = vst [vmem:[#allocation55_spill] sm:$0xff] %v3821_v7  ;;  %v1321_v14 = vmul.f32 %v3821_v7, %v717_v1  ;;  %v1466_v25 = vsel %vm5603_vm4, %v1323_v63, 0.0 }
 0x19a   : > { %v3826_v31 = vpop.f32.mrf.mxu1  ;;  %1458 = vadd.xlane.f32.xlu0 %v1457_v19  ;;  %1467 = vadd.xlane.f32.xlu1 %v1466_v25  ;;  %v3114_v22 = vpop.f32.mrf.mxu0 }
 0x19b   : > { %5729 = vst [vmem:[#allocation56_spill] sm:$0xff] %v3826_v31  ;;  %v1326_v35 = vmul.f32 %v3826_v31, %v3114_v22  ;;  %v1460_v55 = vsel %vm5603_vm4, %v1321_v14, 0.0  ;;  %v1545_v31 = vadd.s32 72, %v3459_v4 }
 0x19c   : > { %v730_v39 = vpop.f32.mrf.mxu0  ;;  %v3829_v48 = vpop.f32.mrf.mxu1 }
 0x19d   : > { %5730 = vst [vmem:[#allocation57_spill] sm:$0xff] %v3829_v48  ;;  %v1324_v51 = vmul.f32 %v3829_v48, %v730_v39  ;;  %v1475_v1 = vsel %vm5603_vm4, %v1326_v35, 0.0 }
 0x19e   : > { %v3834_v18 = vpop.f32.mrf.mxu1  ;;  %1461 = vadd.xlane.f32.xlu1 %v1460_v55  ;;  %1476 = vadd.xlane.f32.xlu0 %v1475_v1  ;;  %v3115_v43 = vpop.f32.mrf.mxu0 }
 0x19f   : > { %5731 = vst [vmem:[#allocation58_spill] sm:$0xff] %v3834_v18  ;;  %v1327_v63 = vmul.f32 %v3834_v18, %v3115_v43  ;;  %v1469_v33 = vsel %vm5603_vm4, %v1324_v51, 0.0  ;;  %v1550_v18 = vadd.s32 112, %v3459_v4 }
 0x1a0   : > { %v733_v19 = vpop.f32.mrf.mxu0  ;;  %v3837_v25 = vpop.f32.mrf.mxu1 }
 0x1a1   : > { %5732 = vst [vmem:[#allocation59_spill] sm:$0xff] %v3837_v25  ;;  %v1325_v22 = vmul.f32 %v3837_v25, %v733_v19  ;;  %v1478_v39 = vsel %vm5603_vm4, %v1327_v63, 0.0  ;;  %v1543_v25 = vadd.s32 56, %v3459_v4 }
 0x1a2   : > { %v3842_v50 = vpop.f32.mrf.mxu1  ;;  %1470 = vadd.xlane.f32.xlu0 %v1469_v33  ;;  %1479 = vadd.xlane.f32.xlu1 %v1478_v39  ;;  %v3118_v14 = vpop.f32.mrf.mxu0 }
 0x1a3   : > { %5733 = vst [vmem:[#allocation60_spill] sm:$0xff] %v3842_v50  ;;  %v1330_v35 = vmul.f32 %v3842_v50, %v3118_v14  ;;  %v1472_v40 = vsel %vm5603_vm4, %v1325_v22, 0.0 }
 0x1a4   : > { %v746_v55 = vpop.f32.mrf.mxu0  ;;  %v3845_v1 = vpop.f32.mrf.mxu1 }
 0x1a5   : > { %5734 = vst [vmem:[#allocation61_spill] sm:$0xff] %v3845_v1  ;;  %v1328_v43 = vmul.f32 %v3845_v1, %v746_v55  ;;  %v1487_v19 = vsel %vm5603_vm4, %v1330_v35, 0.0 }
 0x1a6   : > { %v3850_v61 = vpop.f32.mrf.mxu1  ;;  %1473 = vadd.xlane.f32.xlu1 %v1472_v40  ;;  %1488 = vadd.xlane.f32.xlu0 %v1487_v19  ;;  %v3119_v51 = vpop.f32.mrf.mxu0 }
 0x1a7   : > { %5735 = vst [vmem:[#allocation62_spill] sm:$0xff] %v3850_v61  ;;  %v1331_v33 = vmul.f32 %v3850_v61, %v3119_v51  ;;  %v1481_v30 = vsel %vm5603_vm4, %v1328_v43, 0.0 }
 0x1a8   : > { %v749_v63 = vpop.f32.mrf.mxu0  ;;  %v3853_v39 = vpop.f32.mrf.mxu1 }
 0x1a9   : > { %5736 = vst [vmem:[#allocation63_spill] sm:$0xff] %v3853_v39  ;;  %v1329_v14 = vmul.f32 %v3853_v39, %v749_v63  ;;  %v1490_v55 = vsel %vm5603_vm4, %v1331_v33, 0.0  ;;  %v1551_v39 = vadd.s32 120, %v3459_v4 }
 0x1aa   : > { %1482 = vadd.xlane.f32.xlu0 %v1481_v30  ;;  %1491 = vadd.xlane.f32.xlu1 %v1490_v55  ;;  %v3122_v22 = vpop.f32.mrf.mxu0  ;;  %v3858_v35 = vpop.f32.mrf.mxu1 }
 0x1ab   : > { %5737 = vst [vmem:[#allocation64_spill] sm:$0xff] %v3858_v35  ;;  %v1334_v40 = vmul.f32 %v3858_v35, %v3122_v22  ;;  %v1484_v36 = vsel %vm5603_vm4, %v1329_v14, 0.0 }
 0x1ac   : > { %v762_v19 = vpop.f32.mrf.mxu0  ;;  %v3861_v46 = vpop.f32.mrf.mxu1 }
 0x1ad   : > { %5738 = vst [vmem:[#allocation65_spill] sm:$0xff] %v3861_v46  ;;  %v1332_v51 = vmul.f32 %v3861_v46, %v762_v19  ;;  %v1499_v63 = vsel %vm5603_vm4, %v1334_v40, 0.0 }
 0x1ae   : > { %1485 = vadd.xlane.f32.xlu1 %v1484_v36  ;;  %v3123_v43 = vpop.f32.mrf.mxu0  ;;  %1500 = vadd.xlane.f32.xlu0 %v1499_v63  ;;  %v3866_v33 = vpop.f32.mrf.mxu1 }
 0x1af   : > { %5739 = vst [vmem:[#allocation66_spill] sm:$0xff] %v3866_v33  ;;  %v1335_v30 = vmul.f32 %v3866_v33, %v3123_v43  ;;  %v1493_v56 = vsel %vm5603_vm4, %v1332_v51, 0.0 }
 0x1b0   : > { %v765_v55 = vpop.f32.mrf.mxu0  ;;  %v3869_v59 = vpop.f32.mrf.mxu1 }
 0x1b1   : > { %5740 = vst [vmem:[#allocation67_spill] sm:$0xff] %v3869_v59  ;;  %v1333_v22 = vmul.f32 %v3869_v59, %v765_v55  ;;  %v1502_v19 = vsel %vm5603_vm4, %v1335_v30, 0.0 }
 0x1b2   : > { %v3126_v54 = vpop.f32.mrf.mxu0  ;;  %1494 = vadd.xlane.f32.xlu0 %v1493_v56  ;;  %1503 = vadd.xlane.f32.xlu1 %v1502_v19  ;;  %v3874_v14 = vpop.f32.mrf.mxu1 }
 0x1b3   : > { %5741 = vst [vmem:[#allocation68_spill] sm:$0xff] %v3874_v14  ;;  %v1338_v36 = vmul.f32 %v3874_v14, %v3126_v54  ;;  %v1496_v49 = vsel %vm5603_vm4, %v1333_v22, 0.0 }
 0x1b4   : > { %v778_v40 = vpop.f32.mrf.mxu0  ;;  %v3877_v63 = vpop.f32.mrf.mxu1 }
 0x1b5   : > { %5742 = vst [vmem:[#allocation69_spill] sm:$0xff] %v3877_v63  ;;  %v1336_v43 = vmul.f32 %v3877_v63, %v778_v40  ;;  %v1511_v55 = vsel %vm5603_vm4, %v1338_v36, 0.0 }
 0x1b6   : > { %v3127_v46 = vpop.f32.mrf.mxu0  ;;  %1497 = vadd.xlane.f32.xlu1 %v1496_v49  ;;  %1512 = vadd.xlane.f32.xlu0 %v1511_v55  ;;  %v3882_v51 = vpop.f32.mrf.mxu1 }
 0x1b7   : > { %5743 = vst [vmem:[#allocation70_spill] sm:$0xff] %v3882_v51  ;;  %v1339_v56 = vmul.f32 %v3882_v51, %v3127_v46  ;;  %v1505_v15 = vsel %vm5603_vm4, %v1336_v43, 0.0 }
 0x1b8   : > { %v781_v30 = vpop.f32.mrf.mxu0  ;;  %v3885_v19 = vpop.f32.mrf.mxu1 }
 0x1b9   : > { %5744 = vst [vmem:[#allocation71_spill] sm:$0xff] %v3885_v19  ;;  %v1337_v54 = vmul.f32 %v3885_v19, %v781_v30  ;;  %v1514_v40 = vsel %vm5603_vm4, %v1339_v56, 0.0 }
 0x1ba   : > { %v3130_v21 = vpop.f32.mrf.mxu0  ;;  %1506 = vadd.xlane.f32.xlu0 %v1505_v15  ;;  %1515 = vadd.xlane.f32.xlu1 %v1514_v40  ;;  %v3890_v22 = vpop.f32.mrf.mxu1 }
 0x1bb   : > { %5745 = vst [vmem:[#allocation72_spill] sm:$0xff] %v3890_v22  ;;  %v1342_v49 = vmul.f32 %v3890_v22, %v3130_v21  ;;  %v1508_v57 = vsel %vm5603_vm4, %v1337_v54, 0.0  ;;  %v1544_v22 = vadd.s32 64, %v3459_v4 }
 0x1bc   : > { %v794_v36 = vpop.f32.mrf.mxu0  ;;  %v3893_v55 = vpop.f32.mrf.mxu1 }
 0x1bd   : > { %5746 = vst [vmem:[#allocation73_spill] sm:$0xff] %v3893_v55  ;;  %v1340_v46 = vmul.f32 %v3893_v55, %v794_v36  ;;  %v1523_v30 = vsel %vm5603_vm4, %v1342_v49, 0.0  ;;  %v3990_v55 = vstv %s2917_s12 }
 0x1be   : > { %v3131_v59 = vpop.f32.mrf.mxu0  ;;  %1509 = vadd.xlane.f32.xlu1 %v1508_v57  ;;  %1524 = vadd.xlane.f32.xlu0 %v1523_v30  ;;  %v3898_v43 = vpop.f32.mrf.mxu1  ;;  %v4005_v1 = vadd.s32 %v3990_v55, %v3475_v10  ;;  %v4013_v50 = vadd.s32 %v3990_v55, %v3481_v12  ;;  %v4017_v23 = vadd.s32 %v3990_v55, %v3459_v4 }
 0x1bf   : > { %5747 = vst [vmem:[#allocation74_spill] sm:$0xff] %v3898_v43  ;;  %v1343_v15 = vmul.f32 %v3898_v43, %v3131_v59  ;;  %v1517_v28 = vsel %vm5603_vm4, %v1340_v46, 0.0  ;;  %v4024_v10 = vadd.s32 %v3990_v55, %v1542_v6  ;;  %v4027_v3 = vadd.s32 %v3990_v55, %v1543_v25 }
 0x1c0   : > { %v797_v56 = vpop.f32.mrf.mxu0  ;;  %v3901_v40 = vpop.f32.mrf.mxu1  ;;  %v4031_v13 = vadd.s32 %v3990_v55, %v3491_v16  ;;  %v4035_v12 = vadd.s32 %v3990_v55, %v3494_v17  ;;  %v4038_v44 = vadd.s32 %v3990_v55, %v1546_v38  ;;  %v4044_v6 = vadd.s32 %v3990_v55, %v1544_v22 }
 0x1c1   : > { %5748 = vst [vmem:[#allocation75_spill] sm:$0xff] %v3901_v40  ;;  %v1341_v21 = vmul.f32 %v3901_v40, %v797_v56  ;;  %v1526_v36 = vsel %vm5603_vm4, %v1343_v15, 0.0  ;;  %v1547_v40 = vadd.s32 88, %v3459_v4  ;;  %v4047_v25 = vadd.s32 %v3990_v55, %v1545_v31 }
 0x1c2   : > { %v3134_v47 = vpop.f32.mrf.mxu0  ;;  %1518 = vadd.xlane.f32.xlu0 %v1517_v28  ;;  %1527 = vadd.xlane.f32.xlu1 %v1526_v36  ;;  %v3906_v54 = vpop.f32.mrf.mxu1  ;;  %v4050_v61 = vadd.s32 %v3990_v55, %v1550_v18  ;;  %v4057_v17 = vadd.s32 %v3990_v55, %v1551_v39  ;;  %v1554_v22 = vadd.s32 144, %v3459_v4  ;;  %v1555_v31 = vadd.s32 152, %v3459_v4 }
 0x1c3   : > { %5749 = vst [vmem:[#allocation76_spill] sm:$0xff] %v3906_v54  ;;  %v1346_v57 = vmul.f32 %v3906_v54, %v3134_v47  ;;  %v1520_v45 = vsel %vm5603_vm4, %v1341_v21, 0.0  ;;  %v4021_v54 = vadd.s32 %v3990_v55, %v3472_v9  ;;  %v4041_v9 = vadd.s32 %v3990_v55, %v1547_v40 }
 0x1c4   : > { %v810_v49 = vpop.f32.mrf.mxu0  ;;  %v3909_v30 = vpop.f32.mrf.mxu1  ;;  %v1549_v40 = vadd.s32 104, %v3459_v4  ;;  %v1553_v18 = vadd.s32 136, %v3459_v4  ;;  %v1556_v39 = vadd.s32 160, %v3459_v4 }
 0x1c5   : > { %5750 = vst [vmem:[#allocation77_spill] sm:$0xff] %v3909_v30  ;;  %v1344_v59 = vmul.f32 %v3909_v30, %v810_v49  ;;  %v1535_v56 = vsel %vm5603_vm4, %v1346_v57, 0.0  ;;  %v4007_v30 = vstv %s1665_s11 }
 0x1c6   : > { %v3135_v35 = vpop.f32.mrf.mxu0  ;;  %1521 = vadd.xlane.f32.xlu1 %v1520_v45  ;;  %1536 = vadd.xlane.f32.xlu0 %v1535_v56  ;;  %v3914_v46 = vpop.f32.mrf.mxu1  ;;  %vm1673_vm5 = vcmp.lt.s32.totalorder %v4024_v10, %v4007_v30  ;;  %vm1674_vm6 = vcmp.lt.s32.totalorder %v4027_v3, %v4007_v30  ;;  %vm1669_vm7 = vcmp.lt.s32.totalorder %v4005_v1, %v4007_v30  ;;  %v4369_v1 = vadd.s32 488, %v3459_v4 }
 0x1c7   : > { %5751 = vst [vmem:[#allocation78_spill] sm:$0xff] %v3914_v46  ;;  %v1347_v28 = vmul.f32 %v3914_v46, %v3135_v35  ;;  %v1529_v5 = vsel %vm5603_vm4, %v1344_v59, 0.0  ;;  %v1552_v46 = vadd.s32 128, %v3459_v4  ;;  %vm1670_vm9 = vcmp.lt.s32.totalorder %v4013_v50, %v4007_v30 }
 0x1c8   : > { %v813_v15 = vpop.f32.mrf.mxu0  ;;  %v3917_v36 = vpop.f32.mrf.mxu1  ;;  %vm1671_vm10 = vcmp.lt.s32.totalorder %v4031_v13, %v4007_v30  ;;  %vm1667_vm11 = vcmp.lt.s32.totalorder %v4017_v23, %v4007_v30  ;;  %vm1672_vm12 = vcmp.lt.s32.totalorder %v4035_v12, %v4007_v30  ;;  %vm1677_vm13 = vcmp.lt.s32.totalorder %v4038_v44, %v4007_v30 }
 0x1c9   : > { %5752 = vst [vmem:[#allocation79_spill] sm:$0xff] %v3917_v36  ;;  %v1345_v47 = vmul.f32 %v3917_v36, %v813_v15  ;;  %v1538_v49 = vsel %vm5603_vm4, %v1347_v28, 0.0  ;;  %v1548_v36 = vadd.s32 96, %v3459_v4  ;;  %vm1678_vm14 = vcmp.lt.s32.totalorder %v4041_v9, %v4007_v30 }
 0x1ca   : > { %1530 = vadd.xlane.f32.xlu0 %v1529_v5  ;;  %1539 = vadd.xlane.f32.xlu1 %v1538_v49  ;;  %vm1668_vm0 = vcmp.lt.s32.totalorder %v4021_v54, %v4007_v30  ;;  %vm1675_vm1 = vcmp.lt.s32.totalorder %v4044_v6, %v4007_v30 }
 0x1cb   : > { %v1532_v21 = vsel %vm5603_vm4, %v1345_v47, 0.0  ;;  %v4060_v38 = vadd.s32 %v3990_v55, %v1548_v36  ;;  %v1562_v36 = vadd.s32 208, %v3459_v4 }
 0x1ce   : > { %1533 = vadd.xlane.f32.xlu1 %v1532_v21 }
 0x1d7   : > { %v3923_v45 = vpop.xlane.xlu0 %1356 }
 0x1db   : > { %v3925_v57 = vpop.xlane.xlu1 %1359  ;;  %v3927_v56 = vpop.xlane.xlu0 %1350 }
 0x1dc   : > { %v4354_v3 = vsel %vm1670_vm9, %v3925_v57, -inf  ;;  %v4375_v50 = vsel %vm1667_vm11, %v3927_v56, -inf }
 0x1dd   : > { %5812 = vst [vmem:[#allocation139_spill] sm:$0xff] %v4354_v3 }
 0x1df   : > { %v3929_v35 = vpop.xlane.xlu1 %1353  ;;  %v3931_v0 = vpop.xlane.xlu0 %1368 }
 0x1e0   : > { %v4401_v23 = vsel %vm1668_vm0, %v3929_v35, -inf  ;;  %vm5826_vm0 = vcmp.lt.s32.totalorder %v4057_v17, %v4007_v30 }
 0x1e3   : > { %v3933_v15 = vpop.xlane.xlu1 %1371  ;;  %v3935_v59 = vpop.xlane.xlu0 %1362 }
 0x1e7   : > { %v3937_v28 = vpop.xlane.xlu1 %1365  ;;  %v3939_v5 = vpop.xlane.xlu0 %1380 }
 0x1e8   : > { %v4381_v13 = vsel %vm1672_vm12, %v3937_v28, -inf }
 0x1e9   : > { %5814 = vst [vmem:[#allocation141_spill] sm:$0xff] %v4381_v13 }
 0x1eb   : > { %v3941_v47 = vpop.xlane.xlu1 %1383  ;;  %v3943_v49 = vpop.xlane.xlu0 %1374 }
 0x1ec   : > { %5753 = vst [vmem:[#allocation80_spill] sm:$0xff] %v3943_v49  ;;  %v1580_v49 = vadd.s32 352, %v3459_v4  ;;  %v4393_v57 = vsel %vm1678_vm14, %v3941_v47, -inf  ;;  %vm5823_vm14 = vcmp.lt.s32.totalorder %v4050_v61, %v4007_v30 }
 0x1ed   : > { %5816 = vst [vmem:[#allocation143_spill] sm:$0xff] %v4393_v57 }
 0x1ef   : > { %v3945_v21 = vpop.xlane.xlu1 %1377  ;;  %v3947_v53 = vpop.xlane.xlu0 %1392 }
 0x1f0   : > { %5754 = vst [vmem:[#allocation81_spill] sm:$0xff] %v3945_v21  ;;  %5755 = vst [vmem:[#allocation82_spill] sm:$0xff] %v3947_v53  ;;  %v1583_v21 = vadd.s32 376, %v3459_v4 }
 0x1f3   : > { %v3949_v33 = vpop.xlane.xlu1 %1395  ;;  %v3951_v24 = vpop.xlane.xlu0 %1386 }
 0x1f4   : > { %5756 = vst [vmem:[#allocation83_spill] sm:$0xff] %v3949_v33  ;;  %5757 = vst [vmem:[#allocation84_spill] sm:$0xff] %v3951_v24  ;;  %v1582_v24 = vadd.s32 368, %v3459_v4 }
 0x1f7   : > { %v3953_v41 = vpop.xlane.xlu1 %1389  ;;  %v3955_v2 = vpop.xlane.xlu0 %1404  ;;  %v5819_v47 = vld [vmem:[#allocation81_spill] sm:$0xff]  ;;  %v5822_v12 = vld [vmem:[#allocation82_spill] sm:$0xff] }
 0x1f8   : > { %5758 = vst [vmem:[#allocation85_spill] sm:$0xff] %v3953_v41  ;;  %5759 = vst [vmem:[#allocation86_spill] sm:$0xff] %v3955_v2  ;;  %v1577_v41 = vadd.s32 328, %v3459_v4  ;;  %v4435_v9 = vsel %vm5823_vm14, %v5822_v12, -inf }
 0x1f9   : > { %5824 = vst [vmem:[#allocation82_spill] sm:$0xff] %v4435_v9 }
 0x1fb   : > { %v3957_v63 = vpop.xlane.xlu1 %1407  ;;  %v3959_v42 = vpop.xlane.xlu0 %1398  ;;  %v5825_v6 = vld [vmem:[#allocation83_spill] sm:$0xff] }
 0x1fc   : > { %5760 = vst [vmem:[#allocation87_spill] sm:$0xff] %v3957_v63  ;;  %5761 = vst [vmem:[#allocation88_spill] sm:$0xff] %v3959_v42  ;;  %v1576_v63 = vadd.s32 320, %v3459_v4 }
 0x1ff   : > { %v3961_v7 = vpop.xlane.xlu1 %1401  ;;  %v3963_v20 = vpop.xlane.xlu0 %1416 }
 0x200   : > { %5762 = vst [vmem:[#allocation89_spill] sm:$0xff] %v3961_v7  ;;  %5763 = vst [vmem:[#allocation90_spill] sm:$0xff] %v3963_v20  ;;  %v1573_v20 = vadd.s32 296, %v3459_v4  ;;  %v1579_v7 = vadd.s32 344, %v3459_v4 }
 0x203   : > { %v3965_v19 = vpop.xlane.xlu1 %1419  ;;  %v3967_v58 = vpop.xlane.xlu0 %1410 }
 0x204   : > { %5764 = vst [vmem:[#allocation91_spill] sm:$0xff] %v3965_v19  ;;  %5765 = vst [vmem:[#allocation92_spill] sm:$0xff] %v3967_v58  ;;  %v1568_v19 = vadd.s32 256, %v3459_v4 }
 0x207   : > { %v3969_v29 = vpop.xlane.xlu1 %1413  ;;  %v3971_v62 = vpop.xlane.xlu0 %1428 }
 0x208   : > { %5766 = vst [vmem:[#allocation93_spill] sm:$0xff] %v3969_v29  ;;  %5767 = vst [vmem:[#allocation94_spill] sm:$0xff] %v3971_v62  ;;  %v4092_v62 = vadd.s32 %v3990_v55, %v1552_v46 }
 0x20a   : > { %5784 = vst [vmem:[#allocation111_spill] sm:$0xff] %v4092_v62  ;;  %vm1683_vm15 = vcmp.lt.s32.totalorder %v4092_v62, %v4007_v30 }
 0x20b   : > { %v3973_v14 = vpop.xlane.xlu1 %1431  ;;  %v3975_v37 = vpop.xlane.xlu0 %1422 }
 0x20c   : > { %5768 = vst [vmem:[#allocation95_spill] sm:$0xff] %v3973_v14  ;;  %5769 = vst [vmem:[#allocation96_spill] sm:$0xff] %v3975_v37  ;;  %v1564_v37 = vadd.s32 224, %v3459_v4  ;;  %v4089_v14 = vadd.s32 %v3990_v55, %v1555_v31  ;;  %v4110_v31 = vadd.s32 %v3990_v55, %v1562_v36 }
 0x20e   : > { %5783 = vst [vmem:[#allocation110_spill] sm:$0xff] %v4089_v14  ;;  %v4132_v36 = vadd.s32 %v3990_v55, %v1564_v37  ;;  %v1578_v37 = vadd.s32 336, %v3459_v4  ;;  %vm1693_vm8 = vcmp.lt.s32.totalorder %v4110_v31, %v4007_v30 }
 0x20f   : > { %v3977_v60 = vpop.xlane.xlu1 %1425  ;;  %v3979_v11 = vpop.xlane.xlu0 %1440 }
 0x210   : > { %5770 = vst [vmem:[#allocation97_spill] sm:$0xff] %v3977_v60  ;;  %5771 = vst [vmem:[#allocation98_spill] sm:$0xff] %v3979_v11  ;;  %v4084_v11 = vadd.s32 %v3990_v55, %v1554_v22  ;;  %v1567_v60 = vadd.s32 248, %v3459_v4  ;;  %v4104_v22 = vadd.s32 %v3990_v55, %v1556_v39  ;;  %vm1695_vm9 = vcmp.lt.s32.totalorder %v4132_v36, %v4007_v30 }
 0x212   : > { %5782 = vst [vmem:[#allocation109_spill] sm:$0xff] %v4084_v11 }
 0x213   : > { %v3981_v51 = vpop.xlane.xlu1 %1443  ;;  %v3983_v52 = vpop.xlane.xlu0 %1434 }
 0x214   : > { %5772 = vst [vmem:[#allocation99_spill] sm:$0xff] %v3981_v51  ;;  %5773 = vst [vmem:[#allocation100_spill] sm:$0xff] %v3983_v52  ;;  %v4081_v51 = vadd.s32 %v3990_v55, %v1549_v40  ;;  %v4101_v40 = vadd.s32 %v3990_v55, %v1559_v8 }
 0x216   : > { %5785 = vst [vmem:[#allocation112_spill] sm:$0xff] %v4101_v40  ;;  %vm5835_vm12 = vcmp.lt.s32.totalorder %v4081_v51, %v4007_v30 }
 0x217   : > { %v3986_v48 = vpop.xlane.xlu1 %1437  ;;  %v3988_v27 = vpop.xlane.xlu0 %1452 }
 0x218   : > { %5774 = vst [vmem:[#allocation101_spill] sm:$0xff] %v3986_v48  ;;  %5775 = vst [vmem:[#allocation102_spill] sm:$0xff] %v3988_v27  ;;  %v1566_v27 = vadd.s32 240, %v3459_v4 }
 0x21a   : > { %v4122_v8 = vadd.s32 %v3990_v55, %v1566_v27  ;;  %v1569_v27 = vadd.s32 264, %v3459_v4 }
 0x21b   : > { %v3999_v43 = vpop.xlane.xlu1 %1455  ;;  %v4001_v34 = vpop.xlane.xlu0 %1446 }
 0x21c   : > { %5776 = vst [vmem:[#allocation103_spill] sm:$0xff] %v3999_v43  ;;  %5777 = vst [vmem:[#allocation104_spill] sm:$0xff] %v4001_v34  ;;  %v1560_v34 = vadd.s32 192, %v3459_v4  ;;  %v1561_v43 = vadd.s32 200, %v3459_v4 }
 0x21f   : > { %v4052_v16 = vpop.xlane.xlu1 %1449  ;;  %v4054_v32 = vpop.xlane.xlu0 %1464 }
 0x220   : > { %5778 = vst [vmem:[#allocation105_spill] sm:$0xff] %v4052_v16  ;;  %5779 = vst [vmem:[#allocation106_spill] sm:$0xff] %v4054_v32  ;;  %v1557_v32 = vadd.s32 168, %v3459_v4  ;;  %v1563_v16 = vadd.s32 216, %v3459_v4 }
 0x222   : > { %v4107_v29 = vadd.s32 %v3990_v55, %v1557_v32  ;;  %v4113_v46 = vadd.s32 %v3990_v55, %v1563_v16  ;;  %v4129_v32 = vadd.s32 %v3990_v55, %v1567_v60  ;;  %v1565_v16 = vadd.s32 232, %v3459_v4 }
 0x223   : > { %v4076_v48 = vpop.xlane.xlu1 %1467  ;;  %v4078_v52 = vpop.xlane.xlu0 %1458  ;;  %v1572_v60 = vadd.s32 288, %v3459_v4 }
 0x224   : > { %5780 = vst [vmem:[#allocation107_spill] sm:$0xff] %v4076_v48  ;;  %5781 = vst [vmem:[#allocation108_spill] sm:$0xff] %v4078_v52  ;;  %v4095_v48 = vadd.s32 %v3990_v55, %v1553_v18  ;;  %v4098_v52 = vadd.s32 %v3990_v55, %v1558_v26  ;;  %v4116_v18 = vadd.s32 %v3990_v55, %v1560_v34  ;;  %v1570_v34 = vadd.s32 272, %v3459_v4 }
 0x225   : > { %v4119_v26 = vadd.s32 %v3990_v55, %v1561_v43  ;;  %v1571_v43 = vadd.s32 280, %v3459_v4  ;;  %v4153_v33 = vadd.s32 %v3990_v55, %v1565_v16  ;;  %v4171_v16 = vadd.s32 %v3990_v55, %v1569_v27 }
 0x226   : > { %v4156_v53 = vadd.s32 %v3990_v55, %v1570_v34  ;;  %v4189_v27 = vadd.s32 %v3990_v55, %v1573_v20  ;;  %v4206_v20 = vadd.s32 %v3990_v55, %v1576_v63  ;;  %v4226_v63 = vadd.s32 %v3990_v55, %v1580_v49 }
 0x227   : > { %v4124_v39 = vpop.xlane.xlu1 %1461  ;;  %v4126_v58 = vpop.xlane.xlu0 %1476  ;;  %5790 = vst [vmem:[#allocation117_spill] sm:$0xff] %v4171_v16  ;;  %v1585_v49 = vadd.s32 392, %v3459_v4  ;;  %v1598_v16 = vadd.s32 496, %v3459_v4  ;;  %vm1688_vm2 = vcmp.lt.s32.totalorder %v4107_v29, %v4007_v30  ;;  %vm1691_vm4 = vcmp.lt.s32.totalorder %v4116_v18, %v4007_v30 }
 0x228   : > { %5786 = vst [vmem:[#allocation113_spill] sm:$0xff] %v4124_v39  ;;  %5787 = vst [vmem:[#allocation114_spill] sm:$0xff] %v4126_v58  ;;  %v1574_v39 = vadd.s32 304, %v3459_v4  ;;  %v1575_v58 = vadd.s32 312, %v3459_v4  ;;  %vm1701_vm11 = vcmp.lt.s32.totalorder %v4156_v53, %v4007_v30 }
 0x229   : > { %5794 = vst [vmem:[#allocation121_spill] sm:$0xff] %v4189_v27  ;;  %5797 = vst [vmem:[#allocation124_spill] sm:$0xff] %v4206_v20 }
 0x22a   : > { %v4174_v34 = vadd.s32 %v3990_v55, %v1574_v39  ;;  %v4192_v39 = vadd.s32 %v3990_v55, %v1578_v37  ;;  %5803 = vst [vmem:[#allocation130_spill] sm:$0xff] %v4226_v63  ;;  %v1591_v63 = vadd.s32 440, %v3459_v4 }
 0x22b   : > { %v4145_v42 = vpop.xlane.xlu1 %1479  ;;  %v4148_v2 = vpop.xlane.xlu0 %1470 }
 0x22c   : > { %5788 = vst [vmem:[#allocation115_spill] sm:$0xff] %v4145_v42  ;;  %5789 = vst [vmem:[#allocation116_spill] sm:$0xff] %v4148_v2  ;;  %v4165_v2 = vadd.s32 %v3990_v55, %v1571_v43  ;;  %v4168_v42 = vadd.s32 %v3990_v55, %v1568_v19  ;;  %v4183_v43 = vadd.s32 %v3990_v55, %v1575_v58 }
 0x22d   : > { %5791 = vst [vmem:[#allocation118_spill] sm:$0xff] %v4174_v34  ;;  %v4186_v19 = vadd.s32 %v3990_v55, %v1572_v60  ;;  %5795 = vst [vmem:[#allocation122_spill] sm:$0xff] %v4192_v39  ;;  %v4203_v58 = vadd.s32 %v3990_v55, %v1579_v7  ;;  %v4209_v60 = vadd.s32 %v3990_v55, %v1577_v41  ;;  %v1581_v41 = vadd.s32 360, %v3459_v4 }
 0x22e   : > { %5792 = vst [vmem:[#allocation119_spill] sm:$0xff] %v4183_v43  ;;  %v4214_v39 = vadd.s32 %v3990_v55, %v1582_v24  ;;  %v4223_v7 = vadd.s32 %v3990_v55, %v1583_v21  ;;  %v1587_v24 = vadd.s32 408, %v3459_v4  ;;  %v1584_v21 = vadd.s32 384, %v3459_v4  ;;  %v5831_v17 = vld [vmem:[#allocation117_spill] sm:$0xff] }
 0x22f   : > { %5793 = vst [vmem:[#allocation120_spill] sm:$0xff] %v4186_v19  ;;  %5796 = vst [vmem:[#allocation123_spill] sm:$0xff] %v4203_v58  ;;  %v4211_v37 = vpop.xlane.xlu1 %1473  ;;  %v4216_v27 = vpop.xlane.xlu0 %1488  ;;  %v1595_v19 = vadd.s32 472, %v3459_v4  ;;  %v1592_v43 = vadd.s32 448, %v3459_v4  ;;  %v1593_v34 = vadd.s32 456, %v3459_v4  ;;  %v4263_v11 = vadd.s32 %v3990_v55, %v1581_v41 }
 0x230   : > { %5798 = vst [vmem:[#allocation125_spill] sm:$0xff] %v4209_v60  ;;  %5799 = vst [vmem:[#allocation126_spill] sm:$0xff] %v4211_v37  ;;  %v1586_v37 = vadd.s32 400, %v3459_v4  ;;  %v1594_v60 = vadd.s32 464, %v3459_v4  ;;  %v4277_v62 = vadd.s32 %v3990_v55, %v1587_v24  ;;  %v4280_v41 = vadd.s32 %v3990_v55, %v1584_v21 }
 0x231   : > { %5800 = vst [vmem:[#allocation127_spill] sm:$0xff] %v4214_v39  ;;  %5801 = vst [vmem:[#allocation128_spill] sm:$0xff] %v4216_v27  ;;  %v1590_v27 = vadd.s32 432, %v3459_v4  ;;  %v1588_v39 = vadd.s32 416, %v3459_v4  ;;  %vm1700_vm14 = vcmp.lt.s32.totalorder %v5831_v17, %v4007_v30 }
 0x232   : > { %5802 = vst [vmem:[#allocation129_spill] sm:$0xff] %v4223_v7  ;;  %v1589_v7 = vadd.s32 424, %v3459_v4  ;;  %5806 = vst [vmem:[#allocation133_spill] sm:$0xff] %v4263_v11  ;;  %v4266_v14 = vadd.s32 %v3990_v55, %v1586_v37  ;;  %v4283_v37 = vadd.s32 %v3990_v55, %v1585_v49  ;;  %v4291_v11 = vadd.s32 %v3990_v55, %v1591_v63 }
 0x233   : > { %v4252_v20 = vpop.xlane.xlu1 %1491  ;;  %v4254_v58 = vpop.xlane.xlu0 %1482  ;;  %v4294_v40 = vadd.s32 %v3990_v55, %v1588_v39  ;;  %v4300_v21 = vadd.s32 %v3990_v55, %v1594_v60  ;;  %v4313_v39 = vadd.s32 %v3990_v55, %v1595_v19  ;;  %v4319_v60 = vadd.s32 %v3990_v55, %v1593_v34 }
 0x234   : > { %5804 = vst [vmem:[#allocation131_spill] sm:$0xff] %v4252_v20  ;;  %5805 = vst [vmem:[#allocation132_spill] sm:$0xff] %v4254_v58  ;;  %v1599_v20 = vadd.s32 504, %v3459_v4  ;;  %v1596_v58 = vadd.s32 480, %v3459_v4  ;;  %v4297_v24 = vadd.s32 %v3990_v55, %v1589_v7  ;;  %v4316_v7 = vadd.s32 %v3990_v55, %v1592_v43 }
 0x235   : > { %5807 = vst [vmem:[#allocation134_spill] sm:$0xff] %v4266_v14  ;;  %v4286_v14 = vadd.s32 %v3990_v55, %v1590_v27  ;;  %5808 = vst [vmem:[#allocation135_spill] sm:$0xff] %v4300_v21  ;;  %v4322_v49 = vadd.s32 %v3990_v55, %v1598_v16  ;;  %v4328_v21 = vsel %vm1673_vm5, %v3931_v0, -inf  ;;  %v4334_v19 = vsel %vm1674_vm6, %v3933_v15, -inf  ;;  %v5833_v12 = vld [vmem:[#allocation119_spill] sm:$0xff] }
 0x236   : > { %5809 = vst [vmem:[#allocation136_spill] sm:$0xff] %v4328_v21  ;;  %5810 = vst [vmem:[#allocation137_spill] sm:$0xff] %v4334_v19  ;;  %v4339_v34 = vadd.s32 %v3990_v55, %v1599_v20  ;;  %v4342_v16 = vadd.s32 %v3990_v55, %v1596_v58  ;;  %v4348_v0 = vsel %vm1669_vm7, %v3923_v45, -inf  ;;  %v4360_v15 = vsel %vm1671_vm10, %v3935_v59, -inf  ;;  %v5817_v59 = vld [vmem:[#allocation80_spill] sm:$0xff] }
 0x237   : > { %v4308_v27 = vpop.xlane.xlu1 %1485  ;;  %v4310_v63 = vpop.xlane.xlu0 %1500  ;;  %5811 = vst [vmem:[#allocation138_spill] sm:$0xff] %v4348_v0  ;;  %5813 = vst [vmem:[#allocation140_spill] sm:$0xff] %v4360_v15  ;;  %vm1692_vm5 = vcmp.lt.s32.totalorder %v4119_v26, %v4007_v30  ;;  %vm1697_vm6 = vcmp.lt.s32.totalorder %v4122_v8, %v4007_v30  ;;  %vm1698_vm7 = vcmp.lt.s32.totalorder %v4129_v32, %v4007_v30  ;;  %v4387_v45 = vsel %vm1677_vm13, %v3939_v5, -inf }
 0x238   : > { %5815 = vst [vmem:[#allocation142_spill] sm:$0xff] %v4387_v45  ;;  %v1798_v44 = vmax.f32 %v4348_v0, %v4328_v21  ;;  %v1799_v56 = vmax.f32 %v4354_v3, %v4334_v19  ;;  %v4411_v28 = vsel %vm1675_vm1, %v5817_v59, -inf  ;;  %vm1696_vm10 = vcmp.lt.s32.totalorder %v4153_v33, %v4007_v30  ;;  %v5828_v59 = vld [vmem:[#allocation84_spill] sm:$0xff]  ;;  %v5874_v31 = vld [vmem:[#allocation127_spill] sm:$0xff] }
 0x239   : > { %5818 = vst [vmem:[#allocation80_spill] sm:$0xff] %v4411_v28  ;;  %v1796_v5 = vmax.f32 %v4375_v50, %v4360_v15  ;;  %vm5820_vm13 = vcmp.lt.s32.totalorder %v4047_v25, %v4007_v30  ;;  %v4441_v43 = vsel %vm5826_vm0, %v5825_v6, -inf  ;;  %v1797_v25 = vmax.f32 %v4401_v23, %v4381_v13  ;;  %v5862_v3 = vld [vmem:[#allocation92_spill] sm:$0xff] }
 0x23a   : > { %v4429_v10 = vsel %vm5820_vm13, %v5819_v47, -inf  ;;  %5827 = vst [vmem:[#allocation83_spill] sm:$0xff] %v4441_v43  ;;  %v1802_v58 = vmax.f32 %v1798_v44, %v4387_v45  ;;  %v1803_v20 = vmax.f32 %v1799_v56, %v4393_v57  ;;  %vm5829_vm13 = vcmp.lt.s32.totalorder %v4060_v38, %v4007_v30  ;;  %v5832_v47 = vld [vmem:[#allocation118_spill] sm:$0xff]  ;;  %v5834_v44 = vld [vmem:[#allocation85_spill] sm:$0xff]  ;;  %v5841_v57 = vld [vmem:[#allocation87_spill] sm:$0xff] }
 0x23b   : > { %v4419_v54 = vpop.xlane.xlu1 %1503  ;;  %v4421_v35 = vpop.xlane.xlu0 %1494  ;;  %5821 = vst [vmem:[#allocation81_spill] sm:$0xff] %v4429_v10  ;;  %v4453_v61 = vsel %vm5829_vm13, %v5828_v59, -inf  ;;  %vm1706_vm1 = vcmp.lt.s32.totalorder %v5833_v12, %v4007_v30  ;;  %v1800_v6 = vmax.f32 %v1796_v5, %v4411_v28  ;;  %v4466_v56 = vsel %vm5835_vm12, %v5834_v44, -inf  ;;  %v5837_v38 = vld [vmem:[#allocation86_spill] sm:$0xff]  ;;  %v5838_v59 = vld [vmem:[#allocation109_spill] sm:$0xff]  ;;  %v5845_v44 = vld [vmem:[#allocation88_spill] sm:$0xff] }
 0x23c   : > { %5830 = vst [vmem:[#allocation84_spill] sm:$0xff] %v4453_v61  ;;  %5836 = vst [vmem:[#allocation117_spill] sm:$0xff] %v4466_v56  ;;  %vm5839_vm13 = vcmp.lt.s32.totalorder %v5838_v59, %v4007_v30  ;;  %v5842_v45 = vld [vmem:[#allocation110_spill] sm:$0xff]  ;;  %v1801_v5 = vmax.f32 %v1797_v25, %v4429_v10  ;;  %v1806_v28 = vmax.f32 %v1802_v58, %v4435_v9  ;;  %v4487_v13 = vsel %vm1683_vm15, %v5845_v44, -inf  ;;  %v5849_v59 = vld [vmem:[#allocation121_spill] sm:$0xff] }
 0x23d   : > { %v4472_v4 = vsel %vm5839_vm13, %v5837_v38, -inf  ;;  %vm5843_vm0 = vcmp.lt.s32.totalorder %v5842_v45, %v4007_v30  ;;  %v1807_v51 = vmax.f32 %v1803_v20, %v4441_v43  ;;  %5847 = vst [vmem:[#allocation85_spill] sm:$0xff] %v4487_v13  ;;  %v5848_v38 = vld [vmem:[#allocation120_spill] sm:$0xff]  ;;  %v5850_v45 = vld [vmem:[#allocation123_spill] sm:$0xff]  ;;  %v1804_v58 = vmax.f32 %v1800_v6, %v4453_v61  ;;  %v5851_v20 = vld [vmem:[#allocation89_spill] sm:$0xff] }
 0x23e   : > { %5840 = vst [vmem:[#allocation118_spill] sm:$0xff] %v4472_v4  ;;  %v4478_v19 = vsel %vm5843_vm0, %v5841_v57, -inf  ;;  %vm5852_vm15 = vcmp.lt.s32.totalorder %v4095_v48, %v4007_v30  ;;  %v5854_v44 = vld [vmem:[#allocation90_spill] sm:$0xff]  ;;  %vm5855_vm12 = vcmp.lt.s32.totalorder %v4098_v52, %v4007_v30  ;;  %v5857_v9 = vld [vmem:[#allocation91_spill] sm:$0xff]  ;;  %v5858_v10 = vld [vmem:[#allocation112_spill] sm:$0xff]  ;;  %v1805_v61 = vmax.f32 %v1801_v5, %v4466_v56 }
 0x23f   : > { %5844 = vst [vmem:[#allocation119_spill] sm:$0xff] %v4478_v19  ;;  %v4495_v57 = vpop.xlane.xlu1 %1497  ;;  %v4497_v25 = vpop.xlane.xlu0 %1512  ;;  %v4504_v21 = vsel %vm5852_vm15, %v5851_v20, -inf  ;;  %v4510_v43 = vsel %vm5855_vm12, %v5854_v44, -inf  ;;  %vm5859_vm0 = vcmp.lt.s32.totalorder %v5858_v10, %v4007_v30  ;;  %v5861_v6 = vld [vmem:[#allocation122_spill] sm:$0xff]  ;;  %v1810_v48 = vmax.f32 %v1806_v28, %v4472_v4  ;;  %v5865_v44 = vld [vmem:[#allocation124_spill] sm:$0xff]  ;;  %v5866_v10 = vld [vmem:[#allocation125_spill] sm:$0xff] }
 0x240   : > { %5853 = vst [vmem:[#allocation86_spill] sm:$0xff] %v4504_v21  ;;  %5856 = vst [vmem:[#allocation109_spill] sm:$0xff] %v4510_v43  ;;  %v4516_v15 = vsel %vm5859_vm0, %v5857_v9, -inf  ;;  %v1811_v20 = vmax.f32 %v1807_v51, %v4478_v19  ;;  %vm5863_vm12 = vcmp.lt.s32.totalorder %v4104_v22, %v4007_v30  ;;  %vm1707_vm15 = vcmp.lt.s32.totalorder %v5865_v44, %v4007_v30  ;;  %v5867_v9 = vld [vmem:[#allocation129_spill] sm:$0xff]  ;;  %v5869_v22 = vld [vmem:[#allocation94_spill] sm:$0xff] }
 0x241   : > { %5860 = vst [vmem:[#allocation87_spill] sm:$0xff] %v4516_v15  ;;  %v4527_v52 = vsel %vm5863_vm12, %v5862_v3, -inf  ;;  %vm1708_vm0 = vcmp.lt.s32.totalorder %v5866_v10, %v4007_v30  ;;  %v1808_v5 = vmax.f32 %v1804_v58, %v4487_v13  ;;  %v5868_v28 = vld [vmem:[#allocation93_spill] sm:$0xff]  ;;  %v4546_v3 = vsel %vm1693_vm8, %v5869_v22, -inf  ;;  %v5870_v19 = vld [vmem:[#allocation95_spill] sm:$0xff]  ;;  %v5875_v22 = vld [vmem:[#allocation130_spill] sm:$0xff] }
 0x242   : > { %5864 = vst [vmem:[#allocation110_spill] sm:$0xff] %v4527_v52  ;;  %v4540_v51 = vsel %vm1688_vm2, %v5868_v28, -inf  ;;  %vm5871_vm12 = vcmp.lt.s32.totalorder %v4113_v46, %v4007_v30  ;;  %v1809_v58 = vmax.f32 %v1805_v61, %v4504_v21  ;;  %v1814_v13 = vmax.f32 %v1810_v48, %v4510_v43  ;;  %v5873_v28 = vld [vmem:[#allocation96_spill] sm:$0xff]  ;;  %v5876_v46 = vld [vmem:[#allocation133_spill] sm:$0xff]  ;;  %v5880_v43 = vld [vmem:[#allocation99_spill] sm:$0xff] }
 0x243   : > { %v4552_v4 = vsel %vm5871_vm12, %v5870_v19, -inf  ;;  %v1815_v29 = vmax.f32 %v1811_v20, %v4516_v15  ;;  %v4561_v56 = vsel %vm1691_vm4, %v5873_v28, -inf  ;;  %vm1713_vm2 = vcmp.lt.s32.totalorder %v5874_v31, %v4007_v30  ;;  %v4571_v19 = vpop.xlane.xlu1 %1515  ;;  %v4573_v61 = vpop.xlane.xlu0 %1506  ;;  %v5877_v48 = vld [vmem:[#allocation97_spill] sm:$0xff]  ;;  %v5878_v28 = vld [vmem:[#allocation98_spill] sm:$0xff]  ;;  %v5908_v10 = vld [vmem:[#allocation128_spill] sm:$0xff] }
 0x244   : > { %5872 = vst [vmem:[#allocation88_spill] sm:$0xff] %v4552_v4  ;;  %vm1711_vm8 = vcmp.lt.s32.totalorder %v5875_v22, %v4007_v30  ;;  %vm1712_vm12 = vcmp.lt.s32.totalorder %v5876_v46, %v4007_v30  ;;  %vm1718_vm13 = vcmp.lt.s32.totalorder %v4277_v62, %v4007_v30  ;;  %v1812_v18 = vmax.f32 %v1808_v5, %v4527_v52  ;;  %v5882_v8 = vld [vmem:[#allocation134_spill] sm:$0xff] }
 0x245   : > { %v4580_v20 = vsel %vm1692_vm5, %v5877_v48, -inf  ;;  %v4586_v15 = vsel %vm1697_vm6, %v5878_v28, -inf  ;;  %v4592_v21 = vsel %vm1698_vm7, %v5880_v43, -inf  ;;  %v1813_v5 = vmax.f32 %v1809_v58, %v4540_v51  ;;  %v5881_v48 = vld [vmem:[#allocation100_spill] sm:$0xff]  ;;  %v5884_v43 = vld [vmem:[#allocation102_spill] sm:$0xff] }
 0x246   : > { %5879 = vst [vmem:[#allocation111_spill] sm:$0xff] %v4586_v15  ;;  %v1818_v52 = vmax.f32 %v1814_v13, %v4546_v3  ;;  %v1819_v26 = vmax.f32 %v1815_v29, %v4552_v4  ;;  %v4601_v0 = vsel %vm1695_vm9, %v5881_v48, -inf  ;;  %vm1717_vm4 = vcmp.lt.s32.totalorder %v5882_v8, %v4007_v30  ;;  %v5883_v13 = vld [vmem:[#allocation101_spill] sm:$0xff]  ;;  %v5886_v29 = vld [vmem:[#allocation103_spill] sm:$0xff] }
 0x247   : > { %vm1715_vm5 = vcmp.lt.s32.totalorder %v4280_v41, %v4007_v30  ;;  %v1816_v32 = vmax.f32 %v1812_v18, %v4561_v56  ;;  %v4616_v36 = vsel %vm1696_vm10, %v5883_v13, -inf  ;;  %v4622_v58 = vsel %vm1701_vm11, %v5884_v43, -inf  ;;  %v5889_v13 = vld [vmem:[#allocation104_spill] sm:$0xff]  ;;  %v1510_v53 = vpop.xlane.xlu1 %1509 }
 0x248   : > { %5885 = vst [vmem:[#allocation120_spill] sm:$0xff] %v4622_v58  ;;  %vm5887_vm9 = vcmp.lt.s32.totalorder %v4165_v2, %v4007_v30  ;;  %v1817_v18 = vmax.f32 %v1813_v5, %v4580_v20  ;;  %v1822_v48 = vmax.f32 %v1818_v52, %v4586_v15  ;;  %v1823_v33 = vmax.f32 %v1819_v26, %v4592_v21  ;;  %v4645_v2 = vpop.xlane.xlu0 %1524  ;;  %v5892_v26 = vld [vmem:[#allocation106_spill] sm:$0xff] }
 0x249   : > { %v4628_v28 = vsel %vm5887_vm9, %v5886_v29, -inf  ;;  %vm5890_vm10 = vcmp.lt.s32.totalorder %v4168_v42, %v4007_v30  ;;  %vm1721_vm11 = vcmp.lt.s32.totalorder %v4286_v14, %v4007_v30  ;;  %vm1719_vm7 = vcmp.lt.s32.totalorder %v4294_v40, %v4007_v30  ;;  %v5891_v42 = vld [vmem:[#allocation105_spill] sm:$0xff]  ;;  %v5894_v29 = vld [vmem:[#allocation107_spill] sm:$0xff] }
 0x24a   : > { %5888 = vst [vmem:[#allocation121_spill] sm:$0xff] %v4628_v28  ;;  %v4637_v4 = vsel %vm5890_vm10, %v5889_v13, -inf  ;;  %v1820_v52 = vmax.f32 %v1816_v32, %v4601_v0  ;;  %v4654_v5 = vsel %vm1700_vm14, %v5891_v42, -inf  ;;  %vm5893_vm10 = vcmp.lt.s32.totalorder %v5832_v47, %v4007_v30  ;;  %v5895_v42 = vld [vmem:[#allocation135_spill] sm:$0xff] }
 0x24b   : > { %v4660_v43 = vsel %vm5893_vm10, %v5892_v26, -inf  ;;  %v4666_v13 = vsel %vm1706_vm1, %v5894_v29, -inf  ;;  %v1821_v32 = vmax.f32 %v1817_v18, %v4616_v36  ;;  %v1826_v15 = vmax.f32 %v1822_v48, %v4622_v58  ;;  %v5896_v18 = vld [vmem:[#allocation108_spill] sm:$0xff]  ;;  %v5900_v29 = vld [vmem:[#allocation115_spill] sm:$0xff] }
 0x24c   : > { %v1827_v17 = vmax.f32 %v1823_v33, %v4628_v28  ;;  %vm1725_vm14 = vcmp.lt.s32.totalorder %v5895_v42, %v4007_v30  ;;  %vm1724_vm10 = vcmp.lt.s32.totalorder %v4319_v60, %v4007_v30  ;;  %v4681_v47 = vadd.s32 %v3990_v55, %v4369_v1  ;;  %v5898_v33 = vld [vmem:[#allocation113_spill] sm:$0xff] }
 0x24d   : > { %v1824_v12 = vmax.f32 %v1820_v52, %v4637_v4  ;;  %vm5897_vm1 = vcmp.lt.s32.totalorder %v5848_v38, %v4007_v30  ;;  %vm5899_vm6 = vcmp.lt.s32.totalorder %v5849_v59, %v4007_v30  ;;  %vm5901_vm9 = vcmp.lt.s32.totalorder %v5850_v45, %v4007_v30  ;;  %v1528_v59 = vpop.xlane.xlu1 %1527  ;;  %v5904_v45 = vld [vmem:[#allocation116_spill] sm:$0xff] }
 0x24e   : > { %v4688_v48 = vsel %vm5897_vm1, %v5896_v18, -inf  ;;  %v4694_v26 = vsel %vm5899_vm6, %v5898_v33, -inf  ;;  %v4700_v55 = vsel %vm5901_vm9, %v5900_v29, -inf  ;;  %v1825_v1 = vmax.f32 %v1821_v32, %v4654_v5  ;;  %v5902_v18 = vld [vmem:[#allocation114_spill] sm:$0xff]  ;;  %v1519_v33 = vpop.xlane.xlu0 %1518 }
 0x24f   : > { %v1830_v52 = vmax.f32 %v1826_v15, %v4660_v43  ;;  %v1831_v38 = vmax.f32 %v1827_v17, %v4666_v13  ;;  %vm5903_vm1 = vcmp.lt.s32.totalorder %v5861_v6, %v4007_v30  ;;  %vm1729_vm6 = vcmp.lt.s32.totalorder %v4322_v49, %v4007_v30  ;;  %v5905_v32 = vld [vmem:[#allocation126_spill] sm:$0xff]  ;;  %v5906_v17 = vld [vmem:[#allocation131_spill] sm:$0xff] }
 0x250   : > { %v4709_v28 = vsel %vm5903_vm1, %v5902_v18, -inf  ;;  %vm1727_vm9 = vcmp.lt.s32.totalorder %v4342_v16, %v4007_v30  ;;  %v4719_v15 = vsel %vm1707_vm15, %v5904_v45, -inf  ;;  %v4725_v6 = vsel %vm1708_vm0, %v5905_v32, -inf }
 0x251   : > { %vm5907_vm1 = vcmp.lt.s32.totalorder %v5867_v9, %v4007_v30  ;;  %v1828_v18 = vmax.f32 %v1824_v12, %v4688_v48  ;;  %v1829_v58 = vmax.f32 %v1825_v1, %v4694_v26  ;;  %v1835_v44 = vmax.f32 %v1831_v38, %v4700_v55  ;;  %v5909_v9 = vld [vmem:[#allocation132_spill] sm:$0xff] }
 0x252   : > { %v4731_v29 = vsel %vm5907_vm1, %v5906_v17, -inf  ;;  %vm1728_vm15 = vcmp.lt.s32.totalorder %v4681_v47, %v4007_v30  ;;  %v3401_v45 = vmov 0   ;;  %v4742_v32 = vsel %vm1713_vm2, %v5908_v10, -inf  ;;  %v1522_v10 = vpop.xlane.xlu1 %1521 }
 0x253   : > { %3225 = vset.pattern.permute.xlu1 %v3401_v45  ;;  %3224 = vset.pattern.permute.xlu0 %v3401_v45  ;;  %v4748_v12 = vsel %vm1711_vm8, %v5909_v9, -inf  ;;  %v4754_v1 = vsel %vm1712_vm12, %v4308_v27, -inf  ;;  %v4760_v38 = vsel %vm1718_vm13, %v4419_v54, -inf  ;;  %v1834_v31 = vmax.f32 %v1830_v52, %v4709_v28  ;;  %v1537_v9 = vpop.xlane.xlu0 %1536 }
 0x254   : > { %v1832_v17 = vmax.f32 %v1828_v18, %v4719_v15  ;;  %v1833_v22 = vmax.f32 %v1829_v58, %v4725_v6  ;;  %v1839_v45 = vmax.f32 %v1835_v44, %v4731_v29  ;;  %v4770_v27 = vsel %vm1717_vm4, %v4310_v63, -inf }
 0x255   : > { %v4776_v62 = vsel %vm1715_vm5, %v4421_v35, -inf  ;;  %vm5910_vm13 = vcmp.lt.s32.totalorder %v4283_v37, %v4007_v30  ;;  %vm5911_vm0 = vcmp.lt.s32.totalorder %v4291_v11, %v4007_v30  ;;  %v1838_v63 = vmax.f32 %v1834_v31, %v4742_v32 }
 0x256   : > { %v4782_v54 = vsel %vm5910_vm13, %v4495_v57, -inf  ;;  %v4788_v46 = vsel %vm5911_vm0, %v4571_v19, -inf  ;;  %v1836_v8 = vmax.f32 %v1832_v17, %v4748_v12  ;;  %v1837_v41 = vmax.f32 %v1833_v22, %v4754_v1 }
 0x257   : > { %v1843_v35 = vmax.f32 %v1839_v45, %v4760_v38  ;;  %v4798_v37 = vsel %vm1721_vm11, %v4497_v25, -inf  ;;  %v4804_v11 = vsel %vm1719_vm7, %v4573_v61, -inf  ;;  %vm5912_vm2 = vcmp.lt.s32.totalorder %v4297_v24, %v4007_v30  ;;  %v1540_v61 = vpop.xlane.xlu1 %1539  ;;  %v1531_v52 = vpop.xlane.xlu0 %1530 }
 0x258   : > { %v4809_v57 = vsel %vm5912_vm2, %v1510_v53, -inf  ;;  %vm5913_vm8 = vcmp.lt.s32.totalorder %v4313_v39, %v4007_v30  ;;  %v1842_v14 = vmax.f32 %v1838_v63, %v4770_v27  ;;  %v1840_v25 = vmax.f32 %v1836_v8, %v4776_v62 }
 0x259   : > { %v4814_v19 = vsel %vm5913_vm8, %v1528_v59, -inf  ;;  %v1841_v58 = vmax.f32 %v1837_v41, %v4782_v54  ;;  %v1847_v40 = vmax.f32 %v1843_v35, %v4788_v46  ;;  %v4824_v24 = vsel %vm1725_vm14, %v4645_v2, -inf }
 0x25a   : > { %vm5914_vm12 = vcmp.lt.s32.totalorder %v4316_v7, %v4007_v30  ;;  %v4834_v53 = vsel %vm1724_vm10, %v1522_v10, -inf  ;;  %vm5915_vm4 = vcmp.lt.s32.totalorder %v4339_v34, %v4007_v30  ;;  %v1846_v18 = vmax.f32 %v1842_v14, %v4798_v37 }
 0x25b   : > { %v4829_v39 = vsel %vm5914_vm12, %v1519_v33, -inf  ;;  %v4839_v59 = vsel %vm5915_vm4, %v1540_v61, -inf  ;;  %v1844_v2 = vmax.f32 %v1840_v25, %v4804_v11  ;;  %v1845_v42 = vmax.f32 %v1841_v58, %v4809_v57  ;;  %v1534_v22 = vpop.xlane.xlu1 %1533 }
 0x25c   : > { %v1851_v7 = vmax.f32 %v1847_v40, %v4814_v19  ;;  %v4848_v33 = vsel %vm1729_vm6, %v1537_v9, -inf  ;;  %v4853_v60 = vsel %vm1727_vm9, %v1531_v52, -inf  ;;  %v1850_v34 = vmax.f32 %v1846_v18, %v4824_v24  ;;  %v4867_v40 = vld [vmem:[#allocation2] sm:$0x1] }
 0x25d   : > { %v1848_v44 = vmax.f32 %v1844_v2, %v4829_v39  ;;  %v1849_v31 = vmax.f32 %v1845_v42, %v4834_v53  ;;  %v4862_v49 = vsel %vm1728_vm15, %v1534_v22, -inf  ;;  %5916 = vst [vmem:[#allocation123_spill] sm:$0xff] %v4867_v40  ;;  %vm2204_vm5 = vcmask 0   ;;  %v5918_v52 = vld [vmem:[#allocation11_spill] sm:$0xff] }
 0x25e   : > { %v1855_v17 = vmax.f32 %v1851_v7, %v4839_v59  ;;  %v1854_v45 = vmax.f32 %v1850_v34, %v4848_v33  ;;  %vm2069_vm7 = vcmask 7168   ;;  %vm6099_vm6 = vcmask 130048  }
 0x25f   : > { %v1852_v16 = vmax.f32 %v1848_v44, %v4853_v60  ;;  %v1853_v10 = vmax.f32 %v1849_v31, %v4862_v49 }
 0x260   : > { %v1857_v9 = vmax.f32 %v1854_v45, %v1855_v17  ;;  %v5925_v45 = vld [vmem:[#allocation80_spill] sm:$0xff] }
 0x261   : > { %v1856_v63 = vmax.f32 %v1852_v16, %v1853_v10  ;;  %v5922_v10 = vld [vmem:[#allocation141_spill] sm:$0xff] }
 0x263   : > { %v1858_v8 = vmax.f32 %v1856_v63, %v1857_v9  ;;  %v5919_v63 = vld [vmem:[#allocation138_spill] sm:$0xff]  ;;  %v5923_v9 = vld [vmem:[#allocation136_spill] sm:$0xff] }
 0x265   : > { %v1859_v41 = vrot.slane %v1858_v8, 4 }
 0x267   : > { %v1860_v35 = vmax.f32 %v1858_v8, %v1859_v41  ;;  %v5924_v41 = vld [vmem:[#allocation137_spill] sm:$0xff] }
 0x269   : > { %v1861_v14 = vrot.slane %v1860_v35, 2 }
 0x26b   : > { %v1862_v25 = vmax.f32 %v1860_v35, %v1861_v14  ;;  %v5920_v14 = vld [vmem:[#allocation139_spill] sm:$0xff] }
 0x26d   : > { %v1863_v58 = vrot.slane %v1862_v25, 1 }
 0x26f   : > { %v1864_v61 = vmax.f32 %v1862_v25, %v1863_v58 }
 0x271   : > { %v4870_v30 = vmax.f32 %v4867_v40, %v1864_v61  ;;  %v5921_v61 = vld [vmem:[#allocation140_spill] sm:$0xff] }
 0x273   : > { %5917 = vst [vmem:[#allocation89_spill] sm:$0xff] %v4870_v30  ;;  %2743 = vst.msk [vmem:[#allocation2] sm:$0x1] %vm2204_vm5, %v4870_v30  ;;  %v4878_v18 = vrot.slane %v4870_v30, %v5918_v52 }
 0x275   : > { %v1875_v2 = vsub.f32 %v4375_v50, %v4878_v18  ;;  %v1876_v34 = vsub.f32 %v4401_v23, %v4878_v18  ;;  %v1877_v8 = vsub.f32 %v5919_v63, %v4878_v18  ;;  %v1878_v25 = vsub.f32 %v5920_v14, %v4878_v18 }
 0x276   : > { %v1879_v47 = vsub.f32 %v5921_v61, %v4878_v18  ;;  %v1880_v16 = vsub.f32 %v5922_v10, %v4878_v18  ;;  %v1881_v23 = vsub.f32 %v5923_v9, %v4878_v18  ;;  %v1883_v14 = vsub.f32 %v5925_v45, %v4878_v18  ;;  %v5926_v61 = vld [vmem:[#allocation81_spill] sm:$0xff]  ;;  %v5927_v10 = vld [vmem:[#allocation142_spill] sm:$0xff]  ;;  %v5928_v9 = vld [vmem:[#allocation143_spill] sm:$0xff] }
 0x277   : > { %v1939_v35 = vmul.f32 1.442695, %v1875_v2  ;;  %v1941_v58 = vmul.f32 1.442695, %v1876_v34  ;;  %v1943_v42 = vmul.f32 1.442695, %v1877_v8  ;;  %v1882_v2 = vsub.f32 %v5924_v41, %v4878_v18 }
 0x278   : > { %v1945_v63 = vmul.f32 1.442695, %v1878_v25  ;;  %v1947_v34 = vmul.f32 1.442695, %v1879_v47  ;;  %v1884_v8 = vsub.f32 %v5926_v61, %v4878_v18  ;;  %v1949_v22 = vmul.f32 1.442695, %v1880_v16 }
 0x279   : > { %3229 = vpow2.f32 %v1939_v35  ;;  %v1885_v35 = vsub.f32 %v5927_v10, %v4878_v18  ;;  %v1951_v50 = vmul.f32 1.442695, %v1881_v23  ;;  %v1886_v25 = vsub.f32 %v5928_v9, %v4878_v18  ;;  %v5929_v41 = vld [vmem:[#allocation84_spill] sm:$0xff]  ;;  %v5930_v47 = vld [vmem:[#allocation117_spill] sm:$0xff]  ;;  %v5931_v16 = vld [vmem:[#allocation82_spill] sm:$0xff] }
 0x27a   : > { %3231 = vpow2.f32 %v1941_v58  ;;  %v1953_v58 = vmul.f32 1.442695, %v1882_v2  ;;  %v1887_v17 = vsub.f32 %v5929_v41, %v4878_v18  ;;  %v1955_v45 = vmul.f32 1.442695, %v1883_v14  ;;  %v5932_v23 = vld [vmem:[#allocation83_spill] sm:$0xff]  ;;  %v5933_v9 = vld [vmem:[#allocation85_spill] sm:$0xff] }
 0x27b   : > { %3233 = vpow2.f32 %v1943_v42  ;;  %v1888_v42 = vsub.f32 %v5930_v47, %v4878_v18  ;;  %v1957_v61 = vmul.f32 1.442695, %v1884_v8  ;;  %v1889_v31 = vsub.f32 %v5931_v16, %v4878_v18 }
 0x27c   : > { %3235 = vpow2.f32 %v1945_v63  ;;  %v1959_v63 = vmul.f32 1.442695, %v1885_v35  ;;  %v1890_v10 = vsub.f32 %v5932_v23, %v4878_v18  ;;  %v1961_v2 = vmul.f32 1.442695, %v1886_v25  ;;  %v5938_v25 = vld [vmem:[#allocation119_spill] sm:$0xff] }
 0x27d   : > { %3237 = vpow2.f32 %v1947_v34  ;;  %v1891_v41 = vsub.f32 %v5933_v9, %v4878_v18  ;;  %v1963_v14 = vmul.f32 1.442695, %v1887_v17  ;;  %v5934_v34 = vld [vmem:[#allocation86_spill] sm:$0xff]  ;;  %v1967_v16 = vmul.f32 1.442695, %v1889_v31 }
 0x27e   : > { %3239 = vpow2.f32 %v1949_v22  ;;  %v1892_v47 = vsub.f32 %v5934_v34, %v4878_v18  ;;  %v1965_v22 = vmul.f32 1.442695, %v1888_v42  ;;  %v1894_v23 = vsub.f32 %v5938_v25, %v4878_v18 }
 0x27f   : > { %3241 = vpow2.f32 %v1951_v50  ;;  %v5936_v50 = vld [vmem:[#allocation118_spill] sm:$0xff]  ;;  %v1969_v17 = vmul.f32 1.442695, %v1890_v10  ;;  %v1971_v42 = vmul.f32 1.442695, %v1891_v41  ;;  %v1896_v34 = vsub.f32 %v4540_v51, %v4878_v18  ;;  %v5943_v41 = vld [vmem:[#allocation87_spill] sm:$0xff] }
 0x280   : > { %3243 = vpow2.f32 %v1953_v58  ;;  %v1893_v35 = vsub.f32 %v5936_v50, %v4878_v18  ;;  %v5941_v50 = vld [vmem:[#allocation109_spill] sm:$0xff]  ;;  %v1977_v51 = vmul.f32 1.442695, %v1894_v23  ;;  %v1900_v23 = vsub.f32 %v4580_v20, %v4878_v18 }
 0x281   : > { %3245 = vpow2.f32 %v1955_v45  ;;  %v5939_v45 = vld [vmem:[#allocation110_spill] sm:$0xff]  ;;  %v1897_v25 = vsub.f32 %v5941_v50, %v4878_v18  ;;  %v1906_v50 = vsub.f32 %v4592_v21, %v4878_v18  ;;  %v1981_v7 = vmul.f32 1.442695, %v1896_v34 }
 0x282   : > { %3247 = vpow2.f32 %v1957_v61  ;;  %v1895_v9 = vsub.f32 %v5939_v45, %v4878_v18  ;;  %v1975_v10 = vmul.f32 1.442695, %v1893_v35  ;;  %v1898_v45 = vsub.f32 %v5943_v41, %v4878_v18 }
 0x283   : > { %3249 = vpow2.f32 %v1959_v63  ;;  %v1973_v63 = vmul.f32 1.442695, %v1892_v47  ;;  %v1899_v47 = vsub.f32 %v4561_v56, %v4878_v18  ;;  %v1983_v56 = vmul.f32 1.442695, %v1897_v25 }
 0x284   : > { %3251 = vpow2.f32 %v1961_v2  ;;  %v1979_v44 = vmul.f32 1.442695, %v1895_v9  ;;  %v1985_v21 = vmul.f32 1.442695, %v1898_v45 }
 0x285   : > { %3253 = vpow2.f32 %v1963_v14  ;;  %v1987_v20 = vmul.f32 1.442695, %v1899_v47 }
 0x286   : > { %v4942_v8 = vpop.eup %3229  ;;  %3255 = vpow2.f32 %v1965_v22 }
 0x287   : > { %5935 = vst [vmem:[#allocation90_spill] sm:$0xff] %v4942_v8  ;;  %v4946_v58 = vpop.eup %3231  ;;  %v2070_v31 = vsel %vm2069_vm7, %v4942_v8, 0.0  ;;  %3257 = vpow2.f32 %v1967_v16 }
 0x288   : > { %5937 = vst [vmem:[#allocation91_spill] sm:$0xff] %v4946_v58  ;;  %v4952_v61 = vpop.eup %3233  ;;  %v2071_v2 = vsel %vm2069_vm7, %v4946_v58, 0.0  ;;  %3259 = vpow2.f32 %v1969_v17 }
 0x289   : > { %5940 = vst [vmem:[#allocation112_spill] sm:$0xff] %v4952_v61  ;;  %v4962_v14 = vpop.eup %3235  ;;  %v2072_v22 = vadd.f32 %v2071_v2, %v2070_v31  ;;  %3261 = vpow2.f32 %v1971_v42  ;;  %v2073_v16 = vsel %vm2069_vm7, %v4952_v61, 0.0  ;;  %v1901_v42 = vsub.f32 %v4546_v3, %v4878_v18  ;;  %v5948_v31 = vld [vmem:[#allocation88_spill] sm:$0xff] }
 0x28a   : > { %5942 = vst [vmem:[#allocation122_spill] sm:$0xff] %v4962_v14  ;;  %v4970_v35 = vpop.eup %3237  ;;  %3263 = vpow2.f32 %v1973_v63  ;;  %v2075_v17 = vsel %vm2069_vm7, %v4962_v14, 0.0  ;;  %v1902_v2 = vsub.f32 %v5948_v31, %v4878_v18  ;;  %v2001_v3 = vmul.f32 1.442695, %v1906_v50 }
 0x28b   : > { %5944 = vst [vmem:[#allocation92_spill] sm:$0xff] %v4970_v35  ;;  %v2074_v52 = vadd.f32 %v2073_v16, %v2072_v22  ;;  %v4974_v41 = vpop.eup %3239  ;;  %3265 = vpow2.f32 %v1975_v10  ;;  %v2077_v25 = vsel %vm2069_vm7, %v4970_v35, 0.0  ;;  %v1903_v22 = vsub.f32 %v4601_v0, %v4878_v18 }
 0x28c   : > { %5945 = vst [vmem:[#allocation124_spill] sm:$0xff] %v4974_v41  ;;  %v4980_v9 = vpop.eup %3241  ;;  %3267 = vpow2.f32 %v1977_v51  ;;  %v1989_v16 = vmul.f32 1.442695, %v1900_v23  ;;  %v1991_v0 = vmul.f32 1.442695, %v1901_v42  ;;  %v1914_v31 = vsub.f32 %v4666_v13, %v4878_v18 }
 0x28d   : > { %5946 = vst [vmem:[#allocation125_spill] sm:$0xff] %v4980_v9  ;;  %v2076_v63 = vadd.f32 %v2075_v17, %v2074_v52  ;;  %v4984_v34 = vpop.eup %3243  ;;  %3269 = vpow2.f32 %v1979_v44  ;;  %v1911_v52 = vsub.f32 %v4688_v48, %v4878_v18  ;;  %v2079_v44 = vsel %vm2069_vm7, %v4974_v41, 0.0 }
 0x28e   : > { %5947 = vst [vmem:[#allocation129_spill] sm:$0xff] %v4984_v34  ;;  %v4990_v10 = vpop.eup %3245  ;;  %3271 = vpow2.f32 %v1981_v7  ;;  %v1912_v17 = vsub.f32 %v4694_v26, %v4878_v18  ;;  %v1993_v48 = vmul.f32 1.442695, %v1902_v2  ;;  %v2081_v23 = vsel %vm2069_vm7, %v4980_v9, 0.0 }
 0x28f   : > { %5949 = vst [vmem:[#allocation93_spill] sm:$0xff] %v4990_v10  ;;  %v2078_v51 = vadd.f32 %v2077_v25, %v2076_v63  ;;  %v4994_v45 = vpop.eup %3247  ;;  %3273 = vpow2.f32 %v1983_v56  ;;  %v1913_v63 = vsub.f32 %v4660_v43, %v4878_v18  ;;  %v1995_v25 = vmul.f32 1.442695, %v1903_v22 }
 0x290   : > { %5950 = vst [vmem:[#allocation94_spill] sm:$0xff] %v4994_v45  ;;  %v5000_v47 = vpop.eup %3249  ;;  %3275 = vpow2.f32 %v1985_v21  ;;  %v1915_v21 = vsub.f32 %v4719_v15, %v4878_v18  ;;  %v2011_v43 = vmul.f32 1.442695, %v1911_v52  ;;  %v2083_v2 = vsel %vm2069_vm7, %v4984_v34, 0.0 }
 0x291   : > { %v2080_v7 = vadd.f32 %v2079_v44, %v2078_v51  ;;  %v5004_v50 = vpop.eup %3251  ;;  %3277 = vpow2.f32 %v1987_v20  ;;  %v1916_v51 = vsub.f32 %v4725_v6, %v4878_v18  ;;  %v2013_v13 = vmul.f32 1.442695, %v1912_v17 }
 0x292   : > { %v5010_v56 = vpop.eup %3253  ;;  %3279 = vpow2.f32 %v2001_v3  ;;  %v1917_v44 = vsub.f32 %v4709_v28, %v4878_v18  ;;  %v2015_v15 = vmul.f32 1.442695, %v1913_v63  ;;  %v2085_v52 = vsel %vm2069_vm7, %v4990_v10, 0.0 }
 0x293   : > { %v2082_v26 = vadd.f32 %v2081_v23, %v2080_v7  ;;  %v5014_v42 = vpop.eup %3255  ;;  %3281 = vpow2.f32 %v1989_v16  ;;  %v1918_v7 = vsub.f32 %v4700_v55, %v4878_v18  ;;  %v2017_v6 = vmul.f32 1.442695, %v1914_v31 }
 0x294   : > { %v5020_v20 = vpop.eup %3257  ;;  %3283 = vpow2.f32 %v1991_v0  ;;  %v1919_v23 = vsub.f32 %v4748_v12, %v4878_v18  ;;  %v2019_v28 = vmul.f32 1.442695, %v1915_v21  ;;  %v2087_v63 = vsel %vm2069_vm7, %v4994_v45, 0.0 }
 0x295   : > { %v2084_v22 = vadd.f32 %v2083_v2, %v2082_v26  ;;  %v5024_v3 = vpop.eup %3259  ;;  %3285 = vpow2.f32 %v1993_v48  ;;  %v1904_v26 = vsub.f32 %v4616_v36, %v4878_v18  ;;  %v2021_v55 = vmul.f32 1.442695, %v1916_v51 }
 0x296   : > { %v5030_v16 = vpop.eup %3261  ;;  %3287 = vpow2.f32 %v1995_v25  ;;  %v1921_v2 = vsub.f32 %v4742_v32, %v4878_v18  ;;  %v2023_v12 = vmul.f32 1.442695, %v1917_v44  ;;  %v2089_v21 = vsel %vm2069_vm7, %v5000_v47, 0.0 }
 0x297   : > { %5951 = vst [vmem:[#allocation95_spill] sm:$0xff] %v5030_v16  ;;  %v2086_v0 = vadd.f32 %v2085_v52, %v2084_v22  ;;  %v5034_v17 = vpop.eup %3263  ;;  %3289 = vpow2.f32 %v2011_v43  ;;  %v1922_v22 = vsub.f32 %v4731_v29, %v4878_v18  ;;  %v2025_v36 = vmul.f32 1.442695, %v1918_v7  ;;  %v5957_v52 = vld [vmem:[#allocation111_spill] sm:$0xff] }
 0x298   : > { %5952 = vst [vmem:[#allocation96_spill] sm:$0xff] %v5034_v17  ;;  %v5040_v48 = vpop.eup %3265  ;;  %3291 = vpow2.f32 %v2013_v13  ;;  %v2027_v32 = vmul.f32 1.442695, %v1919_v23  ;;  %v2091_v44 = vsel %vm2069_vm7, %v5004_v50, 0.0  ;;  %v1925_v29 = vsub.f32 %v4770_v27, %v4878_v18 }
 0x299   : > { %5953 = vst [vmem:[#allocation127_spill] sm:$0xff] %v5040_v48  ;;  %v2088_v25 = vadd.f32 %v2087_v63, %v2086_v0  ;;  %v5044_v31 = vpop.eup %3267  ;;  %3293 = vpow2.f32 %v2015_v15  ;;  %v1905_v0 = vsub.f32 %v5957_v52, %v4878_v18  ;;  %v1997_v63 = vmul.f32 1.442695, %v1904_v26 }
 0x29a   : > { %5954 = vst [vmem:[#allocation130_spill] sm:$0xff] %v5044_v31  ;;  %v5050_v43 = vpop.eup %3269  ;;  %3295 = vpow2.f32 %v2017_v6  ;;  %v2031_v7 = vmul.f32 1.442695, %v1921_v2  ;;  %v2093_v6 = vsel %vm2069_vm7, %v5010_v56, 0.0  ;;  %v2033_v23 = vmul.f32 1.442695, %v1922_v22 }
 0x29b   : > { %5955 = vst [vmem:[#allocation133_spill] sm:$0xff] %v5050_v43  ;;  %v2090_v13 = vadd.f32 %v2089_v21, %v2088_v25  ;;  %v5054_v51 = vpop.eup %3271  ;;  %3297 = vpow2.f32 %v2019_v28  ;;  %v1999_v26 = vmul.f32 1.442695, %v1905_v0  ;;  %v5962_v27 = vsub.f32 %v4782_v54, %v4878_v18 }
 0x29c   : > { %5956 = vst [vmem:[#allocation97_spill] sm:$0xff] %v5054_v51  ;;  %v5060_v15 = vpop.eup %3273  ;;  %3299 = vpow2.f32 %v2021_v55  ;;  %v2095_v55 = vsel %vm2069_vm7, %v5014_v42, 0.0  ;;  %v2039_v22 = vmul.f32 1.442695, %v1925_v29  ;;  %v2097_v52 = vsel %vm2069_vm7, %v5020_v20, 0.0 }
 0x29d   : > { %5958 = vst [vmem:[#allocation98_spill] sm:$0xff] %v5060_v15  ;;  %v2092_v8 = vadd.f32 %v2091_v44, %v2090_v13  ;;  %v5062_v58 = vpop.eup %3275  ;;  %3301 = vpow2.f32 %v2023_v12  ;;  %v2037_v2 = vmul.f32 1.442695, %v5962_v27  ;;  %v5963_v54 = vsub.f32 %v4760_v38, %v4878_v18 }
 0x29e   : > { %5959 = vst [vmem:[#allocation99_spill] sm:$0xff] %v5062_v58  ;;  %v5068_v28 = vpop.eup %3277  ;;  %3303 = vpow2.f32 %v2025_v36  ;;  %v5964_v29 = vsub.f32 %v4804_v11, %v4878_v18  ;;  %v1938_v38 = vsub.f32 %v4839_v59, %v4878_v18  ;;  %v5968_v11 = vsub.f32 %v4798_v37, %v4878_v18 }
 0x29f   : > { %5960 = vst [vmem:[#allocation100_spill] sm:$0xff] %v5068_v28  ;;  %v2094_v25 = vadd.f32 %v2093_v6, %v2092_v8  ;;  %v5070_v21 = vpop.eup %3279  ;;  %3305 = vpow2.f32 %v2027_v32  ;;  %v2041_v44 = vmul.f32 1.442695, %v5963_v54  ;;  %v2101_v54 = vsel %vm2069_vm7, %v5030_v16, 0.0 }
 0x2a0   : > { %v5074_v13 = vpop.eup %3281  ;;  %3307 = vpow2.f32 %v1997_v63  ;;  %2374 = vperm.xlu0 %3224, %v5070_v21   ;;  %v2105_v32 = vsel %vm2069_vm7, %v5040_v48, 0.0  ;;  %v2109_v61 = vsel %vm2069_vm7, %v5050_v43, 0.0  ;;  %v5980_v35 = vsub.f32 %v4637_v4, %v4878_v18 }
 0x2a1   : > { %5961 = vst [vmem:[#allocation134_spill] sm:$0xff] %v5074_v13  ;;  %v2096_v12 = vadd.f32 %v2095_v55, %v2094_v25  ;;  %v5080_v36 = vpop.eup %3283  ;;  %3309 = vpow2.f32 %v2031_v7  ;;  %v1936_v7 = vsub.f32 %v4862_v49, %v4878_v18  ;;  %v2043_v25 = vmul.f32 1.442695, %v5964_v29 }
 0x2a2   : > { %v5086_v0 = vpop.eup %3285  ;;  %3311 = vpow2.f32 %v2033_v23  ;;  %v2099_v55 = vsel %vm2069_vm7, %v5024_v3, 0.0  ;;  %v5966_v23 = vsub.f32 %v4809_v57, %v4878_v18  ;;  %v5970_v57 = vsub.f32 %v4788_v46, %v4878_v18 }
 0x2a3   : > { %v2098_v63 = vadd.f32 %v2097_v52, %v2096_v12  ;;  %v5093_v6 = vpop.eup %3287  ;;  %3313 = vpow2.f32 %v1999_v26  ;;  %v2047_v26 = vmul.f32 1.442695, %v5968_v11  ;;  %v2103_v11 = vsel %vm2069_vm7, %v5034_v17, 0.0 }
 0x2a4   : > { %v5102_v27 = vpop.eup %3289  ;;  %3315 = vpow2.f32 %v2037_v2  ;;  %v2045_v12 = vmul.f32 1.442695, %v5966_v23  ;;  %v2049_v2 = vmul.f32 1.442695, %v5970_v57  ;;  %v2107_v17 = vsel %vm2069_vm7, %v5044_v31, 0.0 }
 0x2a5   : > { %5965 = vst [vmem:[#allocation101_spill] sm:$0xff] %v5102_v27  ;;  %v2100_v52 = vadd.f32 %v2099_v55, %v2098_v63  ;;  %v5109_v49 = vpop.eup %3291  ;;  %3317 = vpow2.f32 %v2039_v22  ;;  %v5118_v29 = vsel %vm2069_vm7, %v5102_v27, 0.0  ;;  %v5971_v55 = vsub.f32 %v4829_v39, %v4878_v18 }
 0x2a6   : > { %5967 = vst [vmem:[#allocation102_spill] sm:$0xff] %v5109_v49  ;;  %v5120_v59 = vpop.eup %3293  ;;  %3319 = vpow2.f32 %v2041_v44  ;;  %v5127_v22 = vsel %vm2069_vm7, %v5109_v49, 0.0  ;;  %v2003_v43 = vmul.f32 1.442695, %v5980_v35  ;;  %v2115_v4 = vsel %vm2069_vm7, %v5062_v58, 0.0 }
 0x2a7   : > { %5969 = vst [vmem:[#allocation103_spill] sm:$0xff] %v5120_v59  ;;  %v2102_v63 = vadd.f32 %v2101_v54, %v2100_v52  ;;  %v5129_v37 = vpop.eup %3295  ;;  %3321 = vpow2.f32 %v2043_v25  ;;  %v2051_v23 = vmul.f32 1.442695, %v5971_v55  ;;  %v5138_v44 = vsel %vm2069_vm7, %v5120_v59, 0.0 }
 0x2a8   : > { %v5140_v46 = vpop.eup %3297  ;;  %3323 = vpow2.f32 %v2045_v12  ;;  %v5972_v52 = vsub.f32 %v4834_v53, %v4878_v18  ;;  %v5147_v25 = vsel %vm2069_vm7, %v5129_v37, 0.0  ;;  %v5973_v55 = vsub.f32 %v4824_v24, %v4878_v18 }
 0x2a9   : > { %v2104_v57 = vadd.f32 %v2103_v11, %v2102_v63  ;;  %v5149_v39 = vpop.eup %3299  ;;  %3325 = vpow2.f32 %v2047_v26  ;;  %v5158_v12 = vsel %vm2069_vm7, %v5140_v46, 0.0  ;;  %v5974_v63 = vsub.f32 %v4814_v19, %v4878_v18 }
 0x2aa   : > { %v2053_v54 = vmul.f32 1.442695, %v5972_v52  ;;  %v2055_v8 = vmul.f32 1.442695, %v5973_v55  ;;  %v5160_v53 = vpop.eup %3301  ;;  %3327 = vpow2.f32 %v2049_v2  ;;  %v5167_v26 = vsel %vm2069_vm7, %v5149_v39, 0.0 }
 0x2ab   : > { %v2057_v11 = vmul.f32 1.442695, %v5974_v63  ;;  %v2106_v52 = vadd.f32 %v2105_v32, %v2104_v57  ;;  %v5169_v24 = vpop.eup %3303  ;;  %3329 = vpow2.f32 %v2051_v23  ;;  %v5975_v55 = vsub.f32 %v4853_v60, %v4878_v18 }
 0x2ac   : > { %v5178_v2 = vsel %vm2069_vm7, %v5160_v53, 0.0  ;;  %v5180_v19 = vpop.eup %3305  ;;  %3331 = vpow2.f32 %v2053_v54  ;;  %v2061_v32 = vmul.f32 1.442695, %v1936_v7  ;;  %v5184_v63 = vsel %vm2069_vm7, %v5169_v24, 0.0 }
 0x2ad   : > { %v2059_v16 = vmul.f32 1.442695, %v5975_v55  ;;  %v2108_v57 = vadd.f32 %v2107_v17, %v2106_v52  ;;  %v5186_v23 = vpop.eup %3307  ;;  %3333 = vpow2.f32 %v2055_v8  ;;  %v5976_v60 = vsub.f32 %v4848_v33, %v4878_v18 }
 0x2ae   : > { %v5195_v48 = vsel %vm2069_vm7, %v5180_v19, 0.0  ;;  %v5197_v7 = vpop.eup %3309  ;;  %3335 = vpow2.f32 %v2057_v11  ;;  %v2065_v17 = vmul.f32 1.442695, %v1938_v38  ;;  %v1908_v8 = vsub.f32 %v4654_v5, %v4878_v18 }
 0x2af   : > { %v2063_v55 = vmul.f32 1.442695, %v5976_v60  ;;  %v2110_v54 = vadd.f32 %v2109_v61, %v2108_v57  ;;  %v5199_v52 = vpop.eup %3311  ;;  %3337 = vpow2.f32 %v2059_v16  ;;  %v2111_v33 = vsel %vm2069_vm7, %v5054_v51, 0.0  ;;  %v5979_v16 = vld [vmem:[#allocation120_spill] sm:$0xff] }
 0x2b0   : > { %v5207_v60 = vsel %vm2069_vm7, %v5197_v7, 0.0  ;;  %v5209_v14 = vpop.eup %3313  ;;  %v5977_v11 = vsub.f32 %v4754_v1, %v4878_v18  ;;  %3339 = vpow2.f32 %v2061_v32  ;;  %v5216_v57 = vsel %vm2069_vm7, %v5199_v52, 0.0 }
 0x2b1   : > { %v2112_v61 = vadd.f32 %v2111_v33, %v2110_v54  ;;  %v5218_v5 = vpop.eup %3315  ;;  %v1909_v31 = vsub.f32 %v5979_v16, %v4878_v18  ;;  %3341 = vpow2.f32 %v2063_v55  ;;  %v2113_v1 = vsel %vm2069_vm7, %v5060_v15, 0.0  ;;  %v5983_v16 = vld [vmem:[#allocation121_spill] sm:$0xff] }
 0x2b2   : > { %v2029_v38 = vmul.f32 1.442695, %v5977_v11  ;;  %5978 = vst [vmem:[#allocation104_spill] sm:$0xff] %v5218_v5  ;;  %v5227_v11 = vpop.eup %3317  ;;  %3343 = vpow2.f32 %v2065_v17  ;;  %v5231_v54 = vsel %vm2069_vm7, %v5218_v5, 0.0  ;;  %v1910_v41 = vsub.f32 %v5983_v16, %v4878_v18 }
 0x2b3   : > { %5981 = vst [vmem:[#allocation105_spill] sm:$0xff] %v5227_v11  ;;  %v2114_v32 = vadd.f32 %v2113_v1, %v2112_v61  ;;  %v5233_v33 = vpop.eup %3319  ;;  %v2005_v51 = vmul.f32 1.442695, %v1908_v8  ;;  %v5241_v35 = vsel %vm2069_vm7, %v5227_v11, 0.0  ;;  %v2007_v16 = vmul.f32 1.442695, %v1909_v31 }
 0x2b4   : > { %5982 = vst [vmem:[#allocation106_spill] sm:$0xff] %v5233_v33  ;;  %v5243_v55 = vpop.eup %3321  ;;  %3345 = vpow2.f32 %v2029_v38  ;;  %v5247_v61 = vsel %vm2069_vm7, %v5233_v33, 0.0  ;;  %v2117_v8 = vsel %vm2069_vm7, %v5068_v28, 0.0  ;;  %v2119_v31 = vsel %vm2069_vm7, %v5074_v13, 0.0 }
 0x2b5   : > { %5984 = vst [vmem:[#allocation107_spill] sm:$0xff] %v5243_v55  ;;  %v2116_v17 = vadd.f32 %v2115_v4, %v2114_v32  ;;  %v5249_v1 = vpop.eup %3323  ;;  %3347 = vpow2.f32 %v2003_v43  ;;  %v5255_v5 = vsel %vm2069_vm7, %v5243_v55, 0.0  ;;  %v2009_v4 = vmul.f32 1.442695, %v1910_v41 }
 0x2b6   : > { %5985 = vst [vmem:[#allocation135_spill] sm:$0xff] %v5249_v1  ;;  %v5257_v9 = vpop.eup %3325  ;;  %v5261_v38 = vsel %vm2069_vm7, %v5249_v1, 0.0  ;;  %3349 = vpow2.f32 %v2005_v51  ;;  %v2121_v41 = vsel %vm2069_vm7, %v5080_v36, 0.0 }
 0x2b7   : > { %v2118_v11 = vadd.f32 %v2117_v8, %v2116_v17  ;;  %v5263_v32 = vpop.eup %3327  ;;  %v5269_v43 = vsel %vm2069_vm7, %v5257_v9, 0.0  ;;  %3351 = vpow2.f32 %v2007_v16 }
 0x2b8   : > { %v5271_v15 = vpop.eup %3329  ;;  %v5275_v17 = vsel %vm2069_vm7, %v5263_v32, 0.0  ;;  %3353 = vpow2.f32 %v2009_v4 }
 0x2b9   : > { %v2120_v34 = vadd.f32 %v2119_v31, %v2118_v11  ;;  %v5277_v8 = vpop.eup %3331  ;;  %v5283_v51 = vsel %vm2069_vm7, %v5271_v15, 0.0  ;;  %v2123_v31 = vsel %vm2069_vm7, %v5086_v0, 0.0 }
 0x2ba   : > { %v3334_v33 = vpop.eup %3333  ;;  %v5287_v27 = vsel %vm2069_vm7, %v5277_v8, 0.0 }
 0x2bb   : > { %v2122_v58 = vadd.f32 %v2121_v41, %v2120_v34  ;;  %v3336_v11 = vpop.eup %3335  ;;  %v5292_v16 = vsel %vm2069_vm7, %v3334_v33, 0.0  ;;  %v2125_v34 = vsel %vm2069_vm7, %v5093_v6, 0.0 }
 0x2bc   : > { %v3338_v10 = vpop.eup %3337  ;;  %v5295_v28 = vsel %vm2069_vm7, %v3336_v11, 0.0 }
 0x2bd   : > { %v2124_v55 = vadd.f32 %v2123_v31, %v2122_v58  ;;  %5986 = vst [vmem:[#allocation108_spill] sm:$0xff] %v5295_v28  ;;  %v3340_v49 = vpop.eup %3339  ;;  %v5300_v41 = vsel %vm2069_vm7, %v3338_v10, 0.0  ;;  %v2127_v58 = vsel %vm2069_vm7, %v5186_v23, 0.0 }
 0x2be   : > { %5987 = vst [vmem:[#allocation113_spill] sm:$0xff] %v5300_v41  ;;  %v3342_v45 = vpop.eup %3341  ;;  %v5303_v1 = vsel %vm2069_vm7, %v3340_v49, 0.0  ;;  %2524 = vperm.xlu0 %3224, %v3340_v49   ;;  %v2131_v49 = vsel %vm2069_vm7, %v5070_v21, 0.0 }
 0x2bf   : > { %v2126_v4 = vadd.f32 %v2125_v34, %v2124_v55  ;;  %5988 = vst [vmem:[#allocation115_spill] sm:$0xff] %v5303_v1  ;;  %v3344_v13 = vpop.eup %3343  ;;  %v5308_v31 = vsel %vm2069_vm7, %v3342_v45, 0.0  ;;  %v2129_v55 = vsel %vm2069_vm7, %v5209_v14, 0.0 }
 0x2c0   : > { %v5311_v30 = vsel %vm2069_vm7, %v3344_v13, 0.0  ;;  %2534 = vperm.xlu1 %3225, %v3344_v13  }
 0x2c1   : > { %v2128_v28 = vadd.f32 %v2127_v58, %v2126_v4  ;;  %5989 = vst [vmem:[#allocation114_spill] sm:$0xff] %v5311_v30  ;;  %v3346_v40 = vpop.eup %3345 }
 0x2c2   : > { %v5315_v34 = vpop.eup %3347  ;;  %2444 = vperm.xlu0 %3224, %v3346_v40  }
 0x2c3   : > { %v2130_v1 = vadd.f32 %v2129_v55, %v2128_v28  ;;  %v5319_v41 = vpop.eup %3349  ;;  %v2133_v4 = vsel %vm2069_vm7, %v5315_v34, 0.0 }
 0x2c4   : > { %2294 = vperm.xlu1 %3225, %v5024_v3   ;;  %v5324_v13 = vpop.eup %3351  ;;  %v2135_v30 = vsel %vm2069_vm7, %v5319_v41, 0.0 }
 0x2c5   : > { %v2132_v59 = vadd.f32 %v2131_v49, %v2130_v1  ;;  %v5328_v28 = vpop.eup %3353  ;;  %v2137_v21 = vsel %vm2069_vm7, %v5324_v13, 0.0 }
 0x2c6   : > { %2519 = vperm.xlu0 %3224, %v3338_v10   ;;  %v2139_v3 = vsel %vm2069_vm7, %v5328_v28, 0.0 }
 0x2c7   : > { %v2134_v58 = vadd.f32 %v2133_v4, %v2132_v59 }
 0x2c8   : > { %2454 = vperm.xlu1 %3225, %v5199_v52  }
 0x2c9   : > { %v2136_v55 = vadd.f32 %v2135_v30, %v2134_v58  ;;  %v5990_v30 = vsub.f32 %v4776_v62, %v4878_v18 }
 0x2ca   : > { %2439 = vperm.xlu0 %3224, %v5180_v19  }
 0x2cb   : > { %v2138_v1 = vadd.f32 %v2137_v21, %v2136_v55  ;;  %v2035_v52 = vmul.f32 1.442695, %v5990_v30  ;;  %v6007_v55 = vld [vmem:[#allocation99_spill] sm:$0xff] }
 0x2cc   : > { %2369 = vperm.xlu1 %3225, %v5209_v14  }
 0x2cd   : > { %v2140_v49 = vadd.f32 %v2139_v3, %v2138_v1  ;;  %3355 = vpow2.f32 %v2035_v52  ;;  %v6008_v3 = vld [vmem:[#allocation106_spill] sm:$0xff] }
 0x2ce   : > { %2514 = vperm.xlu0 %3224, %v3336_v11   ;;  %v6010_v52 = vld [vmem:[#allocation98_spill] sm:$0xff] }
 0x2cf   : > { %v2142_v10 = vadd.f32 %v5118_v29, %v2140_v49 }
 0x2d0   : > { %2529 = vperm.xlu1 %3225, %v3342_v45  }
 0x2d1   : > { %v2144_v59 = vadd.f32 %v5127_v22, %v2142_v10 }
 0x2d2   : > { %2434 = vperm.xlu0 %3224, %v5169_v24  }
 0x2d3   : > { %v2146_v4 = vadd.f32 %v5138_v44, %v2144_v59  ;;  %v6009_v59 = vld [vmem:[#allocation129_spill] sm:$0xff] }
 0x2d4   : > { %2289 = vperm.xlu1 %3225, %v5020_v20   ;;  %v2159_v20 = vsel %vm2069_vm7, %v3346_v40, 0.0 }
 0x2d5   : > { %v2148_v19 = vadd.f32 %v5147_v25, %v2146_v4  ;;  %v6011_v4 = vld [vmem:[#allocation105_spill] sm:$0xff] }
 0x2d6   : > { %2509 = vperm.xlu0 %3224, %v3334_v33  }
 0x2d7   : > { %v2150_v14 = vadd.f32 %v5158_v12, %v2148_v19  ;;  %v6012_v19 = vld [vmem:[#allocation125_spill] sm:$0xff] }
 0x2d8   : > { %2449 = vperm.xlu1 %3225, %v5197_v7   ;;  %v5995_v7 = vld [vmem:[#allocation108_spill] sm:$0xff] }
 0x2d9   : > { %v2152_v29 = vadd.f32 %v5167_v26, %v2150_v14 }
 0x2da   : > { %2429 = vperm.xlu0 %3224, %v5160_v53   ;;  %v5357_v44 = vpop.eup %3355 }
 0x2db   : > { %v2154_v45 = vadd.f32 %v5178_v2, %v2152_v29  ;;  %v5991_v2 = vld [vmem:[#allocation103_spill] sm:$0xff]  ;;  %v6013_v29 = vld [vmem:[#allocation97_spill] sm:$0xff] }
 0x2dc   : > { %2364 = vperm.xlu1 %3225, %v5186_v23  }
 0x2dd   : > { %v2156_v62 = vadd.f32 %v5184_v63, %v2154_v45  ;;  %v5993_v63 = vld [vmem:[#allocation89_spill] sm:$0xff]  ;;  %v6014_v45 = vld [vmem:[#allocation46_spill] sm:$0xff] }
 0x2de   : > { %2504 = vperm.xlu0 %3224, %v5277_v8  }
 0x2df   : > { %v2158_v18 = vadd.f32 %v5195_v48, %v2156_v62  ;;  %v2165_v48 = vsel %vm2069_vm7, %v5357_v44, 0.0 }
 0x2e0   : > { %2284 = vperm.xlu1 %3225, %v5014_v42  }
 0x2e1   : > { %v2160_v22 = vadd.f32 %v2159_v20, %v2158_v18  ;;  %v6015_v18 = vld [vmem:[#allocation104_spill] sm:$0xff] }
 0x2e2   : > { %2424 = vperm.xlu0 %3224, %v5149_v39   ;;  %v6016_v20 = vld [vmem:[#allocation124_spill] sm:$0xff] }
 0x2e3   : > { %v2162_v25 = vadd.f32 %v5207_v60, %v2160_v22  ;;  %v6018_v22 = vld [vmem:[#allocation92_spill] sm:$0xff] }
 0x2e4   : > { %2359 = vperm.xlu1 %3225, %v5093_v6  }
 0x2e5   : > { %v2164_v12 = vadd.f32 %v5216_v57, %v2162_v25  ;;  %v5996_v57 = vld [vmem:[#allocation134_spill] sm:$0xff] }
 0x2e6   : > { %2499 = vperm.xlu0 %3224, %v5271_v15   ;;  %v6020_v25 = vld [vmem:[#allocation122_spill] sm:$0xff] }
 0x2e7   : > { %v2166_v53 = vadd.f32 %v2165_v48, %v2164_v12  ;;  %v6021_v12 = vld [vmem:[#allocation127_spill] sm:$0xff]  ;;  %v6022_v48 = vld [vmem:[#allocation112_spill] sm:$0xff] }
 0x2e8   : > { %2279 = vperm.xlu1 %3225, %v5010_v56  }
 0x2e9   : > { %v2168_v40 = vadd.f32 %v5231_v54, %v2166_v53  ;;  %v5998_v54 = vld [vmem:[#allocation135_spill] sm:$0xff] }
 0x2ea   : > { %2419 = vperm.xlu0 %3224, %v5140_v46  }
 0x2eb   : > { %v2170_v42 = vadd.f32 %v5241_v35, %v2168_v40  ;;  %v6001_v35 = vld [vmem:[#allocation102_spill] sm:$0xff] }
 0x2ec   : > { %2354 = vperm.xlu1 %3225, %v5086_v0  }
 0x2ed   : > { %v2172_v39 = vadd.f32 %v5247_v61, %v2170_v42  ;;  %v6002_v61 = vld [vmem:[#allocation114_spill] sm:$0xff] }
 0x2ee   : > { %2494 = vperm.xlu0 %3224, %v5263_v32   ;;  %v6003_v32 = vld [vmem:[#allocation100_spill] sm:$0xff]  ;;  %v6023_v42 = vld [vmem:[#allocation78_spill] sm:$0xff] }
 0x2ef   : > { %v2174_v6 = vadd.f32 %v5255_v5, %v2172_v39  ;;  %v6024_v39 = vld [vmem:[#allocation96_spill] sm:$0xff] }
 0x2f0   : > { %2274 = vperm.xlu1 %3225, %v5004_v50   ;;  %v5992_v50 = vld [vmem:[#allocation123_spill] sm:$0xff] }
 0x2f1   : > { %v2176_v26 = vadd.f32 %v5261_v38, %v2174_v6  ;;  %v5994_v23 = vsub.f32 %v5992_v50, %v5993_v63  ;;  %v3402_v50 = vmov 1.0   ;;  %v6029_v63 = vld [vmem:[#allocation10_spill] sm:$0xff] }
 0x2f2   : > { %2414 = vperm.xlu0 %3224, %v5129_v37  }
 0x2f3   : > { %v2178_v15 = vadd.f32 %v5269_v43, %v2176_v26  ;;  %v1867_v37 = vmul.f32 1.442695, %v5994_v23  ;;  %v6025_v26 = vld [vmem:[#allocation30_spill] sm:$0xff]  ;;  %v6030_v23 = vld [vmem:[#allocation13_spill] sm:$0xff] }
 0x2f4   : > { %2349 = vperm.xlu1 %3225, %v5080_v36   ;;  %v5997_v36 = vld [vmem:[#allocation113_spill] sm:$0xff]  ;;  %vm6031_vm11 = vcmp.eq.s32.totalorder %v6029_v63, %v6030_v23 }
 0x2f5   : > { %v2180_v56 = vadd.f32 %v5275_v17, %v2178_v15  ;;  %3357 = vpow2.f32 %v1867_v37  ;;  %v6004_v17 = vld [vmem:[#allocation107_spill] sm:$0xff]  ;;  %2918 = vmatprep.mubr.msk.f32.mxu1 %vm6031_vm11, %v3402_v50 }
 0x2f6   : > { %2489 = vperm.xlu0 %3224, %v5257_v9   ;;  %v5999_v9 = vld [vmem:[#allocation115_spill] sm:$0xff] }
 0x2f7   : > { %v2182_v46 = vadd.f32 %v5283_v51, %v2180_v56  ;;  %v6005_v51 = vld [vmem:[#allocation93_spill] sm:$0xff] }
 0x2f8   : > { %2269 = vperm.xlu1 %3225, %v5000_v47   ;;  %v6000_v47 = vld [vmem:[#allocation94_spill] sm:$0xff] }
 0x2f9   : > { %v2184_v0 = vadd.f32 %v5287_v27, %v2182_v46 }
 0x2fa   : > { %2409 = vperm.xlu0 %3224, %v5991_v2   ;;  %v6028_v2 = vld [vmem:[#allocation95_spill] sm:$0xff] }
 0x2fb   : > { %v2186_v24 = vadd.f32 %v5292_v16, %v2184_v0  ;;  %v6006_v16 = vld [vmem:[#allocation101_spill] sm:$0xff]  ;;  %v6027_v0 = vld [vmem:[#allocation62_spill] sm:$0xff] }
 0x2fc   : > { %2344 = vperm.xlu1 %3225, %v5996_v57   ;;  %v6034_v57 = vld [vmem:[#allocation44_spill] sm:$0xff] }
 0x2fd   : > { %v2188_v60 = vadd.f32 %v5995_v7, %v2186_v24  ;;  %v6032_v7 = vld [vmem:[#allocation15_spill] sm:$0xff] }
 0x2fe   : > { %2484 = vperm.xlu0 %3224, %v5998_v54   ;;  %vm6033_vm14 = vcmp.eq.s32.totalorder %v6029_v63, %v6032_v7 }
 0x2ff   : > { %v2190_v5 = vadd.f32 %v5997_v36, %v2188_v60  ;;  %2920 = vmatprep.mubr.msk.f32.mxu0 %vm6033_vm14, %v3402_v50 }
 0x300   : > { %2264 = vperm.xlu1 %3225, %v6000_v47  }
 0x301   : > { %v2192_v27 = vadd.f32 %v5999_v9, %v2190_v5  ;;  %v6035_v5 = vld [vmem:[#allocation90_spill] sm:$0xff]  ;;  %v6036_v9 = vld [vmem:[#allocation11_spill] sm:$0xff] }
 0x302   : > { %2404 = vperm.xlu0 %3224, %v6001_v35   ;;  %v3358_v21 = vpop.eup %3357 }
 0x303   : > { %v2194_v33 = vadd.f32 %v5308_v31, %v2192_v27  ;;  %v2067_v31 = vld [vmem:[#allocation3] sm:$0x1]  ;;  %v2211_v27 = vrot.slane %v3358_v21, %v6036_v9 }
 0x304   : > { %2339 = vperm.xlu1 %3225, %v6003_v32   ;;  %v2068_v49 = vmul.f32 %v3358_v21, %v2067_v31  ;;  %v6038_v32 = vld [vmem:[#allocation28_spill] sm:$0xff]  ;;  %v6041_v31 = vld [vmem:[#allocation63_spill] sm:$0xff]  ;;  %v6042_v21 = vld [vmem:[#allocation77_spill] sm:$0xff] }
 0x305   : > { %v2196_v38 = vadd.f32 %v6002_v61, %v2194_v33  ;;  %v6037_v33 = vld [vmem:[#allocation76_spill] sm:$0xff] }
 0x306   : > { %2479 = vperm.xlu0 %3224, %v6004_v17  }
 0x307   : > { %v2197_v43 = vrot.slane %v2196_v38, 4 }
 0x308   : > { %2259 = vperm.xlu1 %3225, %v6005_v51   ;;  %v6039_v51 = vld [vmem:[#allocation60_spill] sm:$0xff] }
 0x309   : > { %v2198_v8 = vadd.f32 %v2197_v43, %v2196_v38 }
 0x30a   : > { %2399 = vperm.xlu0 %3224, %v6006_v16   ;;  %v6040_v16 = vld [vmem:[#allocation79_spill] sm:$0xff] }
 0x30b   : > { %v2199_v11 = vrot.slane %v2198_v8, 2 }
 0x30c   : > { %2334 = vperm.xlu1 %3225, %v6007_v55  }
 0x30d   : > { %v2200_v58 = vadd.f32 %v2199_v11, %v2198_v8 }
 0x30e   : > { %2474 = vperm.xlu0 %3224, %v6008_v3  }
 0x30f   : > { %v2201_v1 = vrot.slane %v2200_v58, 1 }
 0x310   : > { %2254 = vperm.xlu1 %3225, %v6009_v59  }
 0x311   : > { %v2202_v10 = vadd.f32 %v2201_v1, %v2200_v58 }
 0x312   : > { %2394 = vperm.xlu0 %3224, %v5328_v28   ;;  %v6017_v28 = vld [vmem:[#allocation133_spill] sm:$0xff] }
 0x313   : > { %v2203_v30 = vadd.f32 %v2202_v10, %v2068_v49  ;;  %v6043_v10 = vld [vmem:[#allocation61_spill] sm:$0xff] }
 0x314   : > { %2329 = vperm.xlu1 %3225, %v6010_v52  }
 0x315   : > { %2205 = vst.msk [vmem:[#allocation3] sm:$0x1] %vm2204_vm5, %v2203_v30  ;;  %v6044_v30 = vld [vmem:[#allocation47_spill] sm:$0xff] }
 0x316   : > { %2469 = vperm.xlu0 %3224, %v6011_v4   ;;  %v6045_v4 = vld [vmem:[#allocation74_spill] sm:$0xff] }
 0x318   : > { %2249 = vperm.xlu1 %3225, %v6012_v19  }
 0x31a   : > { %2389 = vperm.xlu0 %3224, %v5324_v13   ;;  %v6019_v13 = vld [vmem:[#allocation130_spill] sm:$0xff] }
 0x31b   : > { %v2375_v14 = vpop.permute.xlu0 %2374 }
 0x31c   : > { %2324 = vperm.xlu1 %3225, %v6013_v29   ;;  %v2568_v62 = vmul.f32 %v6014_v45, %v2375_v14  ;;  %v6046_v29 = vld [vmem:[#allocation58_spill] sm:$0xff] }
 0x31e   : > { %2464 = vperm.xlu0 %3224, %v6015_v18   ;;  %2996 = vmatprep.subr.mxu1 %v2568_v62  ;;  %v6047_v62 = vld [vmem:[#allocation56_spill] sm:$0xff] }
 0x320   : > { %2244 = vperm.xlu1 %3225, %v6016_v20   ;;  %v6048_v20 = vld [vmem:[#allocation72_spill] sm:$0xff] }
 0x322   : > { %2384 = vperm.xlu0 %3224, %v5319_v41  }
 0x324   : > { %2319 = vperm.xlu1 %3225, %v6017_v28  }
 0x326   : > { %2459 = vperm.xlu0 %3224, %v5357_v44  }
 0x328   : > { %2239 = vperm.xlu1 %3225, %v6018_v22  }
 0x32a   : > { %2379 = vperm.xlu0 %3224, %v5315_v34   ;;  %v6026_v34 = vld [vmem:[#allocation91_spill] sm:$0xff] }
 0x32c   : > { %2314 = vperm.xlu1 %3225, %v6019_v13   ;;  %v6049_v13 = vld [vmem:[#allocation75_spill] sm:$0xff] }
 0x330   : > { %2234 = vperm.xlu1 %3225, %v6020_v25  }
 0x334   : > { %2309 = vperm.xlu1 %3225, %v6021_v12   ;;  %v6050_v12 = vld [vmem:[#allocation31_spill] sm:$0xff] }
 0x338   : > { %2229 = vperm.xlu1 %3225, %v6022_v48  }
 0x339   : > { %v2525_v53 = vpop.permute.xlu0 %2524 }
 0x33a   : > { %v2598_v58 = vmul.f32 %v2525_v53, %v6040_v16 }
 0x33b   : > { %v2535_v40 = vpop.permute.xlu1 %2534 }
 0x33c   : > { %v2600_v41 = vmul.f32 %v6023_v42, %v2535_v40  ;;  %2304 = vperm.xlu1 %3225, %v6024_v39   ;;  %v6051_v40 = vld [vmem:[#allocation59_spill] sm:$0xff]  ;;  %v6052_v39 = vld [vmem:[#allocation45_spill] sm:$0xff] }
 0x33d   : > { %v2445_v6 = vpop.permute.xlu0 %2444 }
 0x33e   : > { %3031 = vmatprep.subr.mxu0 %v2600_v41  ;;  %v2582_v1 = vmul.f32 %v2445_v6, %v6041_v31 }
 0x33f   : > { %v2295_v44 = vpop.permute.xlu1 %2294 }
 0x340   : > { %v2552_v15 = vmul.f32 %v6025_v26, %v2295_v44  ;;  %2224 = vperm.xlu1 %3225, %v6026_v34   ;;  %v6053_v26 = vld [vmem:[#allocation73_spill] sm:$0xff] }
 0x341   : > { %v2520_v56 = vpop.permute.xlu0 %2519 }
 0x342   : > { %2997 = vmatpush3.msra.mxu1 %v2552_v15  ;;  %v2597_v3 = vmul.f32 %v2520_v56, %v6042_v21  ;;  %v6054_v56 = vld [vmem:[#allocation29_spill] sm:$0xff] }
 0x343   : > { %v2455_v46 = vpop.permute.xlu1 %2454 }
 0x344   : > { %v2584_v24 = vmul.f32 %v6027_v0, %v2455_v46  ;;  %2299 = vperm.xlu1 %3225, %v6028_v2  }
 0x345   : > { %v2440_v37 = vpop.permute.xlu0 %2439 }
 0x346   : > { %3032 = vmatpush3.msra.mxu0 %v2584_v24  ;;  %v2581_v59 = vmul.f32 %v2440_v37, %v6043_v10  ;;  %v6055_v24 = vld [vmem:[#allocation57_spill] sm:$0xff]  ;;  %v6056_v37 = vld [vmem:[#allocation42_spill] sm:$0xff] }
 0x347   : > { %v2370_v60 = vpop.permute.xlu1 %2369 }
 0x348   : > { %v2567_v36 = vmul.f32 %v6034_v57, %v2370_v60  ;;  %2219 = vperm.xlu1 %3225, %v6035_v5   ;;  %v6057_v57 = vld [vmem:[#allocation70_spill] sm:$0xff] }
 0x349   : > { %v2515_v54 = vpop.permute.xlu0 %2514 }
 0x34a   : > { %2998 = vmatprep.subr.mxu1 %v2567_v36  ;;  %v2596_v19 = vmul.f32 %v6045_v4, %v2515_v54  ;;  %v6058_v54 = vld [vmem:[#allocation26_spill] sm:$0xff] }
 0x34b   : > { %v2530_v47 = vpop.permute.xlu1 %2529 }
 0x34c   : > { %v2599_v35 = vmul.f32 %v6037_v33, %v2530_v47  ;;  %2213 = vperm.xlu1 %3225, %v2211_v27   ;;  %v6059_v47 = vld [vmem:[#allocation54_spill] sm:$0xff] }
 0x34d   : > { %v2435_v61 = vpop.permute.xlu0 %2434 }
 0x34e   : > { %3033 = vmatprep.subr.mxu0 %v2599_v35  ;;  %v2580_v45 = vmul.f32 %v6046_v29, %v2435_v61  ;;  %v6060_v61 = vld [vmem:[#allocation40_spill] sm:$0xff] }
 0x34f   : > { %v2290_v38 = vpop.permute.xlu1 %2289 }
 0x350   : > { %v2551_v43 = vmul.f32 %v6038_v32, %v2290_v38 }
 0x351   : > { %v2510_v17 = vpop.permute.xlu0 %2509 }
 0x352   : > { %2999 = vmatpush3.msra.mxu1 %v2551_v43  ;;  %v2595_v28 = vmul.f32 %v6048_v20, %v2510_v17  ;;  %v6061_v43 = vld [vmem:[#allocation68_spill] sm:$0xff]  ;;  %v6069_v20 = vld [vmem:[#allocation69_spill] sm:$0xff] }
 0x353   : > { %v2450_v8 = vpop.permute.xlu1 %2449 }
 0x354   : > { %v2583_v11 = vmul.f32 %v6039_v51, %v2450_v8  ;;  %v6062_v51 = vld [vmem:[#allocation24_spill] sm:$0xff] }
 0x355   : > { %v2430_v55 = vpop.permute.xlu0 %2429 }
 0x356   : > { %3034 = vmatpush3.msra.mxu0 %v2583_v11  ;;  %v2579_v18 = vmul.f32 %v6047_v62, %v2430_v55 }
 0x357   : > { %3035 = vmatprep.subr.mxu0 %v2598_v58  ;;  %v2365_v49 = vpop.permute.xlu1 %2364  ;;  %v6063_v58 = vld [vmem:[#allocation52_spill] sm:$0xff] }
 0x358   : > { %v2566_v52 = vmul.f32 %v2365_v49, %v6044_v30  ;;  %3036 = vmatpush3.msra.mxu0 %v2582_v1  ;;  %v6064_v1 = vld [vmem:[#allocation43_spill] sm:$0xff] }
 0x359   : > { %3037 = vmatprep.subr.mxu0 %v2597_v3  ;;  %v2505_v14 = vpop.permute.xlu0 %2504  ;;  %v6065_v49 = vld [vmem:[#allocation71_spill] sm:$0xff] }
 0x35a   : > { %3000 = vmatprep.subr.mxu1 %v2566_v52  ;;  %3038 = vmatpush3.msra.mxu0 %v2581_v59  ;;  %v2594_v25 = vmul.f32 %v2505_v14, %v6049_v13  ;;  %v6066_v30 = vld [vmem:[#allocation27_spill] sm:$0xff]  ;;  %v6070_v13 = vld [vmem:[#allocation25_spill] sm:$0xff] }
 0x35b   : > { %3039 = vmatprep.subr.mxu0 %v2596_v19  ;;  %v2285_v22 = vpop.permute.xlu1 %2284  ;;  %v6067_v19 = vld [vmem:[#allocation55_spill] sm:$0xff] }
 0x35c   : > { %v2550_v48 = vmul.f32 %v2285_v22, %v6050_v12  ;;  %3040 = vmatpush3.msra.mxu0 %v2580_v45  ;;  %v6068_v45 = vld [vmem:[#allocation41_spill] sm:$0xff] }
 0x35d   : > { %3041 = vmatprep.subr.mxu0 %v2595_v28  ;;  %v2425_v53 = vpop.permute.xlu0 %2424 }
 0x35e   : > { %3001 = vmatpush3.msra.mxu1 %v2550_v48  ;;  %3042 = vmatpush3.msra.mxu0 %v2579_v18  ;;  %v2578_v42 = vmul.f32 %v2425_v53, %v6051_v40  ;;  %v6071_v48 = vld [vmem:[#allocation53_spill] sm:$0xff] }
 0x35f   : > { %v2360_v41 = vpop.permute.xlu1 %2359  ;;  %3043 = vmatprep.subr.mxu0 %v2594_v25 }
 0x360   : > { %v2565_v6 = vmul.f32 %v2360_v41, %v6052_v39  ;;  %3044 = vmatpush3.msra.mxu0 %v2578_v42  ;;  %v6072_v42 = vld [vmem:[#allocation38_spill] sm:$0xff] }
 0x361   : > { %v2500_v44 = vpop.permute.xlu0 %2499 }
 0x362   : > { %3002 = vmatprep.subr.mxu1 %v2565_v6  ;;  %v2593_v15 = vmul.f32 %v2500_v44, %v6053_v26  ;;  %v6073_v6 = vld [vmem:[#allocation66_spill] sm:$0xff] }
 0x363   : > { %v2280_v34 = vpop.permute.xlu1 %2279 }
 0x364   : > { %v2549_v46 = vmul.f32 %v2280_v34, %v6054_v56  ;;  %3045 = vmatprep.subr.mxu0 %v2593_v15  ;;  %v6074_v15 = vld [vmem:[#allocation22_spill] sm:$0xff] }
 0x365   : > { %v2420_v0 = vpop.permute.xlu0 %2419 }
 0x366   : > { %3003 = vmatpush3.msra.mxu1 %v2549_v46  ;;  %v2577_v2 = vmul.f32 %v2420_v0, %v6055_v24  ;;  %v6075_v46 = vld [vmem:[#allocation50_spill] sm:$0xff] }
 0x367   : > { %v2355_v23 = vpop.permute.xlu1 %2354 }
 0x368   : > { %v2564_v7 = vmul.f32 %v6056_v37, %v2355_v23  ;;  %3046 = vmatpush3.msra.mxu0 %v2577_v2  ;;  %v6076_v2 = vld [vmem:[#allocation36_spill] sm:$0xff] }
 0x369   : > { %v2495_v60 = vpop.permute.xlu0 %2494 }
 0x36a   : > { %3004 = vmatprep.subr.mxu1 %v2564_v7  ;;  %v2592_v36 = vmul.f32 %v6057_v57, %v2495_v60  ;;  %v6077_v7 = vld [vmem:[#allocation64_spill] sm:$0xff] }
 0x36b   : > { %v2275_v5 = vpop.permute.xlu1 %2274 }
 0x36c   : > { %v2548_v9 = vmul.f32 %v6058_v54, %v2275_v5  ;;  %3047 = vmatprep.subr.mxu0 %v2592_v36  ;;  %v6078_v36 = vld [vmem:[#allocation20_spill] sm:$0xff] }
 0x36d   : > { %v2415_v27 = vpop.permute.xlu0 %2414 }
 0x36e   : > { %3005 = vmatpush3.msra.mxu1 %v2548_v9  ;;  %v2576_v33 = vmul.f32 %v6059_v47, %v2415_v27  ;;  %v6079_v9 = vld [vmem:[#allocation48_spill] sm:$0xff] }
 0x36f   : > { %v2350_v35 = vpop.permute.xlu1 %2349 }
 0x370   : > { %v2563_v38 = vmul.f32 %v6060_v61, %v2350_v35  ;;  %3048 = vmatpush3.msra.mxu0 %v2576_v33  ;;  %v6080_v33 = vld [vmem:[#allocation39_spill] sm:$0xff] }
 0x371   : > { %v2490_v32 = vpop.permute.xlu0 %2489 }
 0x372   : > { %3006 = vmatprep.subr.mxu1 %v2563_v38  ;;  %v2591_v17 = vmul.f32 %v6061_v43, %v2490_v32  ;;  %v6081_v38 = vld [vmem:[#allocation67_spill] sm:$0xff] }
 0x373   : > { %v2270_v8 = vpop.permute.xlu1 %2269 }
 0x374   : > { %v2547_v11 = vmul.f32 %v6062_v51, %v2270_v8  ;;  %3049 = vmatprep.subr.mxu0 %v2591_v17  ;;  %v6082_v17 = vld [vmem:[#allocation23_spill] sm:$0xff] }
 0x375   : > { %v2410_v16 = vpop.permute.xlu0 %2409 }
 0x376   : > { %3007 = vmatpush3.msra.mxu1 %v2547_v11  ;;  %v2575_v55 = vmul.f32 %v6063_v58, %v2410_v16  ;;  %v6083_v11 = vld [vmem:[#allocation51_spill] sm:$0xff] }
 0x377   : > { %v2345_v31 = vpop.permute.xlu1 %2344 }
 0x378   : > { %v2562_v21 = vmul.f32 %v2345_v31, %v6064_v1  ;;  %3050 = vmatpush3.msra.mxu0 %v2575_v55  ;;  %v6084_v55 = vld [vmem:[#allocation37_spill] sm:$0xff] }
 0x379   : > { %v2485_v3 = vpop.permute.xlu0 %2484 }
 0x37a   : > { %3008 = vmatprep.subr.mxu1 %v2562_v21  ;;  %v2590_v10 = vmul.f32 %v2485_v3, %v6065_v49  ;;  %v6085_v21 = vld [vmem:[#allocation65_spill] sm:$0xff] }
 0x37b   : > { %v2265_v59 = vpop.permute.xlu1 %2264 }
 0x37c   : > { %v2546_v52 = vmul.f32 %v2265_v59, %v6066_v30  ;;  %3051 = vmatprep.subr.mxu0 %v2590_v10  ;;  %v6086_v10 = vld [vmem:[#allocation21_spill] sm:$0xff] }
 0x37d   : > { %v2405_v4 = vpop.permute.xlu0 %2404 }
 0x37e   : > { %3009 = vmatpush3.msra.mxu1 %v2546_v52  ;;  %v2574_v14 = vmul.f32 %v2405_v4, %v6067_v19  ;;  %v6087_v52 = vld [vmem:[#allocation49_spill] sm:$0xff] }
 0x37f   : > { %v2340_v29 = vpop.permute.xlu1 %2339 }
 0x380   : > { %v2561_v62 = vmul.f32 %v2340_v29, %v6068_v45  ;;  %3052 = vmatpush3.msra.mxu0 %v2574_v14  ;;  %v6088_v14 = vld [vmem:[#allocation34_spill] sm:$0xff] }
 0x381   : > { %v2480_v18 = vpop.permute.xlu0 %2479  ;;  %v6089_v45 = vld [vmem:[#allocation14_spill] sm:$0xff] }
 0x382   : > { %3010 = vmatprep.subr.mxu1 %v2561_v62  ;;  %v2589_v28 = vmul.f32 %v2480_v18, %v6069_v20  ;;  %vm6090_vm10 = vcmp.eq.s32.totalorder %v6029_v63, %v6089_v45  ;;  %v6091_v18 = vld [vmem:[#allocation18_spill] sm:$0xff]  ;;  %v6095_v63 = vld [vmem:[#allocation19_spill] sm:$0xff] }
 0x383   : > { %v2260_v22 = vpop.permute.xlu1 %2259 }
 0x384   : > { %v2545_v25 = vmul.f32 %v2260_v22, %v6070_v13  ;;  %3053 = vmatprep.subr.mxu0 %v2589_v28  ;;  %v6092_v22 = vld [vmem:[#allocation32_spill] sm:$0xff] }
 0x385   : > { %v2400_v12 = vpop.permute.xlu0 %2399 }
 0x386   : > { %3011 = vmatpush3.msra.mxu1 %v2545_v25  ;;  %v2573_v53 = vmul.f32 %v2400_v12, %v6071_v48  ;;  %v6093_v12 = vld [vmem:[#allocation16_spill] sm:$0xff] }
 0x387   : > { %v2335_v40 = vpop.permute.xlu1 %2334 }
 0x388   : > { %v2560_v41 = vmul.f32 %v6072_v42, %v2335_v40  ;;  %3054 = vmatpush3.msra.mxu0 %v2573_v53  ;;  %v6094_v40 = vld [vmem:[#allocation35_spill] sm:$0xff] }
 0x389   : > { %v2475_v39 = vpop.permute.xlu0 %2474 }
 0x38a   : > { %3012 = vmatprep.subr.mxu1 %v2560_v41  ;;  %v2588_v44 = vmul.f32 %v6073_v6, %v2475_v39 }
 0x38b   : > { %v2255_v26 = vpop.permute.xlu1 %2254 }
 0x38c   : > { %v2544_v34 = vmul.f32 %v6074_v15, %v2255_v26  ;;  %3055 = vmatprep.subr.mxu0 %v2588_v44  ;;  %v6096_v44 = vld [vmem:[#allocation33_spill] sm:$0xff] }
 0x38d   : > { %v2395_v56 = vpop.permute.xlu0 %2394 }
 0x38e   : > { %3013 = vmatpush3.msra.mxu1 %v2544_v34  ;;  %v2572_v0 = vmul.f32 %v6075_v46, %v2395_v56  ;;  %v6097_v34 = vld [vmem:[#allocation17_spill] sm:$0xff] }
 0x38f   : > { %v2330_v24 = vpop.permute.xlu1 %2329 }
 0x390   : > { %v2559_v23 = vmul.f32 %v6076_v2, %v2330_v24  ;;  %3056 = vmatpush3.msra.mxu0 %v2572_v0 }
 0x391   : > { %v2470_v37 = vpop.permute.xlu0 %2469 }
 0x392   : > { %3014 = vmatprep.subr.mxu1 %v2559_v23  ;;  %v2587_v60 = vmul.f32 %v6077_v7, %v2470_v37  ;;  %v2206_v23 = vld [vmem:[#allocation4] sm:$0xff] }
 0x393   : > { %v2250_v57 = vpop.permute.xlu1 %2249 }
 0x394   : > { %v2543_v5 = vmul.f32 %v6078_v36, %v2250_v57  ;;  %3057 = vmatprep.subr.mxu0 %v2587_v60 }
 0x395   : > { %v2390_v54 = vpop.permute.xlu0 %2389 }
 0x396   : > { %3015 = vmatpush3.msra.mxu1 %v2543_v5  ;;  %v2571_v27 = vmul.f32 %v6079_v9, %v2390_v54 }
 0x397   : > { %v2325_v47 = vpop.permute.xlu1 %2324 }
 0x398   : > { %v2558_v35 = vmul.f32 %v2325_v47, %v6080_v33  ;;  %3058 = vmatpush3.msra.mxu0 %v2571_v27 }
 0x399   : > { %v2465_v61 = vpop.permute.xlu0 %2464 }
 0x39a   : > { %3016 = vmatprep.subr.mxu1 %v2558_v35  ;;  %v2586_v32 = vmul.f32 %v2465_v61, %v6081_v38 }
 0x39b   : > { %v2245_v43 = vpop.permute.xlu1 %2244 }
 0x39c   : > { %v2542_v8 = vmul.f32 %v2245_v43, %v6082_v17  ;;  %3059 = vmatprep.subr.mxu0 %v2586_v32 }
 0x39d   : > { %v2385_v51 = vpop.permute.xlu0 %2384 }
 0x39e   : > { %3017 = vmatpush3.msra.mxu1 %v2542_v8  ;;  %v2570_v16 = vmul.f32 %v2385_v51, %v6083_v11 }
 0x39f   : > { %v2320_v58 = vpop.permute.xlu1 %2319 }
 0x3a0   : > { %v2557_v31 = vmul.f32 %v2320_v58, %v6084_v55  ;;  %3060 = vmatpush3.msra.mxu0 %v2570_v16 }
 0x3a1   : > { %v2460_v1 = vpop.permute.xlu0 %2459 }
 0x3a2   : > { %3018 = vmatprep.subr.mxu1 %v2557_v31  ;;  %v2585_v3 = vmul.f32 %v2460_v1, %v6085_v21 }
 0x3a3   : > { %v2240_v49 = vpop.permute.xlu1 %2239 }
 0x3a4   : > { %v2541_v59 = vmul.f32 %v2240_v49, %v6086_v10  ;;  %3061 = vmatprep.subr.mxu0 %v2585_v3 }
 0x3a5   : > { %v2380_v30 = vpop.permute.xlu0 %2379 }
 0x3a6   : > { %3019 = vmatpush3.msra.mxu1 %v2541_v59  ;;  %v2569_v4 = vmul.f32 %v2380_v30, %v6087_v52 }
 0x3a7   : > { %v2315_v19 = vpop.permute.xlu1 %2314 }
 0x3a8   : > { %v2556_v29 = vmul.f32 %v6088_v14, %v2315_v19  ;;  %3062 = vmatpush3.msra.mxu0 %v2569_v4 }
 0x3a9   : > { %2921 = vmatmul.mubr.msk.f32.vlgmr.msra.gmra.mxu0 %vm6090_vm10, %v3402_v50 }
 0x3aa   : > { %3020 = vmatprep.subr.mxu1 %v2556_v29 }
 0x3ab   : > { %v2235_v62 = vpop.permute.xlu1 %2234 }
 0x3ac   : > { %v2540_v20 = vmul.f32 %v6091_v18, %v2235_v62 }
 0x3ae   : > { %3021 = vmatpush3.msra.mxu1 %v2540_v20 }
 0x3af   : > { %v2310_v28 = vpop.permute.xlu1 %2309 }
 0x3b0   : > { %v2555_v13 = vmul.f32 %v6092_v22, %v2310_v28 }
 0x3b2   : > { %3022 = vmatprep.subr.mxu1 %v2555_v13 }
 0x3b3   : > { %v2230_v25 = vpop.permute.xlu1 %2229 }
 0x3b4   : > { %v2539_v48 = vmul.f32 %v6093_v12, %v2230_v25 }
 0x3b6   : > { %3023 = vmatpush3.msra.mxu1 %v2539_v48 }
 0x3b7   : > { %v2305_v53 = vpop.permute.xlu1 %2304 }
 0x3b8   : > { %v2554_v42 = vmul.f32 %v2305_v53, %v6094_v40 }
 0x3ba   : > { %3024 = vmatprep.subr.mxu1 %v2554_v42 }
 0x3bb   : > { %v2225_v41 = vpop.permute.xlu1 %2224 }
 0x3bc   : > { %v2538_v39 = vmul.f32 %v2225_v41, %v6095_v63 }
 0x3be   : > { %3025 = vmatpush3.msra.mxu1 %v2538_v39 }
 0x3bf   : > { %v2300_v6 = vpop.permute.xlu1 %2299 }
 0x3c0   : > { %v2553_v26 = vmul.f32 %v2300_v6, %v6096_v44 }
 0x3c2   : > { %3026 = vmatprep.subr.mxu1 %v2553_v26 }
 0x3c3   : > { %v2220_v15 = vpop.permute.xlu1 %2219 }
 0x3c4   : > { %v2537_v56 = vmul.f32 %v2220_v15, %v6097_v34 }
 0x3c6   : > { %3027 = vmatpush3.msra.mxu1 %v2537_v56 }
 0x3c7   : > { %2919 = vmatmul.mubr.msk.f32.vlgmr.msra.gmra.mxu1 %vm3497_vm3, %v3402_v50  ;;  %v2214_v37 = vpop.permute.xlu1 %2213 }
 0x3c8   : > { %v2216_v36 = vmul.f32 %v2214_v37, %v2206_v23 }
 0x469   : > { %v3063_v0 = vpop.f32.mrf.mxu0 }
 0x46b   : > { %v3064_v2 = vpop.f32.mrf.mxu0 }
 0x46c   : > { %v3065_v57 = vadd.f32 %v3064_v2, %v3063_v0 }
 0x487   : > { %v3028_v24 = vpop.f32.mrf.mxu1 }
 0x489   : > { %v3029_v7 = vpop.f32.mrf.mxu1 }
 0x48a   : > { %v3030_v60 = vadd.f32 %v3029_v7, %v3028_v24 }
 0x48c   : > { %v2738_v5 = vadd.f32 %v3065_v57, %v3030_v60  ;;  %2747 = sbr.rel (%p2922_p5) target bundleno = 1314 (0x522), region = 44 }
 0x48e   : > { %v2741_v54 = vadd.f32 %v2738_v5, %v2216_v36 }
 0x490   : > { %2742 = vst.msk [vmem:[#allocation4] sm:$0xff] %vm6099_vm6, %v2741_v54 }
 0x491   : > { %v2923_v9 = vld [vmem:[#allocation3] ss:$0 sm:$0xff]  ;;  %v3403_v27 = vmov 0   ;;  %vm6100_vm3 = vcmask 130048  }
 0x492   : > { %3359 = vset.pattern.permute.xlu0 %v3403_v27 }
 0x493   : > { %2756 = vperm.xlu0 %3359, %v2923_v9  }
 0x497   : > { %v2748_v47 = vld [vmem:[#allocation4] sm:$0xff] }
 0x50e   : > { %v2757_v50 = vpop.permute.xlu0 %2756 }
 0x50f   : > { %3360 = vrcp.f32 %v2757_v50 }
 0x51c   : > { %v3361_v33 = vpop.eup %3360 }
 0x51d   : > { %v2760_v35 = vmul.f32 %v3361_v33, %v2748_v47 }
 0x51f   : > { %v2761_v61 = vmax.f32 %v2760_v35, 0.0 }
 0x521   : > { %2762 = vst.msk [vmem:[#allocation7] sm:$0xff] %vm6100_vm3, %v2761_v61 }
 0x522 PF: > { %p3207_p6 = scmp.eq.s32.totalorder %s3444_s21, 1  ;;  %s3404_s13 = smov [#allocation7]  }
 0x523   : > { %s2770_s14 = sshll.u32 %s3404_s13, 4  ;;  %s2771_s14 = int_to_ptr.vmem [resolvable:$true] %s2770_s14 }
 0x524   : > { %s3362_s15 = scalar_lea.vmem %s2771_s14, 128  ;;  %p3369_p10 = scmp.lt.s32.totalorder %s2771_s14, %s2771_s14 }
 0x525   : > { %p3363_p7 = scmp.ne.s32.totalorder %s2771_s14, %s3362_s15  ;;  %p3370_p11 = scmp.lt.s32.totalorder %s3362_s15, %s3362_s15 }
 0x527   : > { %p3364_p8 = pnand %p3363_p7, %p3207_p6  ;;  %p3371_p12 = por %p3370_p11, %p3369_p10 }
 0x529   : > { %p3365_p9 = pneg %p3364_p8 }
 0x52b   : > { %p3372_p13 = pnand %p3371_p12, %p3365_p9 }
 0x52d   : > { %3375 = shalt.err (!%p3372_p13)
}
 0x52e   : > { %3204 = dma.vmem_to_hbm [thread:$0]  (%p3207_p6), %s2771_s14, 128, %s5530_s5, [#allocation8]  }
 0x52f   : > { %3391 = dma.done.wait (%p3207_p6), [#allocation8], 128  }
 0x530   : > { %3393 = vsyncadd (%p3207_p6), [#allocation8], 4294967168 }
 0x531 PF: > { %s17_s20 = sadd.s32 1, %s3396_s20  }
 0x532   : > { %p14_p0 = scmp.ge.s32.totalorder %s17_s20, 4  }
 0x534   :  { %16 = sbr.rel (!%p14_p0) target bundleno = 3 (0x3), region = 74 }
 0x539   :  { %2783 = vsyncpa [#allocation8], 1 }
 0x53a   :  { %2785 = vsyncpa [#allocation8 + $0x1], 1 }

</bundles_post_ra>
